<compile_context>
chip_gen: v6e
topology: v6e:2x2x1
jax: 0.10.0
libtpu: 0.0.40
codegen_flags: <defaults>
</compile_context>

<pallas_src>
import functools

import jax
import jax.numpy as jnp
from jax.experimental import pallas as pl
from jax.experimental.pallas import tpu as pltpu  # noqa: F401  (TPU backend)

# ----------------------------- model config ---------------------------------
BS = 2                         # batch
S = 8                          # seq_len
D = 32                         # d_model
N_HEADS = 4
D_K = D // N_HEADS             # d_feature
N_SHARED = 2                   # n_shared_heads
N_SELECTED = 1                 # n_selected_heads (top-k over routed heads)
N_BLOCKS = 1                   # blocks_1 has 1 layer, blocks_2 has 2 layers
HR = N_HEADS - N_SHARED        # number of routed heads
N_LAYERS = 3 * N_BLOCKS        # total RouterTransformerLayer count

FUSED_COLS = 128               # lane-padded width of [Wq | Wk | Wv | Wg^T]
OUT_PAD = 8                    # output padding rows that carry the balance loss
NEG_INF = -1e9


# ------------------------------- kernel -------------------------------------
def routerkt_kernel(xq_ref, xqa_ref, wf_ref, wr_ref, out_ref, *,
                    n_heads, n_shared, n_selected, d_k, seq, n_blocks):
    """Entire RouterKTArchitecture forward on flattened (B*S, D) activations."""
    N = xq_ref.shape[0]                  # batch * seq (flattened rows)
    d_model = n_heads * d_k
    hr = n_heads - n_shared
    big = n_heads * N                    # rows after folding heads into rows
    scale = 1.0 / (float(d_k) ** 0.5)
    R0 = 3 * d_model                     # first bias/LN row in the "rest" slab

    x = xq_ref[...]                      # (N, D)  q_embed_data
    y = xqa_ref[...]                     # (N, D)  qa_embed_data

    # ---- numeric attention-mask operands: built once, shared by all layers --
    p_idx = jax.lax.broadcasted_iota(jnp.int32, (big, big), 0)   # query row
    r_idx = jax.lax.broadcasted_iota(jnp.int32, (big, big), 1)   # key   row
    if seq & (seq - 1) == 0:                    # power of two: shift/and
        shift = seq.bit_length() - 1
        g_p, i_p = p_idx >> shift, p_idx & (seq - 1)
        g_r, j_r = r_idx >> shift, r_idx & (seq - 1)
    else:
        g_p, i_p = p_idx // seq, p_idx % seq
        g_r, j_r = r_idx // seq, r_idx % seq
    same_grp = g_p == g_r                                    # same (head, batch)
    allowed_incl = jnp.logical_and(same_grp, j_r <= i_p)     # mask == 1
    allowed_strict = jnp.logical_and(same_grp, j_r < i_p)    # mask == 0
    zero_fill = jnp.logical_and(same_grp, i_p == 0)          # zero_pad rows

    # mask==1 layers: additive bias only (masked_fill == add at these scales,
    # since exp(score - 1e9 - rowmax) underflows to exactly 0 in f32).
    bias_incl = jnp.where(allowed_incl, 0.0, NEG_INF)
    # mask==0 + zero_pad layer: s*keep + bias (query row 0 -> exact zeros
    # within its block -> uniform attention, matching the torch.cat behavior).
    keep_strict = allowed_strict.astype(jnp.float32)
    bias_strict = jnp.where(jnp.logical_or(allowed_strict, zero_fill), 0.0, NEG_INF)

    idx_j = jax.lax.broadcasted_iota(jnp.int32, (N, hr), 1)       # top-k helper
    ones_shared = jnp.ones((n_shared * N, 1), jnp.float32)        # shared-head wts

    def project(inp, li):
        """Fused [q | k | v | router-logits] projection: one lane-dense matmul."""
        return (jnp.dot(inp, wf_ref[li, 0:d_model, :],
                        preferred_element_type=jnp.float32)
                + wf_ref[li, d_model:d_model + 1, :])              # (N, 128)

    def head_fold(fus, grp0):
        """Fused columns [grp0, grp0+H) -> head-folded (H*N, d_k) rows."""
        return jnp.concatenate(
            [fus[:, (grp0 + h) * d_k:(grp0 + h + 1) * d_k] for h in range(n_heads)],
            axis=0)

    def layer(xq, xv, li, keep, bias, v_is_q):
        """One RouterTransformerLayer forward (q4router == xq, kq_same=False)."""
        fused = project(xq, li)                     # q | k | v | logits of xq
        qh = head_fold(fused, 0)                    # (big, d_k)
        kh = head_fold(fused, n_heads)
        vh = head_fold(fused if v_is_q else project(xv, li), 2 * n_heads)

        # --- MoH routing: softmax gate over routed heads, top-k selection ---
        logits = fused[:, 3 * d_model:3 * d_model + hr]            # (N, hr)
        logits = logits - jnp.max(logits, axis=-1, keepdims=True)
        eg = jnp.exp(logits)
        gates = eg / jnp.sum(eg, axis=-1, keepdims=True)
        rank = jnp.zeros((N, hr), jnp.float32)
        for m in range(hr):          # torch.topk tie-breaking (smaller index wins)
            gm = gates[:, m:m + 1]
            rank = rank + (gm > gates).astype(jnp.float32) \
                        + jnp.logical_and(gm == gates, m < idx_j).astype(jnp.float32)
        dmask = (rank < float(n_selected)).astype(jnp.float32)    # (N, hr)
        dyn = gates * dmask                                       # dynamic_scores

        # --- attention with heads + batch folded into the row axis ----------
        s = jax.lax.dot_general(qh, kh, (((1,), (1,)), ((), ())),
                                preferred_element_type=jnp.float32) * scale
        if keep is None:
            s = s + bias
        else:
            s = s * keep + bias
        s = s - jnp.max(s, axis=-1, keepdims=True)
        es = jnp.exp(s)
        attn = es / jnp.sum(es, axis=-1, keepdims=True)
        ctx = jnp.dot(attn, vh, preferred_element_type=jnp.float32)  # (big, d_k)

        # --- MoH head weighting: one (big, 1) row scale ----------------------
        hw = jnp.concatenate(
            [ones_shared] + [dyn[:, j:j + 1] for j in range(hr)], axis=0)
        ctx = ctx * hw

        # --- un-fold heads -> (N, D) ------------------------------------------
        context = jnp.concatenate(
            [ctx[h * N:(h + 1) * N, :] for h in range(n_heads)], axis=1)

        # --- output projection, residual, LayerNorm1 --------------------------
        bln = wr_ref[li, R0:R0 + 8, :]        # bo bf1 bf2 ln1g ln1b ln2g ln2b pad
        attn_out = jnp.dot(context, wr_ref[li, 0:d_model, :],
                           preferred_element_type=jnp.float32) + bln[0:1, :]
        xr = xq + attn_out
        mu = jnp.mean(xr, axis=-1, keepdims=True)
        var = jnp.mean((xr - mu) ** 2, axis=-1, keepdims=True)
        xn = (xr - mu) * jax.lax.rsqrt(var + 1e-5) * bln[3:4, :] + bln[4:5, :]

        # --- FFN: Linear -> ReLU -> Linear (d_ff unused by transformer_FFN) ---
        h1 = jnp.maximum(
            jnp.dot(xn, wr_ref[li, d_model:2 * d_model, :],
                    preferred_element_type=jnp.float32) + bln[1:2, :], 0.0)
        ffn = jnp.dot(h1, wr_ref[li, 2 * d_model:3 * d_model, :],
                      preferred_element_type=jnp.float32) + bln[2:3, :]

        # --- residual + LayerNorm2 --------------------------------------------
        yr = xn + ffn
        mu2 = jnp.mean(yr, axis=-1, keepdims=True)
        var2 = jnp.mean((yr - mu2) ** 2, axis=-1, keepdims=True)
        yn = (yr - mu2) * jax.lax.rsqrt(var2 + 1e-5) * bln[5:6, :] + bln[6:7, :]
        return yn, gates, dmask

    # ---- RouterKTArchitecture.forward schedule ------------------------------
    li = 0
    for _ in range(n_blocks):                       # blocks_1: mask=1, q=k=v=y
        y, _, _ = layer(y, y, li, None, bias_incl, True)
        li += 1
    gates = dmask = None
    flag_first = True
    for _ in range(2 * n_blocks):                   # blocks_2: alternate mask 1/0
        if flag_first:
            x, _, _ = layer(x, x, li, None, bias_incl, True)
            flag_first = False
        else:
            x, gates, dmask = layer(x, y, li, keep_strict, bias_strict, False)
            flag_first = True
        li += 1

    # ---- balance loss of the last mask==0 block (what forward() returns) ----
    probs = jnp.mean(gates, axis=0, keepdims=True)      # head_routing_probs (1, HR)
    sels = jnp.sum(dmask, axis=0, keepdims=True)        # head_selections    (1, HR)
    f = sels / (jnp.sum(sels, axis=1, keepdims=True) + 1e-5)
    P = probs / (jnp.sum(probs, axis=1, keepdims=True) + 1e-5)
    loss = jnp.sum(f * P, axis=1, keepdims=True)        # (1, 1)

    out_ref[0:N, :] = x
    out_ref[N:, :] = jnp.broadcast_to(loss, (out_ref.shape[0] - N, d_model))


# ------------------------------ wrapper --------------------------------------
@jax.jit
def routerkt_forward(q_embed_data, qa_embed_data, w_fused_all, w_rest_all):
    """Mirrors RouterKTArchitecture.forward: (x, balance_loss_of_last_mask0_block)."""
    bsz, seq, d_model = q_embed_data.shape
    n = bsz * seq
    kernel = functools.partial(
        routerkt_kernel, n_heads=N_HEADS, n_shared=N_SHARED,
        n_selected=N_SELECTED, d_k=D_K, seq=seq, n_blocks=N_BLOCKS)
    out = pl.pallas_call(
        kernel,
        out_shape=jax.ShapeDtypeStruct((n + OUT_PAD, d_model), jnp.float32),
    )(q_embed_data.reshape(n, d_model),
      qa_embed_data.reshape(n, d_model),
      w_fused_all, w_rest_all)
    return out[:n].reshape(bsz, seq, d_model), out[n, 0]


# --------------------------- parameter init ----------------------------------
def init_layer_params(key):
    """Returns the packed (D+8, 128) fused-QKVG slab and (3D+8, D) rest slab."""
    ks = jax.random.split(key, 12)
    scl = 0.1

    def w(k, shape):
        return (scl * jax.random.normal(k, shape)).astype(jnp.float32)

    wq, bq = w(ks[0], (D, D)), w(ks[1], (D,))
    wk, bk = w(ks[2], (D, D)), w(ks[3], (D,))
    wv, bv = w(ks[4], (D, D)), w(ks[5], (D,))
    wg = w(ks[6], (HR, D))                       # router rows == torch wg.weight
    wo, bo = w(ks[7], (D, D)), w(ks[8], (D,))
    w1, bf1 = w(ks[9], (D, D)), w(ks[10], (D,))
    w2, bf2 = w(ks[11], (D, D)), jnp.zeros((D,), jnp.float32)
    ln1g, ln1b = jnp.ones((D,), jnp.float32), jnp.zeros((D,), jnp.float32)
    ln2g, ln2b = jnp.ones((D,), jnp.float32), jnp.zeros((D,), jnp.float32)

    # fused slab: rows 0..D-1 = [Wq | Wk | Wv | Wg^T] (stored (in, out)),
    # row D = fused bias [bq | bk | bv | 0], rest is sublane/lane zero padding.
    wf = jnp.zeros((D + 8, FUSED_COLS), jnp.float32)
    wf = wf.at[0:D, 0:D].set(wq)
    wf = wf.at[0:D, D:2 * D].set(wk)
    wf = wf.at[0:D, 2 * D:3 * D].set(wv)
    wf = wf.at[0:D, 3 * D:3 * D + HR].set(wg.T)
    wf = wf.at[D, 0:D].set(bq)
    wf = wf.at[D, D:2 * D].set(bk)
    wf = wf.at[D, 2 * D:3 * D].set(bv)

    # rest slab: rows [0:D]=Wo, [D:2D]=W1, [2D:3D]=W2,
    # then bo, bf1, bf2, ln1g, ln1b, ln2g, ln2b, and one zero pad row.
    wr = jnp.zeros((3 * D + 8, D), jnp.float32)
    wr = wr.at[0:D, :].set(wo)
    wr = wr.at[D:2 * D, :].set(w1)
    wr = wr.at[2 * D:3 * D, :].set(w2)
    for i, row in enumerate((bo, bf1, bf2, ln1g, ln1b, ln2g, ln2b)):
        wr = wr.at[3 * D + i, :].set(row)
    return wf, wr


# --------------------------------- main ---------------------------------------
if __name__ == "__main__":
    root = jax.random.PRNGKey(0)
    k_q, k_qa, *layer_keys = jax.random.split(root, 2 + N_LAYERS)

    q_embed_data = jax.random.normal(k_q, (BS, S, D), jnp.float32)
    qa_embed_data = jax.random.normal(k_qa, (BS, S, D), jnp.float32)

    packed = [init_layer_params(layer_keys[i]) for i in range(N_LAYERS)]
    w_fused_all = jnp.stack([p[0] for p in packed], axis=0)   # (L, D+8, 128)
    w_rest_all = jnp.stack([p[1] for p in packed], axis=0)    # (L, 3D+8, D)

    x_out, attn_loss = routerkt_forward(q_embed_data, qa_embed_data,
                                        w_fused_all, w_rest_all)
    jax.block_until_ready(x_out)
    jax.block_until_ready(attn_loss)

    assert x_out.shape == (BS, S, D)
    assert attn_loss.shape == ()
    print("KERNEL_OK")
</pallas_src>

<mosaic_0001>
module attributes {stable_mosaic.version = 11 : i64} {
  func.func @routerkt_kernel(%arg0: memref<16x32xf32, #tpu.memory_space<vmem>>, %arg1: memref<16x32xf32, #tpu.memory_space<vmem>>, %arg2: memref<3x40x128xf32, #tpu.memory_space<vmem>>, %arg3: memref<3x104x32xf32, #tpu.memory_space<vmem>>, %arg4: memref<24x32xf32, #tpu.memory_space<vmem>>) attributes {dimension_semantics = [], scalar_prefetch = 0 : i64, scratch_operands = 0 : i64, tpu.core_type = #tpu.core_type<tc>} {
    %c0 = arith.constant 0 : index
    %c0_0 = arith.constant 0 : index
    %0 = vector.load %arg0[%c0, %c0_0] : memref<16x32xf32, #tpu.memory_space<vmem>>, vector<16x32xf32>
    %c0_1 = arith.constant 0 : index
    %c0_2 = arith.constant 0 : index
    %1 = vector.load %arg1[%c0_1, %c0_2] : memref<16x32xf32, #tpu.memory_space<vmem>>, vector<16x32xf32>
    %2 = tpu.iota {dimensions = array<i32: 0>} : vector<64x64xi32>
    %3 = tpu.iota {dimensions = array<i32: 1>} : vector<64x64xi32>
    %c3_i32 = arith.constant 3 : i32
    %4 = vector.broadcast %c3_i32 : i32 to vector<64x64xi32>
    %5 = arith.shrsi %2, %4 : vector<64x64xi32>
    %c7_i32 = arith.constant 7 : i32
    %6 = vector.broadcast %c7_i32 : i32 to vector<64x64xi32>
    %7 = arith.andi %2, %6 : vector<64x64xi32>
    %c3_i32_3 = arith.constant 3 : i32
    %8 = vector.broadcast %c3_i32_3 : i32 to vector<64x64xi32>
    %9 = arith.shrsi %3, %8 : vector<64x64xi32>
    %c7_i32_4 = arith.constant 7 : i32
    %10 = vector.broadcast %c7_i32_4 : i32 to vector<64x64xi32>
    %11 = arith.andi %3, %10 : vector<64x64xi32>
    %12 = arith.cmpi eq, %5, %9 : vector<64x64xi32>
    %13 = arith.cmpi sle, %11, %7 : vector<64x64xi32>
    %14 = arith.andi %12, %13 : vector<64x64xi1>
    %15 = arith.cmpi slt, %11, %7 : vector<64x64xi32>
    %16 = arith.andi %12, %15 : vector<64x64xi1>
    %c0_i32 = arith.constant 0 : i32
    %17 = vector.broadcast %c0_i32 : i32 to vector<64x64xi32>
    %18 = arith.cmpi eq, %7, %17 : vector<64x64xi32>
    %19 = arith.andi %12, %18 : vector<64x64xi1>
    %cst = arith.constant 0.000000e+00 : f32
    %cst_5 = arith.constant -1.000000e+09 : f32
    %20 = vector.broadcast %cst : f32 to vector<64x64xf32>
    %21 = vector.broadcast %cst_5 : f32 to vector<64x64xf32>
    %22 = arith.select %14, %20, %21 : vector<64x64xi1>, vector<64x64xf32>
    %23 = arith.extui %16 : vector<64x64xi1> to vector<64x64xi32>
    %24 = arith.sitofp %23 : vector<64x64xi32> to vector<64x64xf32>
    %25 = arith.ori %16, %19 : vector<64x64xi1>
    %cst_6 = arith.constant 0.000000e+00 : f32
    %cst_7 = arith.constant -1.000000e+09 : f32
    %26 = vector.broadcast %cst_6 : f32 to vector<64x64xf32>
    %27 = vector.broadcast %cst_7 : f32 to vector<64x64xf32>
    %28 = arith.select %25, %26, %27 : vector<64x64xi1>, vector<64x64xf32>
    %29 = tpu.iota {dimensions = array<i32: 1>} : vector<16x2xi32>
    %cst_8 = arith.constant 1.000000e+00 : f32
    %30 = vector.broadcast %cst_8 : f32 to vector<32x1xf32>
    %c0_9 = arith.constant 0 : index
    %c0_10 = arith.constant 0 : index
    %c0_11 = arith.constant 0 : index
    %31 = vector.load %arg2[%c0_9, %c0_10, %c0_11] : memref<3x40x128xf32, #tpu.memory_space<vmem>>, vector<1x32x128xf32>
    %32 = vector.shape_cast %31 : vector<1x32x128xf32> to vector<32x128xf32>
    %cst_12 = arith.constant dense<0.000000e+00> : vector<16x128xf32>
    %33 = tpu.matmul %1, %32, %cst_12 {dimension_numbers = #tpu.dot_dimension_numbers<[1], [0], [0], [1], [0, 0, 1, 1], [], []>} : vector<16x32xf32>, vector<32x128xf32>, vector<16x128xf32> -> vector<16x128xf32>
    %c0_13 = arith.constant 0 : index
    %c32 = arith.constant 32 : index
    %c0_14 = arith.constant 0 : index
    %34 = vector.load %arg2[%c0_13, %c32, %c0_14] : memref<3x40x128xf32, #tpu.memory_space<vmem>>, vector<1x1x128xf32>
    %35 = vector.shape_cast %34 : vector<1x1x128xf32> to vector<1x128xf32>
    %36 = vector.broadcast %35 : vector<1x128xf32> to vector<16x128xf32>
    %37 = arith.addf %33, %36 : vector<16x128xf32>
    %38 = vector.extract_strided_slice %37 {offsets = [0, 0], sizes = [16, 8], strides = [1, 1]} : vector<16x128xf32> to vector<16x8xf32>
    %39 = vector.extract_strided_slice %37 {offsets = [0, 8], sizes = [16, 8], strides = [1, 1]} : vector<16x128xf32> to vector<16x8xf32>
    %40 = vector.extract_strided_slice %37 {offsets = [0, 16], sizes = [16, 8], strides = [1, 1]} : vector<16x128xf32> to vector<16x8xf32>
    %41 = vector.extract_strided_slice %37 {offsets = [0, 24], sizes = [16, 8], strides = [1, 1]} : vector<16x128xf32> to vector<16x8xf32>
    %42 = tpu.concatenate %38, %39, %40, %41 in 0 : vector<16x8xf32>, vector<16x8xf32>, vector<16x8xf32>, vector<16x8xf32> -> vector<64x8xf32>
    %43 = vector.extract_strided_slice %37 {offsets = [0, 32], sizes = [16, 8], strides = [1, 1]} : vector<16x128xf32> to vector<16x8xf32>
    %44 = vector.extract_strided_slice %37 {offsets = [0, 40], sizes = [16, 8], strides = [1, 1]} : vector<16x128xf32> to vector<16x8xf32>
    %45 = vector.extract_strided_slice %37 {offsets = [0, 48], sizes = [16, 8], strides = [1, 1]} : vector<16x128xf32> to vector<16x8xf32>
    %46 = vector.extract_strided_slice %37 {offsets = [0, 56], sizes = [16, 8], strides = [1, 1]} : vector<16x128xf32> to vector<16x8xf32>
    %47 = tpu.concatenate %43, %44, %45, %46 in 0 : vector<16x8xf32>, vector<16x8xf32>, vector<16x8xf32>, vector<16x8xf32> -> vector<64x8xf32>
    %48 = vector.extract_strided_slice %37 {offsets = [0, 64], sizes = [16, 8], strides = [1, 1]} : vector<16x128xf32> to vector<16x8xf32>
    %49 = vector.extract_strided_slice %37 {offsets = [0, 72], sizes = [16, 8], strides = [1, 1]} : vector<16x128xf32> to vector<16x8xf32>
    %50 = vector.extract_strided_slice %37 {offsets = [0, 80], sizes = [16, 8], strides = [1, 1]} : vector<16x128xf32> to vector<16x8xf32>
    %51 = vector.extract_strided_slice %37 {offsets = [0, 88], sizes = [16, 8], strides = [1, 1]} : vector<16x128xf32> to vector<16x8xf32>
    %52 = tpu.concatenate %48, %49, %50, %51 in 0 : vector<16x8xf32>, vector<16x8xf32>, vector<16x8xf32>, vector<16x8xf32> -> vector<64x8xf32>
    %53 = vector.extract_strided_slice %37 {offsets = [0, 96], sizes = [16, 2], strides = [1, 1]} : vector<16x128xf32> to vector<16x2xf32>
    %cst_15 = arith.constant dense<0xFF800000> : vector<16xf32>
    %54 = vector.multi_reduction <maximumf>, %53, %cst_15 [1] : vector<16x2xf32> to vector<16xf32>
    %55 = vector.shape_cast %54 : vector<16xf32> to vector<16x1xf32>
    %56 = vector.broadcast %55 : vector<16x1xf32> to vector<16x2xf32>
    %57 = arith.subf %53, %56 : vector<16x2xf32>
    %58 = math.exp %57 : vector<16x2xf32>
    %cst_16 = arith.constant dense<0.000000e+00> : vector<16xf32>
    %59 = vector.multi_reduction <add>, %58, %cst_16 [1] : vector<16x2xf32> to vector<16xf32>
    %60 = vector.shape_cast %59 : vector<16xf32> to vector<16x1xf32>
    %61 = vector.broadcast %60 : vector<16x1xf32> to vector<16x2xf32>
    %62 = arith.divf %58, %61 : vector<16x2xf32>
    %cst_17 = arith.constant 0.000000e+00 : f32
    %63 = vector.broadcast %cst_17 : f32 to vector<16x2xf32>
    %64 = vector.extract_strided_slice %62 {offsets = [0, 0], sizes = [16, 1], strides = [1, 1]} : vector<16x2xf32> to vector<16x1xf32>
    %65 = vector.broadcast %64 : vector<16x1xf32> to vector<16x2xf32>
    %66 = arith.cmpf ogt, %65, %62 : vector<16x2xf32>
    %67 = arith.extui %66 : vector<16x2xi1> to vector<16x2xi32>
    %68 = arith.sitofp %67 : vector<16x2xi32> to vector<16x2xf32>
    %69 = arith.addf %63, %68 : vector<16x2xf32>
    %70 = vector.broadcast %64 : vector<16x1xf32> to vector<16x2xf32>
    %71 = arith.cmpf oeq, %70, %62 : vector<16x2xf32>
    %c0_i32_18 = arith.constant 0 : i32
    %72 = vector.broadcast %c0_i32_18 : i32 to vector<16x2xi32>
    %73 = arith.cmpi sgt, %29, %72 : vector<16x2xi32>
    %74 = arith.andi %71, %73 : vector<16x2xi1>
    %75 = arith.extui %74 : vector<16x2xi1> to vector<16x2xi32>
    %76 = arith.sitofp %75 : vector<16x2xi32> to vector<16x2xf32>
    %77 = arith.addf %69, %76 : vector<16x2xf32>
    %78 = vector.extract_strided_slice %62 {offsets = [0, 1], sizes = [16, 1], strides = [1, 1]} : vector<16x2xf32> to vector<16x1xf32>
    %79 = vector.broadcast %78 : vector<16x1xf32> to vector<16x2xf32>
    %80 = arith.cmpf ogt, %79, %62 : vector<16x2xf32>
    %81 = arith.extui %80 : vector<16x2xi1> to vector<16x2xi32>
    %82 = arith.sitofp %81 : vector<16x2xi32> to vector<16x2xf32>
    %83 = arith.addf %77, %82 : vector<16x2xf32>
    %84 = vector.broadcast %78 : vector<16x1xf32> to vector<16x2xf32>
    %85 = arith.cmpf oeq, %84, %62 : vector<16x2xf32>
    %c1_i32 = arith.constant 1 : i32
    %86 = vector.broadcast %c1_i32 : i32 to vector<16x2xi32>
    %87 = arith.cmpi sgt, %29, %86 : vector<16x2xi32>
    %88 = arith.andi %85, %87 : vector<16x2xi1>
    %89 = arith.extui %88 : vector<16x2xi1> to vector<16x2xi32>
    %90 = arith.sitofp %89 : vector<16x2xi32> to vector<16x2xf32>
    %91 = arith.addf %83, %90 : vector<16x2xf32>
    %cst_19 = arith.constant 1.000000e+00 : f32
    %92 = vector.broadcast %cst_19 : f32 to vector<16x2xf32>
    %93 = arith.cmpf olt, %91, %92 : vector<16x2xf32>
    %94 = arith.extui %93 : vector<16x2xi1> to vector<16x2xi32>
    %95 = arith.sitofp %94 : vector<16x2xi32> to vector<16x2xf32>
    %96 = arith.mulf %62, %95 : vector<16x2xf32>
    %cst_20 = arith.constant dense<0.000000e+00> : vector<64x64xf32>
    %97 = tpu.matmul %42, %47, %cst_20 {dimension_numbers = #tpu.dot_dimension_numbers<[1], [1], [0], [0], [0, 0, 1, 0], [], []>} : vector<64x8xf32>, vector<64x8xf32>, vector<64x64xf32> -> vector<64x64xf32>
    %cst_21 = arith.constant 0.353553385 : f32
    %98 = vector.broadcast %cst_21 : f32 to vector<64x64xf32>
    %99 = arith.mulf %97, %98 : vector<64x64xf32>
    %100 = arith.addf %99, %22 : vector<64x64xf32>
    %cst_22 = arith.constant dense<0xFF800000> : vector<64xf32>
    %101 = vector.multi_reduction <maximumf>, %100, %cst_22 [1] : vector<64x64xf32> to vector<64xf32>
    %102 = vector.shape_cast %101 : vector<64xf32> to vector<64x1xf32>
    %103 = vector.broadcast %102 : vector<64x1xf32> to vector<64x64xf32>
    %104 = arith.subf %100, %103 : vector<64x64xf32>
    %105 = math.exp %104 : vector<64x64xf32>
    %cst_23 = arith.constant dense<0.000000e+00> : vector<64xf32>
    %106 = vector.multi_reduction <add>, %105, %cst_23 [1] : vector<64x64xf32> to vector<64xf32>
    %107 = vector.shape_cast %106 : vector<64xf32> to vector<64x1xf32>
    %108 = vector.broadcast %107 : vector<64x1xf32> to vector<64x64xf32>
    %109 = arith.divf %105, %108 : vector<64x64xf32>
    %cst_24 = arith.constant dense<0.000000e+00> : vector<64x8xf32>
    %110 = tpu.matmul %109, %52, %cst_24 {dimension_numbers = #tpu.dot_dimension_numbers<[1], [0], [0], [1], [0, 0, 1, 1], [], []>} : vector<64x64xf32>, vector<64x8xf32>, vector<64x8xf32> -> vector<64x8xf32>
    %111 = vector.extract_strided_slice %96 {offsets = [0, 0], sizes = [16, 1], strides = [1, 1]} : vector<16x2xf32> to vector<16x1xf32>
    %112 = vector.extract_strided_slice %96 {offsets = [0, 1], sizes = [16, 1], strides = [1, 1]} : vector<16x2xf32> to vector<16x1xf32>
    %113 = tpu.concatenate %30, %111, %112 in 0 : vector<32x1xf32>, vector<16x1xf32>, vector<16x1xf32> -> vector<64x1xf32>
    %114 = vector.broadcast %113 : vector<64x1xf32> to vector<64x8xf32>
    %115 = arith.mulf %110, %114 : vector<64x8xf32>
    %116 = vector.extract_strided_slice %115 {offsets = [0, 0], sizes = [16, 8], strides = [1, 1]} : vector<64x8xf32> to vector<16x8xf32>
    %117 = vector.extract_strided_slice %115 {offsets = [16, 0], sizes = [16, 8], strides = [1, 1]} : vector<64x8xf32> to vector<16x8xf32>
    %118 = vector.extract_strided_slice %115 {offsets = [32, 0], sizes = [16, 8], strides = [1, 1]} : vector<64x8xf32> to vector<16x8xf32>
    %119 = vector.extract_strided_slice %115 {offsets = [48, 0], sizes = [16, 8], strides = [1, 1]} : vector<64x8xf32> to vector<16x8xf32>
    %120 = tpu.concatenate %116, %117, %118, %119 in 1 : vector<16x8xf32>, vector<16x8xf32>, vector<16x8xf32>, vector<16x8xf32> -> vector<16x32xf32>
    %c0_25 = arith.constant 0 : index
    %c96 = arith.constant 96 : index
    %c0_26 = arith.constant 0 : index
    %121 = vector.load %arg3[%c0_25, %c96, %c0_26] : memref<3x104x32xf32, #tpu.memory_space<vmem>>, vector<1x8x32xf32>
    %122 = vector.shape_cast %121 : vector<1x8x32xf32> to vector<8x32xf32>
    %c0_27 = arith.constant 0 : index
    %c0_28 = arith.constant 0 : index
    %c0_29 = arith.constant 0 : index
    %123 = vector.load %arg3[%c0_27, %c0_28, %c0_29] : memref<3x104x32xf32, #tpu.memory_space<vmem>>, vector<1x32x32xf32>
    %124 = vector.shape_cast %123 : vector<1x32x32xf32> to vector<32x32xf32>
    %cst_30 = arith.constant dense<0.000000e+00> : vector<16x32xf32>
    %125 = tpu.matmul %120, %124, %cst_30 {dimension_numbers = #tpu.dot_dimension_numbers<[1], [0], [0], [1], [0, 0, 1, 1], [], []>} : vector<16x32xf32>, vector<32x32xf32>, vector<16x32xf32> -> vector<16x32xf32>
    %126 = vector.extract_strided_slice %122 {offsets = [0, 0], sizes = [1, 32], strides = [1, 1]} : vector<8x32xf32> to vector<1x32xf32>
    %127 = vector.broadcast %126 : vector<1x32xf32> to vector<16x32xf32>
    %128 = arith.addf %125, %127 : vector<16x32xf32>
    %129 = arith.addf %1, %128 : vector<16x32xf32>
    %cst_31 = arith.constant dense<0.000000e+00> : vector<16xf32>
    %130 = vector.multi_reduction <add>, %129, %cst_31 [1] : vector<16x32xf32> to vector<16xf32>
    %131 = vector.shape_cast %130 : vector<16xf32> to vector<16x1xf32>
    %cst_32 = arith.constant 3.200000e+01 : f32
    %132 = vector.broadcast %cst_32 : f32 to vector<16x1xf32>
    %133 = arith.divf %131, %132 : vector<16x1xf32>
    %134 = vector.broadcast %133 : vector<16x1xf32> to vector<16x32xf32>
    %135 = arith.subf %129, %134 : vector<16x32xf32>
    %136 = arith.mulf %135, %135 : vector<16x32xf32>
    %cst_33 = arith.constant dense<0.000000e+00> : vector<16xf32>
    %137 = vector.multi_reduction <add>, %136, %cst_33 [1] : vector<16x32xf32> to vector<16xf32>
    %138 = vector.shape_cast %137 : vector<16xf32> to vector<16x1xf32>
    %cst_34 = arith.constant 3.200000e+01 : f32
    %139 = vector.broadcast %cst_34 : f32 to vector<16x1xf32>
    %140 = arith.divf %138, %139 : vector<16x1xf32>
    %141 = vector.broadcast %133 : vector<16x1xf32> to vector<16x32xf32>
    %142 = arith.subf %129, %141 : vector<16x32xf32>
    %cst_35 = arith.constant 9.99999974E-6 : f32
    %143 = vector.broadcast %cst_35 : f32 to vector<16x1xf32>
    %144 = arith.addf %140, %143 : vector<16x1xf32>
    %145 = math.rsqrt %144 : vector<16x1xf32>
    %146 = vector.broadcast %145 : vector<16x1xf32> to vector<16x32xf32>
    %147 = arith.mulf %142, %146 : vector<16x32xf32>
    %148 = vector.extract_strided_slice %122 {offsets = [3, 0], sizes = [1, 32], strides = [1, 1]} : vector<8x32xf32> to vector<1x32xf32>
    %149 = vector.broadcast %148 : vector<1x32xf32> to vector<16x32xf32>
    %150 = arith.mulf %147, %149 : vector<16x32xf32>
    %151 = vector.extract_strided_slice %122 {offsets = [4, 0], sizes = [1, 32], strides = [1, 1]} : vector<8x32xf32> to vector<1x32xf32>
    %152 = vector.broadcast %151 : vector<1x32xf32> to vector<16x32xf32>
    %153 = arith.addf %150, %152 : vector<16x32xf32>
    %c0_36 = arith.constant 0 : index
    %c32_37 = arith.constant 32 : index
    %c0_38 = arith.constant 0 : index
    %154 = vector.load %arg3[%c0_36, %c32_37, %c0_38] : memref<3x104x32xf32, #tpu.memory_space<vmem>>, vector<1x32x32xf32>
    %155 = vector.shape_cast %154 : vector<1x32x32xf32> to vector<32x32xf32>
    %cst_39 = arith.constant dense<0.000000e+00> : vector<16x32xf32>
    %156 = tpu.matmul %153, %155, %cst_39 {dimension_numbers = #tpu.dot_dimension_numbers<[1], [0], [0], [1], [0, 0, 1, 1], [], []>} : vector<16x32xf32>, vector<32x32xf32>, vector<16x32xf32> -> vector<16x32xf32>
    %157 = vector.extract_strided_slice %122 {offsets = [1, 0], sizes = [1, 32], strides = [1, 1]} : vector<8x32xf32> to vector<1x32xf32>
    %158 = vector.broadcast %157 : vector<1x32xf32> to vector<16x32xf32>
    %159 = arith.addf %156, %158 : vector<16x32xf32>
    %cst_40 = arith.constant 0.000000e+00 : f32
    %160 = vector.broadcast %cst_40 : f32 to vector<16x32xf32>
    %161 = arith.maximumf %159, %160 : vector<16x32xf32>
    %c0_41 = arith.constant 0 : index
    %c64 = arith.constant 64 : index
    %c0_42 = arith.constant 0 : index
    %162 = vector.load %arg3[%c0_41, %c64, %c0_42] : memref<3x104x32xf32, #tpu.memory_space<vmem>>, vector<1x32x32xf32>
    %163 = vector.shape_cast %162 : vector<1x32x32xf32> to vector<32x32xf32>
    %cst_43 = arith.constant dense<0.000000e+00> : vector<16x32xf32>
    %164 = tpu.matmul %161, %163, %cst_43 {dimension_numbers = #tpu.dot_dimension_numbers<[1], [0], [0], [1], [0, 0, 1, 1], [], []>} : vector<16x32xf32>, vector<32x32xf32>, vector<16x32xf32> -> vector<16x32xf32>
    %165 = vector.extract_strided_slice %122 {offsets = [2, 0], sizes = [1, 32], strides = [1, 1]} : vector<8x32xf32> to vector<1x32xf32>
    %166 = vector.broadcast %165 : vector<1x32xf32> to vector<16x32xf32>
    %167 = arith.addf %164, %166 : vector<16x32xf32>
    %168 = arith.addf %153, %167 : vector<16x32xf32>
    %cst_44 = arith.constant dense<0.000000e+00> : vector<16xf32>
    %169 = vector.multi_reduction <add>, %168, %cst_44 [1] : vector<16x32xf32> to vector<16xf32>
    %170 = vector.shape_cast %169 : vector<16xf32> to vector<16x1xf32>
    %cst_45 = arith.constant 3.200000e+01 : f32
    %171 = vector.broadcast %cst_45 : f32 to vector<16x1xf32>
    %172 = arith.divf %170, %171 : vector<16x1xf32>
    %173 = vector.broadcast %172 : vector<16x1xf32> to vector<16x32xf32>
    %174 = arith.subf %168, %173 : vector<16x32xf32>
    %175 = arith.mulf %174, %174 : vector<16x32xf32>
    %cst_46 = arith.constant dense<0.000000e+00> : vector<16xf32>
    %176 = vector.multi_reduction <add>, %175, %cst_46 [1] : vector<16x32xf32> to vector<16xf32>
    %177 = vector.shape_cast %176 : vector<16xf32> to vector<16x1xf32>
    %cst_47 = arith.constant 3.200000e+01 : f32
    %178 = vector.broadcast %cst_47 : f32 to vector<16x1xf32>
    %179 = arith.divf %177, %178 : vector<16x1xf32>
    %180 = vector.broadcast %172 : vector<16x1xf32> to vector<16x32xf32>
    %181 = arith.subf %168, %180 : vector<16x32xf32>
    %cst_48 = arith.constant 9.99999974E-6 : f32
    %182 = vector.broadcast %cst_48 : f32 to vector<16x1xf32>
    %183 = arith.addf %179, %182 : vector<16x1xf32>
    %184 = math.rsqrt %183 : vector<16x1xf32>
    %185 = vector.broadcast %184 : vector<16x1xf32> to vector<16x32xf32>
    %186 = arith.mulf %181, %185 : vector<16x32xf32>
    %187 = vector.extract_strided_slice %122 {offsets = [5, 0], sizes = [1, 32], strides = [1, 1]} : vector<8x32xf32> to vector<1x32xf32>
    %188 = vector.broadcast %187 : vector<1x32xf32> to vector<16x32xf32>
    %189 = arith.mulf %186, %188 : vector<16x32xf32>
    %190 = vector.extract_strided_slice %122 {offsets = [6, 0], sizes = [1, 32], strides = [1, 1]} : vector<8x32xf32> to vector<1x32xf32>
    %191 = vector.broadcast %190 : vector<1x32xf32> to vector<16x32xf32>
    %192 = arith.addf %189, %191 : vector<16x32xf32>
    %c1 = arith.constant 1 : index
    %c0_49 = arith.constant 0 : index
    %c0_50 = arith.constant 0 : index
    %193 = vector.load %arg2[%c1, %c0_49, %c0_50] : memref<3x40x128xf32, #tpu.memory_space<vmem>>, vector<1x32x128xf32>
    %194 = vector.shape_cast %193 : vector<1x32x128xf32> to vector<32x128xf32>
    %cst_51 = arith.constant dense<0.000000e+00> : vector<16x128xf32>
    %195 = tpu.matmul %0, %194, %cst_51 {dimension_numbers = #tpu.dot_dimension_numbers<[1], [0], [0], [1], [0, 0, 1, 1], [], []>} : vector<16x32xf32>, vector<32x128xf32>, vector<16x128xf32> -> vector<16x128xf32>
    %c1_52 = arith.constant 1 : index
    %c32_53 = arith.constant 32 : index
    %c0_54 = arith.constant 0 : index
    %196 = vector.load %arg2[%c1_52, %c32_53, %c0_54] : memref<3x40x128xf32, #tpu.memory_space<vmem>>, vector<1x1x128xf32>
    %197 = vector.shape_cast %196 : vector<1x1x128xf32> to vector<1x128xf32>
    %198 = vector.broadcast %197 : vector<1x128xf32> to vector<16x128xf32>
    %199 = arith.addf %195, %198 : vector<16x128xf32>
    %200 = vector.extract_strided_slice %199 {offsets = [0, 0], sizes = [16, 8], strides = [1, 1]} : vector<16x128xf32> to vector<16x8xf32>
    %201 = vector.extract_strided_slice %199 {offsets = [0, 8], sizes = [16, 8], strides = [1, 1]} : vector<16x128xf32> to vector<16x8xf32>
    %202 = vector.extract_strided_slice %199 {offsets = [0, 16], sizes = [16, 8], strides = [1, 1]} : vector<16x128xf32> to vector<16x8xf32>
    %203 = vector.extract_strided_slice %199 {offsets = [0, 24], sizes = [16, 8], strides = [1, 1]} : vector<16x128xf32> to vector<16x8xf32>
    %204 = tpu.concatenate %200, %201, %202, %203 in 0 : vector<16x8xf32>, vector<16x8xf32>, vector<16x8xf32>, vector<16x8xf32> -> vector<64x8xf32>
    %205 = vector.extract_strided_slice %199 {offsets = [0, 32], sizes = [16, 8], strides = [1, 1]} : vector<16x128xf32> to vector<16x8xf32>
    %206 = vector.extract_strided_slice %199 {offsets = [0, 40], sizes = [16, 8], strides = [1, 1]} : vector<16x128xf32> to vector<16x8xf32>
    %207 = vector.extract_strided_slice %199 {offsets = [0, 48], sizes = [16, 8], strides = [1, 1]} : vector<16x128xf32> to vector<16x8xf32>
    %208 = vector.extract_strided_slice %199 {offsets = [0, 56], sizes = [16, 8], strides = [1, 1]} : vector<16x128xf32> to vector<16x8xf32>
    %209 = tpu.concatenate %205, %206, %207, %208 in 0 : vector<16x8xf32>, vector<16x8xf32>, vector<16x8xf32>, vector<16x8xf32> -> vector<64x8xf32>
    %210 = vector.extract_strided_slice %199 {offsets = [0, 64], sizes = [16, 8], strides = [1, 1]} : vector<16x128xf32> to vector<16x8xf32>
    %211 = vector.extract_strided_slice %199 {offsets = [0, 72], sizes = [16, 8], strides = [1, 1]} : vector<16x128xf32> to vector<16x8xf32>
    %212 = vector.extract_strided_slice %199 {offsets = [0, 80], sizes = [16, 8], strides = [1, 1]} : vector<16x128xf32> to vector<16x8xf32>
    %213 = vector.extract_strided_slice %199 {offsets = [0, 88], sizes = [16, 8], strides = [1, 1]} : vector<16x128xf32> to vector<16x8xf32>
    %214 = tpu.concatenate %210, %211, %212, %213 in 0 : vector<16x8xf32>, vector<16x8xf32>, vector<16x8xf32>, vector<16x8xf32> -> vector<64x8xf32>
    %215 = vector.extract_strided_slice %199 {offsets = [0, 96], sizes = [16, 2], strides = [1, 1]} : vector<16x128xf32> to vector<16x2xf32>
    %cst_55 = arith.constant dense<0xFF800000> : vector<16xf32>
    %216 = vector.multi_reduction <maximumf>, %215, %cst_55 [1] : vector<16x2xf32> to vector<16xf32>
    %217 = vector.shape_cast %216 : vector<16xf32> to vector<16x1xf32>
    %218 = vector.broadcast %217 : vector<16x1xf32> to vector<16x2xf32>
    %219 = arith.subf %215, %218 : vector<16x2xf32>
    %220 = math.exp %219 : vector<16x2xf32>
    %cst_56 = arith.constant dense<0.000000e+00> : vector<16xf32>
    %221 = vector.multi_reduction <add>, %220, %cst_56 [1] : vector<16x2xf32> to vector<16xf32>
    %222 = vector.shape_cast %221 : vector<16xf32> to vector<16x1xf32>
    %223 = vector.broadcast %222 : vector<16x1xf32> to vector<16x2xf32>
    %224 = arith.divf %220, %223 : vector<16x2xf32>
    %cst_57 = arith.constant 0.000000e+00 : f32
    %225 = vector.broadcast %cst_57 : f32 to vector<16x2xf32>
    %226 = vector.extract_strided_slice %224 {offsets = [0, 0], sizes = [16, 1], strides = [1, 1]} : vector<16x2xf32> to vector<16x1xf32>
    %227 = vector.broadcast %226 : vector<16x1xf32> to vector<16x2xf32>
    %228 = arith.cmpf ogt, %227, %224 : vector<16x2xf32>
    %229 = arith.extui %228 : vector<16x2xi1> to vector<16x2xi32>
    %230 = arith.sitofp %229 : vector<16x2xi32> to vector<16x2xf32>
    %231 = arith.addf %225, %230 : vector<16x2xf32>
    %232 = vector.broadcast %226 : vector<16x1xf32> to vector<16x2xf32>
    %233 = arith.cmpf oeq, %232, %224 : vector<16x2xf32>
    %c0_i32_58 = arith.constant 0 : i32
    %234 = vector.broadcast %c0_i32_58 : i32 to vector<16x2xi32>
    %235 = arith.cmpi sgt, %29, %234 : vector<16x2xi32>
    %236 = arith.andi %233, %235 : vector<16x2xi1>
    %237 = arith.extui %236 : vector<16x2xi1> to vector<16x2xi32>
    %238 = arith.sitofp %237 : vector<16x2xi32> to vector<16x2xf32>
    %239 = arith.addf %231, %238 : vector<16x2xf32>
    %240 = vector.extract_strided_slice %224 {offsets = [0, 1], sizes = [16, 1], strides = [1, 1]} : vector<16x2xf32> to vector<16x1xf32>
    %241 = vector.broadcast %240 : vector<16x1xf32> to vector<16x2xf32>
    %242 = arith.cmpf ogt, %241, %224 : vector<16x2xf32>
    %243 = arith.extui %242 : vector<16x2xi1> to vector<16x2xi32>
    %244 = arith.sitofp %243 : vector<16x2xi32> to vector<16x2xf32>
    %245 = arith.addf %239, %244 : vector<16x2xf32>
    %246 = vector.broadcast %240 : vector<16x1xf32> to vector<16x2xf32>
    %247 = arith.cmpf oeq, %246, %224 : vector<16x2xf32>
    %c1_i32_59 = arith.constant 1 : i32
    %248 = vector.broadcast %c1_i32_59 : i32 to vector<16x2xi32>
    %249 = arith.cmpi sgt, %29, %248 : vector<16x2xi32>
    %250 = arith.andi %247, %249 : vector<16x2xi1>
    %251 = arith.extui %250 : vector<16x2xi1> to vector<16x2xi32>
    %252 = arith.sitofp %251 : vector<16x2xi32> to vector<16x2xf32>
    %253 = arith.addf %245, %252 : vector<16x2xf32>
    %cst_60 = arith.constant 1.000000e+00 : f32
    %254 = vector.broadcast %cst_60 : f32 to vector<16x2xf32>
    %255 = arith.cmpf olt, %253, %254 : vector<16x2xf32>
    %256 = arith.extui %255 : vector<16x2xi1> to vector<16x2xi32>
    %257 = arith.sitofp %256 : vector<16x2xi32> to vector<16x2xf32>
    %258 = arith.mulf %224, %257 : vector<16x2xf32>
    %cst_61 = arith.constant dense<0.000000e+00> : vector<64x64xf32>
    %259 = tpu.matmul %204, %209, %cst_61 {dimension_numbers = #tpu.dot_dimension_numbers<[1], [1], [0], [0], [0, 0, 1, 0], [], []>} : vector<64x8xf32>, vector<64x8xf32>, vector<64x64xf32> -> vector<64x64xf32>
    %cst_62 = arith.constant 0.353553385 : f32
    %260 = vector.broadcast %cst_62 : f32 to vector<64x64xf32>
    %261 = arith.mulf %259, %260 : vector<64x64xf32>
    %262 = arith.addf %261, %22 : vector<64x64xf32>
    %cst_63 = arith.constant dense<0xFF800000> : vector<64xf32>
    %263 = vector.multi_reduction <maximumf>, %262, %cst_63 [1] : vector<64x64xf32> to vector<64xf32>
    %264 = vector.shape_cast %263 : vector<64xf32> to vector<64x1xf32>
    %265 = vector.broadcast %264 : vector<64x1xf32> to vector<64x64xf32>
    %266 = arith.subf %262, %265 : vector<64x64xf32>
    %267 = math.exp %266 : vector<64x64xf32>
    %cst_64 = arith.constant dense<0.000000e+00> : vector<64xf32>
    %268 = vector.multi_reduction <add>, %267, %cst_64 [1] : vector<64x64xf32> to vector<64xf32>
    %269 = vector.shape_cast %268 : vector<64xf32> to vector<64x1xf32>
    %270 = vector.broadcast %269 : vector<64x1xf32> to vector<64x64xf32>
    %271 = arith.divf %267, %270 : vector<64x64xf32>
    %cst_65 = arith.constant dense<0.000000e+00> : vector<64x8xf32>
    %272 = tpu.matmul %271, %214, %cst_65 {dimension_numbers = #tpu.dot_dimension_numbers<[1], [0], [0], [1], [0, 0, 1, 1], [], []>} : vector<64x64xf32>, vector<64x8xf32>, vector<64x8xf32> -> vector<64x8xf32>
    %273 = vector.extract_strided_slice %258 {offsets = [0, 0], sizes = [16, 1], strides = [1, 1]} : vector<16x2xf32> to vector<16x1xf32>
    %274 = vector.extract_strided_slice %258 {offsets = [0, 1], sizes = [16, 1], strides = [1, 1]} : vector<16x2xf32> to vector<16x1xf32>
    %275 = tpu.concatenate %30, %273, %274 in 0 : vector<32x1xf32>, vector<16x1xf32>, vector<16x1xf32> -> vector<64x1xf32>
    %276 = vector.broadcast %275 : vector<64x1xf32> to vector<64x8xf32>
    %277 = arith.mulf %272, %276 : vector<64x8xf32>
    %278 = vector.extract_strided_slice %277 {offsets = [0, 0], sizes = [16, 8], strides = [1, 1]} : vector<64x8xf32> to vector<16x8xf32>
    %279 = vector.extract_strided_slice %277 {offsets = [16, 0], sizes = [16, 8], strides = [1, 1]} : vector<64x8xf32> to vector<16x8xf32>
    %280 = vector.extract_strided_slice %277 {offsets = [32, 0], sizes = [16, 8], strides = [1, 1]} : vector<64x8xf32> to vector<16x8xf32>
    %281 = vector.extract_strided_slice %277 {offsets = [48, 0], sizes = [16, 8], strides = [1, 1]} : vector<64x8xf32> to vector<16x8xf32>
    %282 = tpu.concatenate %278, %279, %280, %281 in 1 : vector<16x8xf32>, vector<16x8xf32>, vector<16x8xf32>, vector<16x8xf32> -> vector<16x32xf32>
    %c1_66 = arith.constant 1 : index
    %c96_67 = arith.constant 96 : index
    %c0_68 = arith.constant 0 : index
    %283 = vector.load %arg3[%c1_66, %c96_67, %c0_68] : memref<3x104x32xf32, #tpu.memory_space<vmem>>, vector<1x8x32xf32>
    %284 = vector.shape_cast %283 : vector<1x8x32xf32> to vector<8x32xf32>
    %c1_69 = arith.constant 1 : index
    %c0_70 = arith.constant 0 : index
    %c0_71 = arith.constant 0 : index
    %285 = vector.load %arg3[%c1_69, %c0_70, %c0_71] : memref<3x104x32xf32, #tpu.memory_space<vmem>>, vector<1x32x32xf32>
    %286 = vector.shape_cast %285 : vector<1x32x32xf32> to vector<32x32xf32>
    %cst_72 = arith.constant dense<0.000000e+00> : vector<16x32xf32>
    %287 = tpu.matmul %282, %286, %cst_72 {dimension_numbers = #tpu.dot_dimension_numbers<[1], [0], [0], [1], [0, 0, 1, 1], [], []>} : vector<16x32xf32>, vector<32x32xf32>, vector<16x32xf32> -> vector<16x32xf32>
    %288 = vector.extract_strided_slice %284 {offsets = [0, 0], sizes = [1, 32], strides = [1, 1]} : vector<8x32xf32> to vector<1x32xf32>
    %289 = vector.broadcast %288 : vector<1x32xf32> to vector<16x32xf32>
    %290 = arith.addf %287, %289 : vector<16x32xf32>
    %291 = arith.addf %0, %290 : vector<16x32xf32>
    %cst_73 = arith.constant dense<0.000000e+00> : vector<16xf32>
    %292 = vector.multi_reduction <add>, %291, %cst_73 [1] : vector<16x32xf32> to vector<16xf32>
    %293 = vector.shape_cast %292 : vector<16xf32> to vector<16x1xf32>
    %cst_74 = arith.constant 3.200000e+01 : f32
    %294 = vector.broadcast %cst_74 : f32 to vector<16x1xf32>
    %295 = arith.divf %293, %294 : vector<16x1xf32>
    %296 = vector.broadcast %295 : vector<16x1xf32> to vector<16x32xf32>
    %297 = arith.subf %291, %296 : vector<16x32xf32>
    %298 = arith.mulf %297, %297 : vector<16x32xf32>
    %cst_75 = arith.constant dense<0.000000e+00> : vector<16xf32>
    %299 = vector.multi_reduction <add>, %298, %cst_75 [1] : vector<16x32xf32> to vector<16xf32>
    %300 = vector.shape_cast %299 : vector<16xf32> to vector<16x1xf32>
    %cst_76 = arith.constant 3.200000e+01 : f32
    %301 = vector.broadcast %cst_76 : f32 to vector<16x1xf32>
    %302 = arith.divf %300, %301 : vector<16x1xf32>
    %303 = vector.broadcast %295 : vector<16x1xf32> to vector<16x32xf32>
    %304 = arith.subf %291, %303 : vector<16x32xf32>
    %cst_77 = arith.constant 9.99999974E-6 : f32
    %305 = vector.broadcast %cst_77 : f32 to vector<16x1xf32>
    %306 = arith.addf %302, %305 : vector<16x1xf32>
    %307 = math.rsqrt %306 : vector<16x1xf32>
    %308 = vector.broadcast %307 : vector<16x1xf32> to vector<16x32xf32>
    %309 = arith.mulf %304, %308 : vector<16x32xf32>
    %310 = vector.extract_strided_slice %284 {offsets = [3, 0], sizes = [1, 32], strides = [1, 1]} : vector<8x32xf32> to vector<1x32xf32>
    %311 = vector.broadcast %310 : vector<1x32xf32> to vector<16x32xf32>
    %312 = arith.mulf %309, %311 : vector<16x32xf32>
    %313 = vector.extract_strided_slice %284 {offsets = [4, 0], sizes = [1, 32], strides = [1, 1]} : vector<8x32xf32> to vector<1x32xf32>
    %314 = vector.broadcast %313 : vector<1x32xf32> to vector<16x32xf32>
    %315 = arith.addf %312, %314 : vector<16x32xf32>
    %c1_78 = arith.constant 1 : index
    %c32_79 = arith.constant 32 : index
    %c0_80 = arith.constant 0 : index
    %316 = vector.load %arg3[%c1_78, %c32_79, %c0_80] : memref<3x104x32xf32, #tpu.memory_space<vmem>>, vector<1x32x32xf32>
    %317 = vector.shape_cast %316 : vector<1x32x32xf32> to vector<32x32xf32>
    %cst_81 = arith.constant dense<0.000000e+00> : vector<16x32xf32>
    %318 = tpu.matmul %315, %317, %cst_81 {dimension_numbers = #tpu.dot_dimension_numbers<[1], [0], [0], [1], [0, 0, 1, 1], [], []>} : vector<16x32xf32>, vector<32x32xf32>, vector<16x32xf32> -> vector<16x32xf32>
    %319 = vector.extract_strided_slice %284 {offsets = [1, 0], sizes = [1, 32], strides = [1, 1]} : vector<8x32xf32> to vector<1x32xf32>
    %320 = vector.broadcast %319 : vector<1x32xf32> to vector<16x32xf32>
    %321 = arith.addf %318, %320 : vector<16x32xf32>
    %cst_82 = arith.constant 0.000000e+00 : f32
    %322 = vector.broadcast %cst_82 : f32 to vector<16x32xf32>
    %323 = arith.maximumf %321, %322 : vector<16x32xf32>
    %c1_83 = arith.constant 1 : index
    %c64_84 = arith.constant 64 : index
    %c0_85 = arith.constant 0 : index
    %324 = vector.load %arg3[%c1_83, %c64_84, %c0_85] : memref<3x104x32xf32, #tpu.memory_space<vmem>>, vector<1x32x32xf32>
    %325 = vector.shape_cast %324 : vector<1x32x32xf32> to vector<32x32xf32>
    %cst_86 = arith.constant dense<0.000000e+00> : vector<16x32xf32>
    %326 = tpu.matmul %323, %325, %cst_86 {dimension_numbers = #tpu.dot_dimension_numbers<[1], [0], [0], [1], [0, 0, 1, 1], [], []>} : vector<16x32xf32>, vector<32x32xf32>, vector<16x32xf32> -> vector<16x32xf32>
    %327 = vector.extract_strided_slice %284 {offsets = [2, 0], sizes = [1, 32], strides = [1, 1]} : vector<8x32xf32> to vector<1x32xf32>
    %328 = vector.broadcast %327 : vector<1x32xf32> to vector<16x32xf32>
    %329 = arith.addf %326, %328 : vector<16x32xf32>
    %330 = arith.addf %315, %329 : vector<16x32xf32>
    %cst_87 = arith.constant dense<0.000000e+00> : vector<16xf32>
    %331 = vector.multi_reduction <add>, %330, %cst_87 [1] : vector<16x32xf32> to vector<16xf32>
    %332 = vector.shape_cast %331 : vector<16xf32> to vector<16x1xf32>
    %cst_88 = arith.constant 3.200000e+01 : f32
    %333 = vector.broadcast %cst_88 : f32 to vector<16x1xf32>
    %334 = arith.divf %332, %333 : vector<16x1xf32>
    %335 = vector.broadcast %334 : vector<16x1xf32> to vector<16x32xf32>
    %336 = arith.subf %330, %335 : vector<16x32xf32>
    %337 = arith.mulf %336, %336 : vector<16x32xf32>
    %cst_89 = arith.constant dense<0.000000e+00> : vector<16xf32>
    %338 = vector.multi_reduction <add>, %337, %cst_89 [1] : vector<16x32xf32> to vector<16xf32>
    %339 = vector.shape_cast %338 : vector<16xf32> to vector<16x1xf32>
    %cst_90 = arith.constant 3.200000e+01 : f32
    %340 = vector.broadcast %cst_90 : f32 to vector<16x1xf32>
    %341 = arith.divf %339, %340 : vector<16x1xf32>
    %342 = vector.broadcast %334 : vector<16x1xf32> to vector<16x32xf32>
    %343 = arith.subf %330, %342 : vector<16x32xf32>
    %cst_91 = arith.constant 9.99999974E-6 : f32
    %344 = vector.broadcast %cst_91 : f32 to vector<16x1xf32>
    %345 = arith.addf %341, %344 : vector<16x1xf32>
    %346 = math.rsqrt %345 : vector<16x1xf32>
    %347 = vector.broadcast %346 : vector<16x1xf32> to vector<16x32xf32>
    %348 = arith.mulf %343, %347 : vector<16x32xf32>
    %349 = vector.extract_strided_slice %284 {offsets = [5, 0], sizes = [1, 32], strides = [1, 1]} : vector<8x32xf32> to vector<1x32xf32>
    %350 = vector.broadcast %349 : vector<1x32xf32> to vector<16x32xf32>
    %351 = arith.mulf %348, %350 : vector<16x32xf32>
    %352 = vector.extract_strided_slice %284 {offsets = [6, 0], sizes = [1, 32], strides = [1, 1]} : vector<8x32xf32> to vector<1x32xf32>
    %353 = vector.broadcast %352 : vector<1x32xf32> to vector<16x32xf32>
    %354 = arith.addf %351, %353 : vector<16x32xf32>
    %c2 = arith.constant 2 : index
    %c0_92 = arith.constant 0 : index
    %c0_93 = arith.constant 0 : index
    %355 = vector.load %arg2[%c2, %c0_92, %c0_93] : memref<3x40x128xf32, #tpu.memory_space<vmem>>, vector<1x32x128xf32>
    %356 = vector.shape_cast %355 : vector<1x32x128xf32> to vector<32x128xf32>
    %cst_94 = arith.constant dense<0.000000e+00> : vector<16x128xf32>
    %357 = tpu.matmul %354, %356, %cst_94 {dimension_numbers = #tpu.dot_dimension_numbers<[1], [0], [0], [1], [0, 0, 1, 1], [], []>} : vector<16x32xf32>, vector<32x128xf32>, vector<16x128xf32> -> vector<16x128xf32>
    %c2_95 = arith.constant 2 : index
    %c32_96 = arith.constant 32 : index
    %c0_97 = arith.constant 0 : index
    %358 = vector.load %arg2[%c2_95, %c32_96, %c0_97] : memref<3x40x128xf32, #tpu.memory_space<vmem>>, vector<1x1x128xf32>
    %359 = vector.shape_cast %358 : vector<1x1x128xf32> to vector<1x128xf32>
    %360 = vector.broadcast %359 : vector<1x128xf32> to vector<16x128xf32>
    %361 = arith.addf %357, %360 : vector<16x128xf32>
    %362 = vector.extract_strided_slice %361 {offsets = [0, 0], sizes = [16, 8], strides = [1, 1]} : vector<16x128xf32> to vector<16x8xf32>
    %363 = vector.extract_strided_slice %361 {offsets = [0, 8], sizes = [16, 8], strides = [1, 1]} : vector<16x128xf32> to vector<16x8xf32>
    %364 = vector.extract_strided_slice %361 {offsets = [0, 16], sizes = [16, 8], strides = [1, 1]} : vector<16x128xf32> to vector<16x8xf32>
    %365 = vector.extract_strided_slice %361 {offsets = [0, 24], sizes = [16, 8], strides = [1, 1]} : vector<16x128xf32> to vector<16x8xf32>
    %366 = tpu.concatenate %362, %363, %364, %365 in 0 : vector<16x8xf32>, vector<16x8xf32>, vector<16x8xf32>, vector<16x8xf32> -> vector<64x8xf32>
    %367 = vector.extract_strided_slice %361 {offsets = [0, 32], sizes = [16, 8], strides = [1, 1]} : vector<16x128xf32> to vector<16x8xf32>
    %368 = vector.extract_strided_slice %361 {offsets = [0, 40], sizes = [16, 8], strides = [1, 1]} : vector<16x128xf32> to vector<16x8xf32>
    %369 = vector.extract_strided_slice %361 {offsets = [0, 48], sizes = [16, 8], strides = [1, 1]} : vector<16x128xf32> to vector<16x8xf32>
    %370 = vector.extract_strided_slice %361 {offsets = [0, 56], sizes = [16, 8], strides = [1, 1]} : vector<16x128xf32> to vector<16x8xf32>
    %371 = tpu.concatenate %367, %368, %369, %370 in 0 : vector<16x8xf32>, vector<16x8xf32>, vector<16x8xf32>, vector<16x8xf32> -> vector<64x8xf32>
    %c2_98 = arith.constant 2 : index
    %c0_99 = arith.constant 0 : index
    %c0_100 = arith.constant 0 : index
    %372 = vector.load %arg2[%c2_98, %c0_99, %c0_100] : memref<3x40x128xf32, #tpu.memory_space<vmem>>, vector<1x32x128xf32>
    %373 = vector.shape_cast %372 : vector<1x32x128xf32> to vector<32x128xf32>
    %cst_101 = arith.constant dense<0.000000e+00> : vector<16x128xf32>
    %374 = tpu.matmul %192, %373, %cst_101 {dimension_numbers = #tpu.dot_dimension_numbers<[1], [0], [0], [1], [0, 0, 1, 1], [], []>} : vector<16x32xf32>, vector<32x128xf32>, vector<16x128xf32> -> vector<16x128xf32>
    %c2_102 = arith.constant 2 : index
    %c32_103 = arith.constant 32 : index
    %c0_104 = arith.constant 0 : index
    %375 = vector.load %arg2[%c2_102, %c32_103, %c0_104] : memref<3x40x128xf32, #tpu.memory_space<vmem>>, vector<1x1x128xf32>
    %376 = vector.shape_cast %375 : vector<1x1x128xf32> to vector<1x128xf32>
    %377 = vector.broadcast %376 : vector<1x128xf32> to vector<16x128xf32>
    %378 = arith.addf %374, %377 : vector<16x128xf32>
    %379 = vector.extract_strided_slice %378 {offsets = [0, 64], sizes = [16, 8], strides = [1, 1]} : vector<16x128xf32> to vector<16x8xf32>
    %380 = vector.extract_strided_slice %378 {offsets = [0, 72], sizes = [16, 8], strides = [1, 1]} : vector<16x128xf32> to vector<16x8xf32>
    %381 = vector.extract_strided_slice %378 {offsets = [0, 80], sizes = [16, 8], strides = [1, 1]} : vector<16x128xf32> to vector<16x8xf32>
    %382 = vector.extract_strided_slice %378 {offsets = [0, 88], sizes = [16, 8], strides = [1, 1]} : vector<16x128xf32> to vector<16x8xf32>
    %383 = tpu.concatenate %379, %380, %381, %382 in 0 : vector<16x8xf32>, vector<16x8xf32>, vector<16x8xf32>, vector<16x8xf32> -> vector<64x8xf32>
    %384 = vector.extract_strided_slice %361 {offsets = [0, 96], sizes = [16, 2], strides = [1, 1]} : vector<16x128xf32> to vector<16x2xf32>
    %cst_105 = arith.constant dense<0xFF800000> : vector<16xf32>
    %385 = vector.multi_reduction <maximumf>, %384, %cst_105 [1] : vector<16x2xf32> to vector<16xf32>
    %386 = vector.shape_cast %385 : vector<16xf32> to vector<16x1xf32>
    %387 = vector.broadcast %386 : vector<16x1xf32> to vector<16x2xf32>
    %388 = arith.subf %384, %387 : vector<16x2xf32>
    %389 = math.exp %388 : vector<16x2xf32>
    %cst_106 = arith.constant dense<0.000000e+00> : vector<16xf32>
    %390 = vector.multi_reduction <add>, %389, %cst_106 [1] : vector<16x2xf32> to vector<16xf32>
    %391 = vector.shape_cast %390 : vector<16xf32> to vector<16x1xf32>
    %392 = vector.broadcast %391 : vector<16x1xf32> to vector<16x2xf32>
    %393 = arith.divf %389, %392 : vector<16x2xf32>
    %cst_107 = arith.constant 0.000000e+00 : f32
    %394 = vector.broadcast %cst_107 : f32 to vector<16x2xf32>
    %395 = vector.extract_strided_slice %393 {offsets = [0, 0], sizes = [16, 1], strides = [1, 1]} : vector<16x2xf32> to vector<16x1xf32>
    %396 = vector.broadcast %395 : vector<16x1xf32> to vector<16x2xf32>
    %397 = arith.cmpf ogt, %396, %393 : vector<16x2xf32>
    %398 = arith.extui %397 : vector<16x2xi1> to vector<16x2xi32>
    %399 = arith.sitofp %398 : vector<16x2xi32> to vector<16x2xf32>
    %400 = arith.addf %394, %399 : vector<16x2xf32>
    %401 = vector.broadcast %395 : vector<16x1xf32> to vector<16x2xf32>
    %402 = arith.cmpf oeq, %401, %393 : vector<16x2xf32>
    %c0_i32_108 = arith.constant 0 : i32
    %403 = vector.broadcast %c0_i32_108 : i32 to vector<16x2xi32>
    %404 = arith.cmpi sgt, %29, %403 : vector<16x2xi32>
    %405 = arith.andi %402, %404 : vector<16x2xi1>
    %406 = arith.extui %405 : vector<16x2xi1> to vector<16x2xi32>
    %407 = arith.sitofp %406 : vector<16x2xi32> to vector<16x2xf32>
    %408 = arith.addf %400, %407 : vector<16x2xf32>
    %409 = vector.extract_strided_slice %393 {offsets = [0, 1], sizes = [16, 1], strides = [1, 1]} : vector<16x2xf32> to vector<16x1xf32>
    %410 = vector.broadcast %409 : vector<16x1xf32> to vector<16x2xf32>
    %411 = arith.cmpf ogt, %410, %393 : vector<16x2xf32>
    %412 = arith.extui %411 : vector<16x2xi1> to vector<16x2xi32>
    %413 = arith.sitofp %412 : vector<16x2xi32> to vector<16x2xf32>
    %414 = arith.addf %408, %413 : vector<16x2xf32>
    %415 = vector.broadcast %409 : vector<16x1xf32> to vector<16x2xf32>
    %416 = arith.cmpf oeq, %415, %393 : vector<16x2xf32>
    %c1_i32_109 = arith.constant 1 : i32
    %417 = vector.broadcast %c1_i32_109 : i32 to vector<16x2xi32>
    %418 = arith.cmpi sgt, %29, %417 : vector<16x2xi32>
    %419 = arith.andi %416, %418 : vector<16x2xi1>
    %420 = arith.extui %419 : vector<16x2xi1> to vector<16x2xi32>
    %421 = arith.sitofp %420 : vector<16x2xi32> to vector<16x2xf32>
    %422 = arith.addf %414, %421 : vector<16x2xf32>
    %cst_110 = arith.constant 1.000000e+00 : f32
    %423 = vector.broadcast %cst_110 : f32 to vector<16x2xf32>
    %424 = arith.cmpf olt, %422, %423 : vector<16x2xf32>
    %425 = arith.extui %424 : vector<16x2xi1> to vector<16x2xi32>
    %426 = arith.sitofp %425 : vector<16x2xi32> to vector<16x2xf32>
    %427 = arith.mulf %393, %426 : vector<16x2xf32>
    %cst_111 = arith.constant dense<0.000000e+00> : vector<64x64xf32>
    %428 = tpu.matmul %366, %371, %cst_111 {dimension_numbers = #tpu.dot_dimension_numbers<[1], [1], [0], [0], [0, 0, 1, 0], [], []>} : vector<64x8xf32>, vector<64x8xf32>, vector<64x64xf32> -> vector<64x64xf32>
    %cst_112 = arith.constant 0.353553385 : f32
    %429 = vector.broadcast %cst_112 : f32 to vector<64x64xf32>
    %430 = arith.mulf %428, %429 : vector<64x64xf32>
    %431 = arith.mulf %430, %24 : vector<64x64xf32>
    %432 = arith.addf %431, %28 : vector<64x64xf32>
    %cst_113 = arith.constant dense<0xFF800000> : vector<64xf32>
    %433 = vector.multi_reduction <maximumf>, %432, %cst_113 [1] : vector<64x64xf32> to vector<64xf32>
    %434 = vector.shape_cast %433 : vector<64xf32> to vector<64x1xf32>
    %435 = vector.broadcast %434 : vector<64x1xf32> to vector<64x64xf32>
    %436 = arith.subf %432, %435 : vector<64x64xf32>
    %437 = math.exp %436 : vector<64x64xf32>
    %cst_114 = arith.constant dense<0.000000e+00> : vector<64xf32>
    %438 = vector.multi_reduction <add>, %437, %cst_114 [1] : vector<64x64xf32> to vector<64xf32>
    %439 = vector.shape_cast %438 : vector<64xf32> to vector<64x1xf32>
    %440 = vector.broadcast %439 : vector<64x1xf32> to vector<64x64xf32>
    %441 = arith.divf %437, %440 : vector<64x64xf32>
    %cst_115 = arith.constant dense<0.000000e+00> : vector<64x8xf32>
    %442 = tpu.matmul %441, %383, %cst_115 {dimension_numbers = #tpu.dot_dimension_numbers<[1], [0], [0], [1], [0, 0, 1, 1], [], []>} : vector<64x64xf32>, vector<64x8xf32>, vector<64x8xf32> -> vector<64x8xf32>
    %443 = vector.extract_strided_slice %427 {offsets = [0, 0], sizes = [16, 1], strides = [1, 1]} : vector<16x2xf32> to vector<16x1xf32>
    %444 = vector.extract_strided_slice %427 {offsets = [0, 1], sizes = [16, 1], strides = [1, 1]} : vector<16x2xf32> to vector<16x1xf32>
    %445 = tpu.concatenate %30, %443, %444 in 0 : vector<32x1xf32>, vector<16x1xf32>, vector<16x1xf32> -> vector<64x1xf32>
    %446 = vector.broadcast %445 : vector<64x1xf32> to vector<64x8xf32>
    %447 = arith.mulf %442, %446 : vector<64x8xf32>
    %448 = vector.extract_strided_slice %447 {offsets = [0, 0], sizes = [16, 8], strides = [1, 1]} : vector<64x8xf32> to vector<16x8xf32>
    %449 = vector.extract_strided_slice %447 {offsets = [16, 0], sizes = [16, 8], strides = [1, 1]} : vector<64x8xf32> to vector<16x8xf32>
    %450 = vector.extract_strided_slice %447 {offsets = [32, 0], sizes = [16, 8], strides = [1, 1]} : vector<64x8xf32> to vector<16x8xf32>
    %451 = vector.extract_strided_slice %447 {offsets = [48, 0], sizes = [16, 8], strides = [1, 1]} : vector<64x8xf32> to vector<16x8xf32>
    %452 = tpu.concatenate %448, %449, %450, %451 in 1 : vector<16x8xf32>, vector<16x8xf32>, vector<16x8xf32>, vector<16x8xf32> -> vector<16x32xf32>
    %c2_116 = arith.constant 2 : index
    %c96_117 = arith.constant 96 : index
    %c0_118 = arith.constant 0 : index
    %453 = vector.load %arg3[%c2_116, %c96_117, %c0_118] : memref<3x104x32xf32, #tpu.memory_space<vmem>>, vector<1x8x32xf32>
    %454 = vector.shape_cast %453 : vector<1x8x32xf32> to vector<8x32xf32>
    %c2_119 = arith.constant 2 : index
    %c0_120 = arith.constant 0 : index
    %c0_121 = arith.constant 0 : index
    %455 = vector.load %arg3[%c2_119, %c0_120, %c0_121] : memref<3x104x32xf32, #tpu.memory_space<vmem>>, vector<1x32x32xf32>
    %456 = vector.shape_cast %455 : vector<1x32x32xf32> to vector<32x32xf32>
    %cst_122 = arith.constant dense<0.000000e+00> : vector<16x32xf32>
    %457 = tpu.matmul %452, %456, %cst_122 {dimension_numbers = #tpu.dot_dimension_numbers<[1], [0], [0], [1], [0, 0, 1, 1], [], []>} : vector<16x32xf32>, vector<32x32xf32>, vector<16x32xf32> -> vector<16x32xf32>
    %458 = vector.extract_strided_slice %454 {offsets = [0, 0], sizes = [1, 32], strides = [1, 1]} : vector<8x32xf32> to vector<1x32xf32>
    %459 = vector.broadcast %458 : vector<1x32xf32> to vector<16x32xf32>
    %460 = arith.addf %457, %459 : vector<16x32xf32>
    %461 = arith.addf %354, %460 : vector<16x32xf32>
    %cst_123 = arith.constant dense<0.000000e+00> : vector<16xf32>
    %462 = vector.multi_reduction <add>, %461, %cst_123 [1] : vector<16x32xf32> to vector<16xf32>
    %463 = vector.shape_cast %462 : vector<16xf32> to vector<16x1xf32>
    %cst_124 = arith.constant 3.200000e+01 : f32
    %464 = vector.broadcast %cst_124 : f32 to vector<16x1xf32>
    %465 = arith.divf %463, %464 : vector<16x1xf32>
    %466 = vector.broadcast %465 : vector<16x1xf32> to vector<16x32xf32>
    %467 = arith.subf %461, %466 : vector<16x32xf32>
    %468 = arith.mulf %467, %467 : vector<16x32xf32>
    %cst_125 = arith.constant dense<0.000000e+00> : vector<16xf32>
    %469 = vector.multi_reduction <add>, %468, %cst_125 [1] : vector<16x32xf32> to vector<16xf32>
    %470 = vector.shape_cast %469 : vector<16xf32> to vector<16x1xf32>
    %cst_126 = arith.constant 3.200000e+01 : f32
    %471 = vector.broadcast %cst_126 : f32 to vector<16x1xf32>
    %472 = arith.divf %470, %471 : vector<16x1xf32>
    %473 = vector.broadcast %465 : vector<16x1xf32> to vector<16x32xf32>
    %474 = arith.subf %461, %473 : vector<16x32xf32>
    %cst_127 = arith.constant 9.99999974E-6 : f32
    %475 = vector.broadcast %cst_127 : f32 to vector<16x1xf32>
    %476 = arith.addf %472, %475 : vector<16x1xf32>
    %477 = math.rsqrt %476 : vector<16x1xf32>
    %478 = vector.broadcast %477 : vector<16x1xf32> to vector<16x32xf32>
    %479 = arith.mulf %474, %478 : vector<16x32xf32>
    %480 = vector.extract_strided_slice %454 {offsets = [3, 0], sizes = [1, 32], strides = [1, 1]} : vector<8x32xf32> to vector<1x32xf32>
    %481 = vector.broadcast %480 : vector<1x32xf32> to vector<16x32xf32>
    %482 = arith.mulf %479, %481 : vector<16x32xf32>
    %483 = vector.extract_strided_slice %454 {offsets = [4, 0], sizes = [1, 32], strides = [1, 1]} : vector<8x32xf32> to vector<1x32xf32>
    %484 = vector.broadcast %483 : vector<1x32xf32> to vector<16x32xf32>
    %485 = arith.addf %482, %484 : vector<16x32xf32>
    %c2_128 = arith.constant 2 : index
    %c32_129 = arith.constant 32 : index
    %c0_130 = arith.constant 0 : index
    %486 = vector.load %arg3[%c2_128, %c32_129, %c0_130] : memref<3x104x32xf32, #tpu.memory_space<vmem>>, vector<1x32x32xf32>
    %487 = vector.shape_cast %486 : vector<1x32x32xf32> to vector<32x32xf32>
    %cst_131 = arith.constant dense<0.000000e+00> : vector<16x32xf32>
    %488 = tpu.matmul %485, %487, %cst_131 {dimension_numbers = #tpu.dot_dimension_numbers<[1], [0], [0], [1], [0, 0, 1, 1], [], []>} : vector<16x32xf32>, vector<32x32xf32>, vector<16x32xf32> -> vector<16x32xf32>
    %489 = vector.extract_strided_slice %454 {offsets = [1, 0], sizes = [1, 32], strides = [1, 1]} : vector<8x32xf32> to vector<1x32xf32>
    %490 = vector.broadcast %489 : vector<1x32xf32> to vector<16x32xf32>
    %491 = arith.addf %488, %490 : vector<16x32xf32>
    %cst_132 = arith.constant 0.000000e+00 : f32
    %492 = vector.broadcast %cst_132 : f32 to vector<16x32xf32>
    %493 = arith.maximumf %491, %492 : vector<16x32xf32>
    %c2_133 = arith.constant 2 : index
    %c64_134 = arith.constant 64 : index
    %c0_135 = arith.constant 0 : index
    %494 = vector.load %arg3[%c2_133, %c64_134, %c0_135] : memref<3x104x32xf32, #tpu.memory_space<vmem>>, vector<1x32x32xf32>
    %495 = vector.shape_cast %494 : vector<1x32x32xf32> to vector<32x32xf32>
    %cst_136 = arith.constant dense<0.000000e+00> : vector<16x32xf32>
    %496 = tpu.matmul %493, %495, %cst_136 {dimension_numbers = #tpu.dot_dimension_numbers<[1], [0], [0], [1], [0, 0, 1, 1], [], []>} : vector<16x32xf32>, vector<32x32xf32>, vector<16x32xf32> -> vector<16x32xf32>
    %497 = vector.extract_strided_slice %454 {offsets = [2, 0], sizes = [1, 32], strides = [1, 1]} : vector<8x32xf32> to vector<1x32xf32>
    %498 = vector.broadcast %497 : vector<1x32xf32> to vector<16x32xf32>
    %499 = arith.addf %496, %498 : vector<16x32xf32>
    %500 = arith.addf %485, %499 : vector<16x32xf32>
    %cst_137 = arith.constant dense<0.000000e+00> : vector<16xf32>
    %501 = vector.multi_reduction <add>, %500, %cst_137 [1] : vector<16x32xf32> to vector<16xf32>
    %502 = vector.shape_cast %501 : vector<16xf32> to vector<16x1xf32>
    %cst_138 = arith.constant 3.200000e+01 : f32
    %503 = vector.broadcast %cst_138 : f32 to vector<16x1xf32>
    %504 = arith.divf %502, %503 : vector<16x1xf32>
    %505 = vector.broadcast %504 : vector<16x1xf32> to vector<16x32xf32>
    %506 = arith.subf %500, %505 : vector<16x32xf32>
    %507 = arith.mulf %506, %506 : vector<16x32xf32>
    %cst_139 = arith.constant dense<0.000000e+00> : vector<16xf32>
    %508 = vector.multi_reduction <add>, %507, %cst_139 [1] : vector<16x32xf32> to vector<16xf32>
    %509 = vector.shape_cast %508 : vector<16xf32> to vector<16x1xf32>
    %cst_140 = arith.constant 3.200000e+01 : f32
    %510 = vector.broadcast %cst_140 : f32 to vector<16x1xf32>
    %511 = arith.divf %509, %510 : vector<16x1xf32>
    %512 = vector.broadcast %504 : vector<16x1xf32> to vector<16x32xf32>
    %513 = arith.subf %500, %512 : vector<16x32xf32>
    %cst_141 = arith.constant 9.99999974E-6 : f32
    %514 = vector.broadcast %cst_141 : f32 to vector<16x1xf32>
    %515 = arith.addf %511, %514 : vector<16x1xf32>
    %516 = math.rsqrt %515 : vector<16x1xf32>
    %517 = vector.broadcast %516 : vector<16x1xf32> to vector<16x32xf32>
    %518 = arith.mulf %513, %517 : vector<16x32xf32>
    %519 = vector.extract_strided_slice %454 {offsets = [5, 0], sizes = [1, 32], strides = [1, 1]} : vector<8x32xf32> to vector<1x32xf32>
    %520 = vector.broadcast %519 : vector<1x32xf32> to vector<16x32xf32>
    %521 = arith.mulf %518, %520 : vector<16x32xf32>
    %522 = vector.extract_strided_slice %454 {offsets = [6, 0], sizes = [1, 32], strides = [1, 1]} : vector<8x32xf32> to vector<1x32xf32>
    %523 = vector.broadcast %522 : vector<1x32xf32> to vector<16x32xf32>
    %524 = arith.addf %521, %523 : vector<16x32xf32>
    %cst_142 = arith.constant dense<0.000000e+00> : vector<2xf32>
    %525 = vector.multi_reduction <add>, %393, %cst_142 [0] : vector<16x2xf32> to vector<2xf32>
    %526 = vector.shape_cast %525 : vector<2xf32> to vector<1x2xf32>
    %cst_143 = arith.constant 1.600000e+01 : f32
    %527 = vector.broadcast %cst_143 : f32 to vector<1x2xf32>
    %528 = arith.divf %526, %527 : vector<1x2xf32>
    %cst_144 = arith.constant dense<0.000000e+00> : vector<2xf32>
    %529 = vector.multi_reduction <add>, %426, %cst_144 [0] : vector<16x2xf32> to vector<2xf32>
    %530 = vector.shape_cast %529 : vector<2xf32> to vector<1x2xf32>
    %cst_145 = arith.constant dense<0.000000e+00> : vector<1xf32>
    %531 = vector.multi_reduction <add>, %530, %cst_145 [1] : vector<1x2xf32> to vector<1xf32>
    %532 = vector.shape_cast %531 : vector<1xf32> to vector<1x1xf32>
    %cst_146 = arith.constant 9.99999974E-6 : f32
    %533 = vector.broadcast %cst_146 : f32 to vector<1x1xf32>
    %534 = arith.addf %532, %533 : vector<1x1xf32>
    %535 = vector.broadcast %534 : vector<1x1xf32> to vector<1x2xf32>
    %536 = arith.divf %530, %535 : vector<1x2xf32>
    %cst_147 = arith.constant dense<0.000000e+00> : vector<1xf32>
    %537 = vector.multi_reduction <add>, %528, %cst_147 [1] : vector<1x2xf32> to vector<1xf32>
    %538 = vector.shape_cast %537 : vector<1xf32> to vector<1x1xf32>
    %cst_148 = arith.constant 9.99999974E-6 : f32
    %539 = vector.broadcast %cst_148 : f32 to vector<1x1xf32>
    %540 = arith.addf %538, %539 : vector<1x1xf32>
    %541 = vector.broadcast %540 : vector<1x1xf32> to vector<1x2xf32>
    %542 = arith.divf %528, %541 : vector<1x2xf32>
    %543 = arith.mulf %536, %542 : vector<1x2xf32>
    %cst_149 = arith.constant dense<0.000000e+00> : vector<1xf32>
    %544 = vector.multi_reduction <add>, %543, %cst_149 [1] : vector<1x2xf32> to vector<1xf32>
    %545 = vector.shape_cast %544 : vector<1xf32> to vector<1x1xf32>
    %c0_150 = arith.constant 0 : index
    %c0_151 = arith.constant 0 : index
    %546 = vector.load %arg4[%c0_150, %c0_151] : memref<24x32xf32, #tpu.memory_space<vmem>>, vector<16x32xf32>
    tpu.vector_store %arg4[%c0_150, %c0_151], %524 {strides = array<i32>} : memref<24x32xf32, #tpu.memory_space<vmem>>, vector<16x32xf32>,
    %547 = vector.shape_cast %545 : vector<1x1xf32> to vector<1x1xf32>
    %548 = vector.broadcast %547 : vector<1x1xf32> to vector<8x32xf32>
    %c16 = arith.constant 16 : index
    %c0_152 = arith.constant 0 : index
    %549 = vector.load %arg4[%c16, %c0_152] : memref<24x32xf32, #tpu.memory_space<vmem>>, vector<8x32xf32>
    tpu.vector_store %arg4[%c16, %c0_152], %548 {strides = array<i32>} : memref<24x32xf32, #tpu.memory_space<vmem>>, vector<8x32xf32>,
    return
  }
}

</mosaic_0001>

<bundles_post_ra>
// kernel: routerkt_forward.1
= control target key start
LH: loop header
LB: loop body
LE: loop exit
PB: predicated region body
PF: predicated region fallthrough
CT: control target
= control target key end

     0   :  { %vm5746_vm0 = vcmask 261120   ;;  %vm5748_vm1 = vcmask 64512   ;;  %s4231_s29 = smov 112   ;;  %s4233_s30 = smov 120   ;;  %vm5745_vm2 = vcmask 802560   ;;  %vm5747_vm3 = vcmask 15360   ;;  %s5740_s2 = inlined_call_operand.vmem [shape: f32[3,40,128], index: 2, kind: input, shape index: {}]   ;;  %s5741_s1 = inlined_call_operand.vmem [shape: f32[16,32], index: 1, kind: input, shape index: {}]   ;;  %s5742_s3 = inlined_call_operand.vmem [shape: f32[3,104,32], index: 3, kind: input, shape index: {}]   ;;  %s5743_s0 = inlined_call_operand.vmem [shape: f32[16,32], index: 0, kind: input, shape index: {}]   ;;  %s5744_s4 = inlined_call_operand.vmem [shape: f32[24,32], index: 4, kind: output, shape index: {}]  }
   0x1   :  { %v149_v0 = vld [vmem:[%s5740_s2 + $0x18] sm:$0xff]  ;;  %v148_v1 = vld [vmem:[%s5740_s2 + $0x10] sm:$0xff]  ;;  %v4280_v2 = vld [vmem:[%s5741_s1] sm:$0xff]  ;;  %s4234_s5 = smov 96   ;;  %s4235_s6 = smov 32   ;;  %v21_v37 = vlaneseq  ;;  %vm5765_vm14 = vcmask 523264  }
   0x2   :  { %3740 = vmatprep.subr.mxu0 %v149_v0  ;;  %v147_v3 = vld [vmem:[%s5740_s2 + $0x8] sm:$0xff]  ;;  %3748 = vmatprep.mubr.msk.f32.mxu0 %vm5746_vm0, %v4280_v2  ;;  %v146_v4 = vld [vmem:[%s5740_s2] sm:$0xff]  ;;  %v5757_v57 = vmov -1e+09   ;;  %s4237_s7 = smov 64   ;;  %s4242_s8 = smov 31  }
   0x3   :  { %3741 = vmatpush3.msra.mxu0 %v149_v0  ;;  %v4293_v5 = vld [vmem:[%s5741_s1 + $0x8] sm:$0xff]  ;;  %v3399_v6 = vld [vmem:[%s5740_s2 + $0x20] ss:$0 sm:$0xff]  ;;  %s4232_s1 = smov 104   ;;  %v4391_v38 = vshrl.u32 %v21_v37, 7  ;;  %v4394_v40 = vand.u32 127, %v21_v37 }
   0x4   :  { %3742 = vmatprep.subr.mxu0 %v148_v1  ;;  %s4243_s15 = smov 8   ;;  %s4244_s18 = smov 16  }
   0x5   :  { %3743 = vmatpush3.msra.mxu0 %v148_v1  ;;  %v23_v39 = vadd.s32 8, %v4391_v38  ;;  %v4399_v43 = vshra.s32 %v4394_v40, 3  ;;  %v4402_v44 = vand.u32 7, %v4394_v40  ;;  %v25_v45 = vadd.s32 24, %v4391_v38  ;;  %s4245_s19 = smov 24  }
   0x6   :  { %3744 = vmatprep.subr.mxu0 %v147_v3  ;;  %v24_v46 = vadd.s32 16, %v4391_v38  ;;  %v32_v48 = vshra.s32 %v4391_v38, 3  ;;  %v4415_v49 = vand.u32 7, %v4391_v38  ;;  %v27_v53 = vadd.s32 40, %v4391_v38 }
   0x7   :  { %3745 = vmatpush3.msra.mxu0 %v147_v3  ;;  %v33_v41 = vshra.s32 %v23_v39, 3  ;;  %v4396_v42 = vand.u32 7, %v23_v39  ;;  %v35_v50 = vshra.s32 %v25_v45, 3  ;;  %v4419_v52 = vand.u32 7, %v25_v45 }
   0x8   :  { %3746 = vmatprep.subr.mxu0 %v146_v4  ;;  %v34_v51 = vshra.s32 %v24_v46, 3  ;;  %vm4423_vm7 = vcmp.eq.s32.totalorder %v32_v48, %v4399_v43  ;;  %vm58_vm8 = vcmp.le.s32.totalorder %v4402_v44, %v4415_v49  ;;  %v4429_v55 = vand.u32 7, %v24_v46 }
   0x9   :  { %3747 = vmatpush3.msra.mxu0 %v146_v4  ;;  %vm4407_vm4 = vcmp.eq.s32.totalorder %v33_v41, %v4399_v43  ;;  %vm59_vm5 = vcmp.le.s32.totalorder %v4402_v44, %v4396_v42  ;;  %v26_v56 = vadd.s32 32, %v4391_v38  ;;  %vm4436_vm9 = vcmp.eq.s32.totalorder %v35_v50, %v4399_v43  ;;  %vm66_vm10 = vmand %vm4423_vm7, %vm58_vm8 }
   0xa   :  { %3749 = vmatmul.mubr.msk.f32.vlgmr.msra.gmra.mxu0 %vm5746_vm0, %v4293_v5  ;;  %vm67_vm6 = vmand %vm4407_vm4, %vm59_vm5  ;;  %vm4443_vm11 = vcmp.eq.s32.totalorder %v34_v51, %v4399_v43  ;;  %vm61_vm12 = vcmp.le.s32.totalorder %v4402_v44, %v4419_v52  ;;  %v37_v61 = vshra.s32 %v27_v53, 3  ;;  %v4449_v62 = vand.u32 7, %v27_v53 }
   0xb   :  { %v4433_v58 = vsel %vm67_vm6, 0.0, %v5757_v57  ;;  %vm60_vm13 = vcmp.le.s32.totalorder %v4402_v44, %v4429_v55  ;;  %v36_v0 = vshra.s32 %v26_v56, 3  ;;  %v4453_v1 = vand.u32 7, %v26_v56  ;;  %vm4461_vm15 = vmand %vm4436_vm9, %vm61_vm12 }
   0xc   :  { %v29_v3 = vadd.s32 56, %v4391_v38  ;;  %vm68_vm5 = vmand %vm4443_vm11, %vm60_vm13  ;;  %vm4471_vm6 = vcmp.eq.s32.totalorder %v37_v61, %v4399_v43  ;;  %vm63_vm8 = vcmp.le.s32.totalorder %v4402_v44, %v4449_v62 }
   0xd   :  { %vm62_vm12 = vcmp.le.s32.totalorder %v4402_v44, %v4453_v1  ;;  %vm71_vm13 = vmand %vm4471_vm6, %vm63_vm8 }
   0xe   :  { %v4520_v46 = vsel %vm71_vm13, 0.0, %v5757_v57  ;;  %vm303_vm13 = vcmp.gt.s32.totalorder %v4394_v40, 0 }
  0xca   :  { %v3750_v7 = vpop.f32.mrf.mxu0 }
  0xcb   :  { %v4300_v8 = vadd.f32 %v3750_v7, %v3399_v6  ;;  %v4457_v7 = vsel %vm66_vm10, 0.0, %v5757_v57  ;;  %vm4478_vm10 = vcmp.eq.s32.totalorder %v36_v0, %v4399_v43 }
  0xcc   :  { %v228_v9 = vpop.f32.mrf.mxu0 }
  0xcd   :  { %v4302_v10 = vadd.f32 %v3399_v6, %v228_v9  ;;  %245 = vrot.lane.b32.xlu1 %v4300_v8, %s4231_s29  ;;  %249 = vrot.lane.b32.xlu0 %v4300_v8, %s4232_s1  ;;  %v255_v18 = vsel %vm5745_vm2, %v4300_v8, -inf }
  0xcf   :  { %3767 = vmatprep.mubr.msk.f32.mxu1 %vm5748_vm1, %v4302_v10  ;;  %v252_v17 = vsel %vm5745_vm2, %v4302_v10, -inf  ;;  %vm70_vm2 = vmand %vm4478_vm10, %vm62_vm12 }
  0xd0   :  { %v4517_v45 = vsel %vm70_vm2, 0.0, %v5757_v57 }
  0xd1   :  { %243 = vrot.lane.b32.xlu1 %v4302_v10, %s4231_s29  ;;  %247 = vrot.lane.b32.xlu0 %v4302_v10, %s4232_s1 }
  0xd5   :  { %239 = vrot.lane.b32.xlu1 %v4302_v10, %s4233_s30  ;;  %241 = vrot.lane.b32.xlu0 %v4300_v8, %s4233_s30 }
 0x13f   :  { %v4318_v11 = vpop.permute.xlu1 %245  ;;  %v4320_v12 = vpop.permute.xlu0 %249 }
 0x140   :  { %369 = vrot.lane.b32.xlu0 %v4320_v12, %s4234_s5 }
 0x143   :  { %v4324_v13 = vpop.permute.xlu0 %247  ;;  %v4330_v14 = vpop.permute.xlu1 %243 }
 0x144   :  { %365 = vrot.lane.b32.xlu0 %v4318_v11, %s4234_s5  ;;  %367 = vrot.lane.b32.xlu1 %v4324_v13, %s4234_s5 }
 0x147   :  { %v4332_v15 = vpop.permute.xlu0 %241  ;;  %v4338_v16 = vpop.permute.xlu1 %239 }
 0x148   :  { %363 = vrot.lane.b32.xlu1 %v4330_v14, %s4234_s5  ;;  %361 = vrot.lane.b32.xlu0 %v4332_v15, %s4234_s5 }
 0x14c   :  { %359 = vrot.lane.b32.xlu1 %v4338_v16, %s4234_s5  ;;  %357 = vrot.lane.b32.xlu0 %v4300_v8, %s4234_s5 }
 0x150   :  { %355 = vrot.lane.b32.xlu1 %v4302_v10, %s4234_s5 }
 0x16b   :  { %253 = vmax.xlane.f32.xlu0 %v252_v17 }
 0x174   :  { %256 = vmax.xlane.f32.xlu1 %v255_v18 }
 0x1b2   :  { %v370_v19 = vpop.permute.xlu0 %369 }
 0x1b3   :  { %3751 = vmatprep.subr.msk.mxu1 %vm5748_vm1, %v370_v19 }
 0x1b4   :  { %3752 = vmatpush3.xpose.msk.msra.mxu1 %vm5748_vm1, %v370_v19 }
 0x1b6   :  { %v368_v20 = vpop.permute.xlu1 %367  ;;  %v366_v21 = vpop.permute.xlu0 %365 }
 0x1b7   :  { %3753 = vmatprep.subr.msk.mxu1 %vm5748_vm1, %v368_v20 }
 0x1b8   :  { %3754 = vmatpush3.xpose.msk.msra.mxu1 %vm5748_vm1, %v368_v20 }
 0x1b9   :  { %3755 = vmatprep.subr.msk.mxu1 %vm5748_vm1, %v366_v21 }
 0x1ba   :  { %v364_v22 = vpop.permute.xlu1 %363  ;;  %v362_v23 = vpop.permute.xlu0 %361 }
 0x1bc   :  { %3756 = vmatpush3.xpose.msk.msra.mxu1 %vm5748_vm1, %v366_v21 }
 0x1bd   :  { %3757 = vmatprep.subr.msk.mxu1 %vm5748_vm1, %v364_v22 }
 0x1be   :  { %v360_v24 = vpop.permute.xlu1 %359  ;;  %v358_v25 = vpop.permute.xlu0 %357 }
 0x1c0   :  { %3758 = vmatpush3.xpose.msk.msra.mxu1 %vm5748_vm1, %v364_v22  ;;  %v39_v22 = vshra.s32 %v29_v3, 3 }
 0x1c1   :  { %3759 = vmatprep.subr.msk.mxu1 %vm5748_vm1, %v362_v23 }
 0x1c2   :  { %v356_v26 = vpop.permute.xlu1 %355  ;;  %vm4504_vm0 = vcmp.eq.s32.totalorder %v39_v22, %v4399_v43  ;;  %v28_v22 = vadd.s32 48, %v4391_v38 }
 0x1c4   :  { %3760 = vmatpush3.xpose.msk.msra.mxu1 %vm5748_vm1, %v362_v23  ;;  %v4484_v23 = vand.u32 7, %v29_v3 }
 0x1c5   :  { %3761 = vmatprep.subr.msk.mxu1 %vm5748_vm1, %v360_v24 }
 0x1c8   :  { %3762 = vmatpush3.xpose.msk.msra.mxu1 %vm5748_vm1, %v360_v24 }
 0x1c9   :  { %3763 = vmatprep.subr.msk.mxu1 %vm5748_vm1, %v358_v25 }
 0x1cc   :  { %3764 = vmatpush3.xpose.msk.msra.mxu1 %vm5748_vm1, %v358_v25 }
 0x1cd   :  { %3765 = vmatprep.subr.msk.mxu1 %vm5748_vm1, %v356_v26 }
 0x1d0   :  { %3766 = vmatpush3.xpose.msk.msra.mxu1 %vm5748_vm1, %v356_v26 }
 0x1d3   :  { %3768 = vmatmul.mubr.msk.f32.vlgmr.msra.gmra.mxu1 %vm5748_vm1, %v4300_v8 }
 0x1d4   :  { %3770 = vmatprep.mubr.msk.f32.mxu1 %vm5748_vm1, %v4338_v16 }
 0x1d7   :  { %3771 = vmatmul.mubr.msk.f32.gmra.mxu1 %vm5748_vm1, %v4332_v15 }
 0x1d8   :  { %3773 = vmatprep.mubr.msk.f32.mxu1 %vm5748_vm1, %v4330_v14 }
 0x1db   :  { %3774 = vmatmul.mubr.msk.f32.gmra.mxu1 %vm5748_vm1, %v4318_v11 }
 0x1dc   :  { %3776 = vmatprep.mubr.msk.f32.mxu1 %vm5748_vm1, %v4324_v13 }
 0x1df   :  { %3777 = vmatmul.mubr.msk.f32.gmra.mxu1 %vm5748_vm1, %v4320_v12 }
 0x1f4   :  { %v254_v27 = vpop.xlane.xlu0 %253 }
 0x1f5   :  { %v258_v28 = vsub.f32 %v4302_v10, %v254_v27 }
 0x1f7   :  { %v260_v29 = vmul.f32 1.442695, %v258_v28  ;;  %v4492_v28 = vsel %vm68_vm5, 0.0, %v5757_v57  ;;  %vm65_vm5 = vcmp.le.s32.totalorder %v4402_v44, %v4484_v23 }
 0x1f9   :  { %4082 = vpow2.f32 %v260_v29  ;;  %v4497_v29 = vsel %vm4461_vm15, 0.0, %v5757_v57  ;;  %vm73_vm15 = vmand %vm4504_vm0, %vm65_vm5  ;;  %vm334_vm5 = vcmp.gt.s32.totalorder %v4394_v40, 1 }
 0x1fa   :  { %v4530_v0 = vsel %vm73_vm15, 0.0, %v5757_v57 }
 0x1fd   :  { %v257_v30 = vpop.xlane.xlu1 %256 }
 0x1fe   :  { %v259_v31 = vsub.f32 %v4300_v8, %v257_v30 }
 0x200   :  { %v262_v32 = vmul.f32 1.442695, %v259_v31 }
 0x202   :  { %4084 = vpow2.f32 %v262_v32  ;;  %v5781_v32 = vmov 0 }
 0x203   :  { %v5782_v32 = vsel %vm4504_vm0, 4294967295, %v5781_v32 }
 0x206   :  { %v4382_v33 = vpop.eup %4082 }
 0x207   :  { %266 = vrot.lane.b32.xlu1 %v4382_v33, %s4235_s6 }
 0x20f   :  { %v4386_v34 = vpop.eup %4084 }
 0x210   :  { %268 = vrot.lane.b32.xlu0 %v4386_v34, %s4235_s6 }
 0x279   :  { %v267_v35 = vpop.permute.xlu1 %266 }
 0x27a   :  { %v273_v36 = vsel %vm5747_vm3, %v267_v35, 0.0 }
 0x27b   :  { %274 = vadd.xlane.f32.xlu1 %v273_v36 }
 0x293   :  { %v3769_v63 = vpop.f32.mrf.mxu1 }
 0x294   :  { %v510_v4 = vmul.f32 0.35355338, %v3769_v63 }
 0x295   :  { %v470_v6 = vpop.f32.mrf.mxu1 }
 0x296   :  { %v509_v17 = vmul.f32 0.35355338, %v470_v6  ;;  %v4466_v18 = vadd.f32 %v510_v4, %v4433_v58 }
 0x297   :  { %v3772_v20 = vpop.f32.mrf.mxu1 }
 0x298   :  { %v512_v24 = vmul.f32 0.35355338, %v3772_v20  ;;  %v529_v25 = vsel %vm5765_vm14, %v4466_v18, -inf  ;;  %v4489_v26 = vadd.f32 %v509_v17, %v4457_v7  ;;  %v269_v17 = vpop.permute.xlu0 %268 }
 0x299   :  { %v480_v27 = vpop.f32.mrf.mxu1  ;;  %530 = vmax.xlane.f32.xlu0 %v529_v25  ;;  %v276_v20 = vsel %vm5747_vm3, %v269_v17, 0.0  ;;  %v4546_v25 = vand.u32 7, %v28_v22 }
 0x29a   :  { %v511_v30 = vmul.f32 0.35355338, %v480_v27  ;;  %v526_v36 = vsel %vm5765_vm14, %v4489_v26, -inf  ;;  %v4514_v39 = vadd.f32 %v512_v24, %v4497_v29  ;;  %v38_v24 = vshra.s32 %v28_v22, 3 }
 0x29b   :  { %v3775_v31 = vpop.f32.mrf.mxu1  ;;  %v5783_v27 = vmov 0  ;;  %vm64_vm8 = vcmp.le.s32.totalorder %v4402_v44, %v4546_v25 }
 0x29c   :  { %v514_v35 = vmul.f32 0.35355338, %v3775_v31  ;;  %v519_v37 = vadd.f32 %v511_v30, %v4492_v28  ;;  %v535_v56 = vsel %vm5765_vm14, %v4514_v39, -inf  ;;  %vm4549_vm2 = vcmp.eq.s32.totalorder %v38_v24, %v4399_v43 }
 0x29d   :  { %v490_v41 = vpop.f32.mrf.mxu1  ;;  %527 = vmax.xlane.f32.xlu0 %v526_v36  ;;  %v5784_v27 = vsel %vm4549_vm2, 4294967295, %v5783_v27  ;;  %vm72_vm12 = vmand %vm4549_vm2, %vm64_vm8  ;;  %v5759_v30 = vmov 96  }
 0x29e   :  { %v513_v48 = vmul.f32 0.35355338, %v490_v41  ;;  %v532_v50 = vsel %vm5765_vm14, %v519_v37, -inf  ;;  %v522_v63 = vadd.f32 %v514_v35, %v4520_v46  ;;  %4066 = vset.pattern.permute.xlu0 %v5759_v30  ;;  %4067 = vset.pattern.permute.xlu1 %v5759_v30 }
 0x29f   :  { %v3778_v51 = vpop.f32.mrf.mxu1  ;;  %533 = vmax.xlane.f32.xlu1 %v532_v50 }
 0x2a0   :  { %v516_v53 = vmul.f32 0.35355338, %v3778_v51  ;;  %v521_v61 = vadd.f32 %v513_v48, %v4517_v45  ;;  %v541_v4 = vsel %vm5765_vm14, %v522_v63, -inf }
 0x2a1   :  { %536 = vmax.xlane.f32.xlu0 %v535_v56 }
 0x2a2   :  { %v538_v3 = vsel %vm5765_vm14, %v521_v61, -inf  ;;  %v524_v6 = vadd.f32 %v516_v53, %v4530_v0 }
 0x2a3   :  { %539 = vmax.xlane.f32.xlu1 %v538_v3 }
 0x2a4   :  { %v547_v9 = vsel %vm5765_vm14, %v524_v6, -inf }
 0x2a5   :  { %542 = vmax.xlane.f32.xlu0 %v541_v4 }
 0x2a9   :  { %548 = vmax.xlane.f32.xlu0 %v547_v9 }
 0x2ad   :  { %277 = vadd.xlane.f32.xlu0 %v276_v20 }
 0x2b4   :  { %628 = vrot.lane.b32.xlu1 %v4320_v12, %s4237_s7 }
 0x2b8   :  { %624 = vrot.lane.b32.xlu1 %v4318_v11, %s4237_s7  ;;  %v500_v11 = vpop.f32.mrf.mxu1 }
 0x2b9   :  { %v515_v12 = vmul.f32 0.35355338, %v500_v11 }
 0x2c3   :  { %626 = vrot.lane.b32.xlu0 %v4324_v13, %s4237_s7  ;;  %v4558_v13 = vsel %vm72_vm12, 0.0, %v5757_v57 }
 0x2c7   :  { %620 = vrot.lane.b32.xlu0 %v4332_v15, %s4237_s7  ;;  %v4561_v15 = vadd.f32 %v515_v12, %v4558_v13 }
 0x2c9   :  { %v544_v43 = vsel %vm5765_vm14, %v4561_v15, -inf }
 0x2dc   :  { %545 = vmax.xlane.f32.xlu1 %v544_v43 }
 0x2ed   :  { %622 = vrot.lane.b32.xlu1 %v4330_v14, %s4237_s7 }
 0x2f1   :  { %618 = vrot.lane.b32.xlu1 %v4338_v16, %s4237_s7 }
 0x304   :  { %v275_v36 = vpop.xlane.xlu1 %274 }
 0x322   :  { %v531_v31 = vpop.xlane.xlu0 %530 }
 0x323   :  { %v551_v35 = vsub.f32 %v4466_v18, %v531_v31 }
 0x325   :  { %v560_v41 = vmul.f32 1.442695, %v551_v35 }
 0x326   :  { %v528_v48 = vpop.xlane.xlu0 %527 }
 0x327   :  { %4086 = vpow2.f32 %v560_v41  ;;  %v550_v50 = vsub.f32 %v4489_v26, %v528_v48 }
 0x328   :  { %v534_v51 = vpop.xlane.xlu1 %533 }
 0x329   :  { %v558_v53 = vmul.f32 1.442695, %v550_v50  ;;  %v552_v56 = vsub.f32 %v519_v37, %v534_v51 }
 0x32a   :  { %v537_v3 = vpop.xlane.xlu0 %536 }
 0x32b   :  { %4088 = vpow2.f32 %v558_v53  ;;  %v562_v4 = vmul.f32 1.442695, %v552_v56  ;;  %v553_v14 = vsub.f32 %v4514_v39, %v537_v3 }
 0x32c   :  { %v540_v9 = vpop.xlane.xlu1 %539 }
 0x32d   :  { %4090 = vpow2.f32 %v562_v4  ;;  %v564_v16 = vmul.f32 1.442695, %v553_v14  ;;  %v554_v17 = vsub.f32 %v521_v61, %v540_v9 }
 0x32e   :  { %v543_v20 = vpop.xlane.xlu0 %542 }
 0x32f   :  { %4092 = vpow2.f32 %v564_v16  ;;  %v566_v18 = vmul.f32 1.442695, %v554_v17  ;;  %v555_v22 = vsub.f32 %v522_v63, %v543_v20 }
 0x330   :  { %v629_v24 = vpop.permute.xlu1 %628 }
 0x331   :  { %4094 = vpow2.f32 %v566_v18  ;;  %v568_v11 = vmul.f32 1.442695, %v555_v22  ;;  %3779 = vmatprep.subr.mxu0 %v629_v24  ;;  %v4239_v22 = vmov 97  }
 0x332   :  { %3780 = vmatpush3.msra.mxu0 %v629_v24  ;;  %v549_v26 = vpop.xlane.xlu0 %548 }
 0x333   :  { %4096 = vpow2.f32 %v568_v11  ;;  %v557_v37 = vsub.f32 %v524_v6, %v549_v26 }
 0x334   :  { %v4574_v12 = vpop.eup %4086  ;;  %v625_v48 = vpop.permute.xlu1 %624 }
 0x335   :  { %v572_v43 = vmul.f32 1.442695, %v557_v37  ;;  %v577_v39 = vsel %vm5765_vm14, %v4574_v12, 0.0 }
 0x336   :  { %578 = vadd.xlane.f32.xlu0 %v577_v39  ;;  %v278_v61 = vpop.xlane.xlu0 %277 }
 0x337   :  { %4098 = vpow2.f32 %v572_v43 }
 0x338   :  { %v4578_v31 = vpop.eup %4088  ;;  %4100 = vrcp.f32 %v275_v36 }
 0x339   :  { %v574_v63 = vsel %vm5765_vm14, %v4578_v31, 0.0  ;;  %4102 = vrcp.f32 %v278_v61 }
 0x33a   :  { %v4582_v35 = vpop.eup %4090  ;;  %575 = vadd.xlane.f32.xlu1 %v574_v63  ;;  %v627_v41 = vpop.permute.xlu0 %626 }
 0x33b   :  { %3781 = vmatprep.subr.mxu0 %v627_v41  ;;  %v580_v50 = vsel %vm5765_vm14, %v4582_v35, 0.0 }
 0x33c   :  { %v4584_v6 = vpop.eup %4092  ;;  %3782 = vmatpush3.msra.mxu0 %v627_v41 }
 0x33d   :  { %3783 = vmatprep.subr.mxu0 %v625_v48  ;;  %v583_v51 = vsel %vm5765_vm14, %v4584_v6, 0.0 }
 0x33e   :  { %v4590_v53 = vpop.eup %4094  ;;  %581 = vadd.xlane.f32.xlu1 %v580_v50  ;;  %584 = vadd.xlane.f32.xlu0 %v583_v51 }
 0x33f   :  { %3784 = vmatpush3.msra.mxu0 %v625_v48  ;;  %v586_v3 = vsel %vm5765_vm14, %v4590_v53, 0.0 }
 0x340   :  { %v4592_v56 = vpop.eup %4096 }
 0x341   :  { %v589_v4 = vsel %vm5765_vm14, %v4592_v56, 0.0 }
 0x342   :  { %587 = vadd.xlane.f32.xlu1 %v586_v3  ;;  %590 = vadd.xlane.f32.xlu0 %v589_v4 }
 0x344   :  { %v4598_v14 = vpop.eup %4098 }
 0x345   :  { %v595_v9 = vsel %vm5765_vm14, %v4598_v14, 0.0  ;;  %v4101_v16 = vpop.eup %4100 }
 0x346   :  { %596 = vadd.xlane.f32.xlu0 %v595_v9  ;;  %v4605_v17 = vmul.f32 %v4101_v16, %v4382_v33  ;;  %v4103_v20 = vpop.eup %4102  ;;  %v621_v33 = vpop.permute.xlu0 %620 }
 0x347   :  { %v4609_v18 = vmul.f32 %v4103_v20, %v4386_v34 }
 0x35c   :  { %616 = vrot.lane.b32.xlu0 %v4300_v8, %s4237_s7  ;;  %v5763_v8 = vmov 0  }
 0x35d   :  { %v335_v39 = vsel %vm334_vm5, 1, %v5763_v8 }
 0x360   :  { %285 = vperm.xlu0 %4066, %v4605_v17  }
 0x364   :  { %4069 = vset.pattern.permute.xlu0 %v4239_v22 }
 0x365   :  { %v546_v24 = vpop.xlane.xlu1 %545  ;;  %321 = vperm.xlu0 %4069, %v4609_v18  }
 0x366   :  { %v556_v36 = vsub.f32 %v4561_v15, %v546_v24  ;;  %v304_v15 = vsel %vm303_vm13, 1, %v5763_v8 }
 0x368   :  { %v570_v11 = vmul.f32 1.442695, %v556_v36 }
 0x369   :  { %v623_v26 = vpop.permute.xlu1 %622  ;;  %4071 = vset.pattern.permute.xlu0 %v5763_v8 }
 0x36a   :  { %4104 = vpow2.f32 %v570_v11  ;;  %3785 = vmatprep.subr.mxu0 %v623_v26 }
 0x36b   :  { %3786 = vmatpush3.msra.mxu0 %v623_v26 }
 0x36c   :  { %3787 = vmatprep.subr.mxu0 %v621_v33 }
 0x36d   :  { %v619_v34 = vpop.permute.xlu1 %618  ;;  %3788 = vmatpush3.msra.mxu0 %v621_v33 }
 0x36e   :  { %3789 = vmatprep.subr.mxu0 %v619_v34 }
 0x36f   :  { %3790 = vmatpush3.msra.mxu0 %v619_v34 }
 0x377   :  { %v4105_v37 = vpop.eup %4104 }
 0x378   :  { %v592_v43 = vsel %vm5765_vm14, %v4105_v37, 0.0 }
 0x379   :  { %593 = vadd.xlane.f32.xlu1 %v592_v43 }
 0x38a   :  { %614 = vrot.lane.b32.xlu1 %v4302_v10, %s4237_s7 }
 0x38e   :  { %290 = vperm.xlu1 %4067, %v4609_v18  }
 0x392   :  { %4068 = vset.pattern.permute.xlu1 %v4239_v22 }
 0x393   :  { %317 = vperm.xlu1 %4068, %v4605_v17  }
 0x397   :  { %305 = vrot.lane.b32.xlu1 %v304_v15, %s4234_s5 }
 0x398   :  { %4070 = vset.pattern.permute.xlu1 %v5763_v8 }
 0x39b   :  { %336 = vrot.lane.b32.xlu1 %v335_v39, %s4234_s5 }
 0x3bf   :  { %v579_v10 = vpop.xlane.xlu0 %578 }
 0x3c3   :  { %v576_v61 = vpop.xlane.xlu1 %575 }
 0x3c4   :  { %4106 = vrcp.f32 %v576_v61 }
 0x3c5   :  { %4108 = vrcp.f32 %v579_v10 }
 0x3c7   :  { %v585_v63 = vpop.xlane.xlu0 %584  ;;  %v582_v40 = vpop.xlane.xlu1 %581 }
 0x3c8   :  { %4110 = vrcp.f32 %v582_v40 }
 0x3c9   :  { %4112 = vrcp.f32 %v585_v63 }
 0x3cb   :  { %v591_v41 = vpop.xlane.xlu0 %590  ;;  %v588_v4 = vpop.xlane.xlu1 %587 }
 0x3cc   :  { %4114 = vrcp.f32 %v588_v4 }
 0x3cd   :  { %4116 = vrcp.f32 %v591_v41 }
 0x3cf   :  { %v597_v48 = vpop.xlane.xlu0 %596 }
 0x3d0   :  { %4118 = vrcp.f32 %v597_v48 }
 0x3d1   :  { %v4107_v50 = vpop.eup %4106 }
 0x3d2   :  { %v599_v51 = vmul.f32 %v4107_v50, %v4578_v31  ;;  %v4109_v16 = vpop.eup %4108 }
 0x3d3   :  { %v617_v3 = vpop.permute.xlu0 %616  ;;  %v601_v31 = vmul.f32 %v4109_v16, %v4574_v12 }
 0x3d4   :  { %3791 = vmatprep.subr.mxu0 %v617_v3  ;;  %3795 = vmatprep.mubr.msk.f32.mxu0 %vm5765_vm14, %v599_v51 }
 0x3d5   :  { %3792 = vmatpush3.msra.mxu0 %v617_v3  ;;  %v4111_v20 = vpop.eup %4110 }
 0x3d6   :  { %v4113_v36 = vpop.eup %4112  ;;  %v603_v11 = vmul.f32 %v4111_v20, %v4582_v35 }
 0x3d7   :  { %v605_v34 = vmul.f32 %v4113_v36, %v4584_v6 }
 0x3d9   :  { %v4115_v26 = vpop.eup %4114 }
 0x3da   :  { %v4117_v43 = vpop.eup %4116  ;;  %v607_v39 = vmul.f32 %v4115_v26, %v4590_v53 }
 0x3db   :  { %v286_v15 = vpop.permute.xlu0 %285  ;;  %v609_v35 = vmul.f32 %v4117_v43, %v4592_v56  ;;  %v5761_v56 = vmov 0.0  }
 0x3dc   :  { %vm293_vm15 = vcmp.gt.f32.partialorder %v286_v15, %v4605_v17  ;;  %vm301_vm8 = vcmp.eq.f32.partialorder %v286_v15, %v4605_v17 }
 0x3dd   :  { %v4119_v12 = vpop.eup %4118 }
 0x3de   :  { %v613_v53 = vmul.f32 %v4119_v12, %v4598_v14 }
 0x3e0   :  { %v322_v41 = vpop.permute.xlu0 %321 }
 0x3e1   :  { %vm325_vm2 = vcmp.gt.f32.partialorder %v322_v41, %v4609_v18 }
 0x402   :  { %v594_v9 = vpop.xlane.xlu1 %593 }
 0x403   :  { %4120 = vrcp.f32 %v594_v9  ;;  %v3407_v9 = vsel %vm325_vm2, 1.0, %v5761_v56 }
 0x406   :  { %v615_v24 = vpop.permute.xlu1 %614 }
 0x407   :  { %3793 = vmatprep.subr.mxu0 %v615_v24 }
 0x408   :  { %3794 = vmatpush3.msra.mxu0 %v615_v24 }
 0x409   :  { %3796 = vmatmul.mubr.msk.f32.vlgmr.msra.gmra.mxu0 %vm5765_vm14, %v601_v31 }
 0x40a   :  { %v291_v33 = vpop.permute.xlu1 %290  ;;  %3798 = vmatprep.mubr.msk.f32.mxu0 %vm5765_vm14, %v603_v11 }
 0x40b   :  { %vm294_vm12 = vcmp.gt.f32.partialorder %v291_v33, %v4609_v18  ;;  %vm302_vm5 = vcmp.eq.f32.partialorder %v291_v33, %v4609_v18 }
 0x40c   :  { %v3403_v14 = vsel %vm294_vm12, 1.0, %v5761_v56  ;;  %vm5754_vm12 = vcmask 130048  }
 0x40d   :  { %3799 = vmatmul.mubr.msk.f32.gmra.mxu0 %vm5765_vm14, %v605_v34 }
 0x40e   :  { %v318_v10 = vpop.permute.xlu1 %317  ;;  %3801 = vmatprep.mubr.msk.f32.mxu0 %vm5765_vm14, %v607_v39 }
 0x40f   :  { %vm324_vm3 = vcmp.gt.f32.partialorder %v318_v10, %v4605_v17 }
 0x410   :  { %v4121_v61 = vpop.eup %4120  ;;  %v3406_v40 = vsel %vm324_vm3, 1.0, %v5761_v56 }
 0x411   :  { %3802 = vmatmul.mubr.msk.f32.gmra.mxu0 %vm5765_vm14, %v609_v35  ;;  %v611_v63 = vmul.f32 %v4121_v61, %v4105_v37  ;;  %v3402_v37 = vsel %vm293_vm15, 1.0, %v5761_v56  ;;  %vm332_vm15 = vcmp.eq.f32.partialorder %v318_v10, %v4605_v17  ;;  %v840_v35 = vld [vmem:[%s5742_s3 + $0x8] sm:$0xff] }
 0x412   :  { %v4641_v6 = vpop.permute.xlu1 %305 }
 0x413   :  { %vm5756_vm13 = vcmp.ne.s32.totalorder %v4641_v6, 0  ;;  %3804 = vmatprep.mubr.msk.f32.mxu0 %vm5765_vm14, %v611_v63 }
 0x414   :  { %vm308_vm1 = vmand %vm301_vm8, %vm5756_vm13 }
 0x415   :  { %vm309_vm0 = vmand %vm302_vm5, %vm5756_vm13  ;;  %3805 = vmatmul.mubr.msk.f32.gmra.mxu0 %vm5765_vm14, %v613_v53  ;;  %v3404_v48 = vsel %vm308_vm1, 1.0, %v5761_v56  ;;  %vm333_vm5 = vcmp.eq.f32.partialorder %v322_v41, %v4609_v18 }
 0x416   :  { %v4659_v50 = vpop.permute.xlu1 %336  ;;  %v314_v51 = vadd.f32 %v3404_v48, %v3402_v37  ;;  %v3405_v3 = vsel %vm309_vm0, 1.0, %v5761_v56  ;;  %v839_v37 = vld [vmem:[%s5742_s3] sm:$0xff] }
 0x417   :  { %vm5755_vm8 = vcmp.ne.s32.totalorder %v4659_v50, 0  ;;  %v315_v4 = vadd.f32 %v3405_v3, %v3403_v14 }
 0x418   :  { %v330_v16 = vadd.f32 %v3406_v40, %v314_v51  ;;  %vm339_vm1 = vmand %vm332_vm15, %vm5755_vm8  ;;  %vm5753_vm15 = vcmask 195584  }
 0x419   :  { %v3408_v20 = vsel %vm339_vm1, 1.0, %v5761_v56  ;;  %v331_v24 = vadd.f32 %v3407_v9, %v315_v4  ;;  %vm340_vm0 = vmand %vm333_vm5, %vm5755_vm8  ;;  %vm5785_vm5 = vcmask 64512  }
 0x41a   :  { %v345_v31 = vadd.f32 %v3408_v20, %v330_v16  ;;  %v3409_v36 = vsel %vm340_vm0, 1.0, %v5761_v56  ;;  %vm5786_vm1 = vmmov %vm5785_vm5  ;;  %vm5787_vm0 = vcmask 261120  }
 0x41b   :  { %v346_v11 = vadd.f32 %v3409_v36, %v331_v24 }
 0x41c   :  { %vm347_vm3 = vcmp.lt.f32.partialorder %v345_v31, 1.0 }
 0x41d   :  { %v3410_v26 = vsel %vm347_vm3, 1.0, %v5761_v56  ;;  %vm348_vm2 = vcmp.lt.f32.partialorder %v346_v11, 1.0  ;;  %vm5788_vm3 = vmmov %vm5787_vm0 }
 0x41e   :  { %v353_v33 = vmul.f32 %v3410_v26, %v4605_v17  ;;  %v3411_v34 = vsel %vm348_vm2, 1.0, %v5761_v56  ;;  %v842_v17 = vld [vmem:[%s5742_s3 + $0x18] sm:$0xff]  ;;  %vm5789_vm2 = vmmov %vm5787_vm0 }
 0x41f   :  { %v354_v43 = vmul.f32 %v3411_v34, %v4609_v18  ;;  %v841_v18 = vld [vmem:[%s5742_s3 + $0x10] sm:$0xff]  ;;  %3807 = vmatprep.subr.mxu0 %v842_v17 }
 0x420   :  { %769 = vrot.lane.b32.xlu0 %v353_v33, %s4235_s6  ;;  %3808 = vmatpush3.msra.mxu0 %v842_v17 }
 0x421   :  { %771 = vrot.lane.b32.xlu1 %v354_v43, %s4235_s6  ;;  %3809 = vmatprep.subr.mxu0 %v841_v18 }
 0x422   :  { %3810 = vmatpush3.msra.mxu0 %v841_v18 }
 0x423   :  { %3811 = vmatprep.subr.mxu0 %v840_v35 }
 0x424   :  { %773 = vrot.lane.b32.xlu0 %v353_v33, %s4242_s8  ;;  %3812 = vmatpush3.msra.mxu0 %v840_v35 }
 0x425   :  { %775 = vrot.lane.b32.xlu1 %v354_v43, %s4242_s8  ;;  %3813 = vmatprep.subr.mxu0 %v839_v37 }
 0x426   :  { %3814 = vmatpush3.msra.mxu0 %v839_v37 }
 0x492   :  { %v770_v15 = vpop.permute.xlu0 %769 }
 0x493   :  { %v772_v39 = vpop.permute.xlu1 %771  ;;  %783 = vperm.xlu0 %4071, %v770_v15  }
 0x494   :  { %787 = vperm.xlu1 %4070, %v772_v39  }
 0x496   :  { %v774_v10 = vpop.permute.xlu0 %773 }
 0x497   :  { %v776_v12 = vpop.permute.xlu1 %775 }
 0x498   :  { %795 = vperm.xlu0 %4071, %v776_v12   ;;  %791 = vperm.xlu1 %4070, %v774_v10  }
 0x49c   :  { %4072 = vset.pattern.permute.xlu1 %v5759_v30  ;;  %4073 = vset.pattern.permute.xlu0 %v5759_v30 }
 0x4c9   :  { %v3797_v61 = vpop.f32.mrf.mxu0 }
 0x4cb   :  { %v728_v63 = vpop.f32.mrf.mxu0 }
 0x4cd   :  { %v3800_v41 = vpop.f32.mrf.mxu0 }
 0x4ce   :  { %810 = vrot.lane.b32.xlu0 %v3800_v41, %s4243_s15  ;;  %v4710_v41 = vsub.s32 0, %v4391_v38 }
 0x4cf   :  { %v738_v53 = vpop.f32.mrf.mxu0 }
 0x4d0   :  { %808 = vrot.lane.b32.xlu1 %v738_v53, %s4243_s15 }
 0x4d1   :  { %v3803_v48 = vpop.f32.mrf.mxu0 }
 0x4d3   :  { %v748_v14 = vpop.f32.mrf.mxu0 }
 0x4d5   :  { %v3806_v51 = vpop.f32.mrf.mxu0 }
 0x4d7   :  { %v758_v16 = vpop.f32.mrf.mxu0 }
 0x50e   :  { %v784_v3 = vpop.permute.xlu0 %783 }
 0x50f   :  { %v788_v40 = vpop.permute.xlu1 %787  ;;  %v802_v4 = vmul.f32 %v784_v3, %v748_v14 }
 0x510   :  { %v803_v9 = vmul.f32 %v3803_v48, %v788_v40 }
 0x511   :  { %816 = vrot.lane.b32.xlu1 %v802_v4, %s4244_s18 }
 0x512   :  { %818 = vrot.lane.b32.xlu0 %v803_v9, %s4244_s18 }
 0x513   :  { %v792_v20 = vpop.permute.xlu1 %791  ;;  %v796_v24 = vpop.permute.xlu0 %795 }
 0x514   :  { %v804_v31 = vmul.f32 %v792_v20, %v758_v16  ;;  %v805_v36 = vmul.f32 %v3806_v51, %v796_v24 }
 0x516   :  { %824 = vrot.lane.b32.xlu1 %v804_v31, %s4245_s19  ;;  %826 = vrot.lane.b32.xlu0 %v805_v36, %s4245_s19 }
 0x540   :  { %v811_v26 = vpop.permute.xlu0 %810 }
 0x541   :  { %v831_v43 = vsel %vm5785_vm5, %v3797_v61, %v811_v26  ;;  %v4715_v61 = vld [vmem:[%s5742_s3 + $0x60] sm:$0xff]  ;;  %vm5790_vm5 = vmmov %vm5787_vm0 }
 0x542   :  { %v809_v11 = vpop.permute.xlu1 %808 }
 0x543   :  { %v830_v15 = vsel %vm5786_vm1, %v728_v63, %v809_v11  ;;  %v846_v63 = vrot.slane %v4715_v61, %v4710_v41  ;;  %vm5791_vm1 = vmmov %vm5787_vm0 }
 0x583   :  { %v817_v33 = vpop.permute.xlu1 %816 }
 0x584   :  { %v819_v34 = vpop.permute.xlu0 %818  ;;  %v833_v39 = vsel %vm5754_vm12, %v830_v15, %v817_v33  ;;  %v969_v15 = vld [vmem:[%s5742_s3 + $0x20] sm:$0xff] }
 0x585   :  { %v834_v10 = vsel %vm5754_vm12, %v831_v43, %v819_v34  ;;  %v971_v34 = vld [vmem:[%s5742_s3 + $0x30] sm:$0xff]  ;;  %v970_v43 = vld [vmem:[%s5742_s3 + $0x28] sm:$0xff] }
 0x588   :  { %v825_v12 = vpop.permute.xlu1 %824  ;;  %v827_v17 = vpop.permute.xlu0 %826 }
 0x589   :  { %v836_v18 = vsel %vm5753_vm15, %v833_v39, %v825_v12  ;;  %v837_v35 = vsel %vm5753_vm15, %v834_v10, %v827_v17  ;;  %v3445_v39 = vld [vmem:[%s5740_s2 + $0x40] sm:$0xff] }
 0x58a   :  { %3815 = vmatprep.mubr.msk.f32.mxu0 %vm5787_vm0, %v836_v18 }
 0x58b   :  { %3816 = vmatmul.mubr.msk.f32.vlgmr.msra.gmra.mxu0 %vm5788_vm3, %v837_v35  ;;  %vm5792_vm3 = vmmov %vm5787_vm0 }
 0x64b   :  { %v3817_v53 = vpop.f32.mrf.mxu0 }
 0x64c   :  { %v925_v37 = vadd.f32 %v3817_v53, %v846_v63  ;;  %v4741_v53 = vsub.s32 3, %v4391_v38 }
 0x64d   :  { %v919_v48 = vpop.f32.mrf.mxu0 }
 0x64e   :  { %v920_v14 = vadd.f32 %v919_v48, %v846_v63  ;;  %v929_v51 = vadd.f32 %v925_v37, %v4293_v5  ;;  %v960_v48 = vrot.slane %v4715_v61, %v4741_v53 }
 0x650   :  { %v933_v3 = vsel %vm5789_vm2, %v929_v51, 0.0  ;;  %v928_v40 = vadd.f32 %v920_v14, %v4280_v2  ;;  %v972_v2 = vld [vmem:[%s5742_s3 + $0x38] sm:$0xff]  ;;  %v4746_v14 = vsub.s32 4, %v4391_v38  ;;  %vm5793_vm2 = vmmov %vm5787_vm0 }
 0x651   :  { %934 = vadd.xlane.f32.xlu0 %v933_v3  ;;  %3818 = vmatprep.subr.mxu0 %v972_v2 }
 0x652   :  { %v930_v4 = vsel %vm5790_vm5, %v928_v40, 0.0  ;;  %3819 = vmatpush3.msra.mxu0 %v972_v2  ;;  %vm5794_vm5 = vmmov %vm5787_vm0  ;;  %v1062_v2 = vld [vmem:[%s5742_s3 + $0x50] sm:$0xff] }
 0x653   :  { %931 = vadd.xlane.f32.xlu1 %v930_v4  ;;  %3820 = vmatprep.subr.mxu0 %v971_v34 }
 0x654   :  { %3821 = vmatpush3.msra.mxu0 %v971_v34  ;;  %v1061_v34 = vld [vmem:[%s5742_s3 + $0x48] sm:$0xff] }
 0x655   :  { %3822 = vmatprep.subr.mxu0 %v970_v43 }
 0x656   :  { %3823 = vmatpush3.msra.mxu0 %v970_v43  ;;  %v1060_v43 = vld [vmem:[%s5742_s3 + $0x40] sm:$0xff] }
 0x657   :  { %3824 = vmatprep.subr.mxu0 %v969_v15 }
 0x658   :  { %3825 = vmatpush3.msra.mxu0 %v969_v15  ;;  %v4794_v15 = vsub.s32 1, %v4391_v38 }
 0x659   :  { %3840 = vmatprep.subr.mxu0 %v3445_v39 }
 0x6da   :  { %v935_v9 = vpop.xlane.xlu0 %934 }
 0x6db   :  { %v938_v16 = vmul.f32 0.03125, %v935_v9  ;;  %v966_v9 = vrot.slane %v4715_v61, %v4746_v14 }
 0x6dc   :  { %v932_v20 = vpop.xlane.xlu1 %931 }
 0x6dd   :  { %v940_v24 = vsub.f32 %v929_v51, %v938_v16  ;;  %v937_v31 = vmul.f32 0.03125, %v932_v20 }
 0x6df   :  { %v939_v36 = vsub.f32 %v928_v40, %v937_v31  ;;  %v942_v11 = vmul.f32 %v940_v24, %v940_v24 }
 0x6e1   :  { %v946_v26 = vsel %vm5791_vm1, %v942_v11, 0.0  ;;  %v941_v33 = vmul.f32 %v939_v36, %v939_v36  ;;  %v4757_v11 = vld [vmem:[%s5743_s0] sm:$0xff]  ;;  %vm5795_vm1 = vmmov %vm5787_vm0 }
 0x6e2   :  { %947 = vadd.xlane.f32.xlu1 %v946_v26  ;;  %v3442_v26 = vld [vmem:[%s5740_s2 + $0x28] sm:$0xff] }
 0x6e3   :  { %v943_v5 = vsel %vm5787_vm0, %v941_v33, 0.0  ;;  %v4777_v33 = vld [vmem:[%s5743_s0 + $0x8] sm:$0xff] }
 0x6e4   :  { %944 = vadd.xlane.f32.xlu0 %v943_v5  ;;  %v1063_v5 = vld [vmem:[%s5742_s3 + $0x58] sm:$0xff] }
 0x6e5   :  { %3829 = vmatprep.subr.mxu1 %v1063_v5 }
 0x6e6   :  { %3830 = vmatpush3.msra.mxu1 %v1063_v5 }
 0x6e7   :  { %3831 = vmatprep.subr.mxu1 %v1062_v2 }
 0x6e8   :  { %3832 = vmatpush3.msra.mxu1 %v1062_v2 }
 0x6e9   :  { %3833 = vmatprep.subr.mxu1 %v1061_v34 }
 0x6ea   :  { %3834 = vmatpush3.msra.mxu1 %v1061_v34 }
 0x6eb   :  { %3835 = vmatprep.subr.mxu1 %v1060_v43 }
 0x6ec   :  { %3836 = vmatpush3.msra.mxu1 %v1060_v43 }
 0x76b   :  { %v948_v10 = vpop.xlane.xlu1 %947 }
 0x76c   :  { %v950_v12 = vmul.f32 0.03125, %v948_v10 }
 0x76d   :  { %v945_v17 = vpop.xlane.xlu0 %944 }
 0x76e   :  { %v952_v18 = vadd.f32 1e-05, %v950_v12  ;;  %v949_v35 = vmul.f32 0.03125, %v945_v17 }
 0x770   :  { %4122 = vrsqrt.f32 %v952_v18  ;;  %v951_v63 = vadd.f32 1e-05, %v949_v35 }
 0x772   :  { %4124 = vrsqrt.f32 %v951_v63 }
 0x77d   :  { %v4123_v37 = vpop.eup %4122 }
 0x77e   :  { %v956_v51 = vmul.f32 %v4123_v37, %v940_v24  ;;  %v3444_v24 = vld [vmem:[%s5740_s2 + $0x38] sm:$0xff]  ;;  %v3447_v37 = vld [vmem:[%s5740_s2 + $0x48] ss:$0 sm:$0xff] }
 0x77f   :  { %v4125_v3 = vpop.eup %4124 }
 0x780   :  { %v955_v40 = vmul.f32 %v4125_v3, %v939_v36  ;;  %v962_v4 = vmul.f32 %v960_v48, %v956_v51  ;;  %v3443_v36 = vld [vmem:[%s5740_s2 + $0x30] sm:$0xff] }
 0x782   :  { %v961_v16 = vmul.f32 %v960_v48, %v955_v40  ;;  %v4752_v31 = vadd.f32 %v966_v9, %v962_v4 }
 0x784   :  { %v4750_v20 = vadd.f32 %v966_v9, %v961_v16 }
 0x786   :  { %3826 = vmatprep.mubr.msk.f32.mxu0 %vm5792_vm3, %v4750_v20  ;;  %vm5796_vm3 = vmmov %vm5787_vm0 }
 0x787   :  { %3827 = vmatmul.mubr.msk.f32.vlgmr.msra.gmra.mxu0 %vm5793_vm2, %v4752_v31  ;;  %vm5797_vm2 = vcmask 64512  }
 0x788   :  { %3841 = vmatpush3.msra.mxu0 %v3445_v39  ;;  %3848 = vmatprep.mubr.msk.f32.mxu0 %vm5794_vm5, %v4757_v11  ;;  %v976_v39 = vrot.slane %v4715_v61, %v4794_v15  ;;  %vm5798_vm5 = vcmask 802560  }
 0x789   :  { %3842 = vmatprep.subr.mxu0 %v3444_v24 }
 0x78a   :  { %3843 = vmatpush3.msra.mxu0 %v3444_v24 }
 0x78b   :  { %3844 = vmatprep.subr.mxu0 %v3443_v36 }
 0x78c   :  { %3845 = vmatpush3.msra.mxu0 %v3443_v36 }
 0x78d   :  { %3846 = vmatprep.subr.mxu0 %v3442_v26 }
 0x78e   :  { %3847 = vmatpush3.msra.mxu0 %v3442_v26 }
 0x78f   :  { %3849 = vmatmul.mubr.msk.f32.vlgmr.msra.gmra.mxu0 %vm5795_vm1, %v4777_v33  ;;  %vm5799_vm1 = vmmov %vm5798_vm5 }
 0x847   :  { %v3828_v10 = vpop.f32.mrf.mxu0 }
 0x848   :  { %v1055_v12 = vadd.f32 %v3828_v10, %v976_v39 }
 0x849   :  { %v1049_v17 = vpop.f32.mrf.mxu0 }
 0x84a   :  { %v1050_v18 = vadd.f32 %v1049_v17, %v976_v39  ;;  %v1059_v63 = vmax.f32 %v1055_v12, 0.0 }
 0x84c   :  { %v1058_v35 = vmax.f32 %v1050_v18, 0.0 }
 0x84e   :  { %3837 = vmatprep.mubr.msk.f32.mxu1 %vm5787_vm0, %v1058_v35  ;;  %vm5800_vm0 = vmmov %vm5797_vm2 }
 0x84f   :  { %v3850_v48 = vpop.f32.mrf.mxu0  ;;  %3838 = vmatmul.mubr.msk.f32.vlgmr.msra.gmra.mxu1 %vm5796_vm3, %v1059_v63  ;;  %vm5801_vm3 = vmmov %vm5800_vm0 }
 0x850   :  { %v4803_v51 = vadd.f32 %v3850_v48, %v3447_v37  ;;  %vm5803_vm15 = vmmov %vm5800_vm0 }
 0x851   :  { %v1271_v3 = vpop.f32.mrf.mxu0  ;;  %vm5804_vm12 = vmmov %vm5800_vm0 }
 0x852   :  { %v4805_v40 = vadd.f32 %v3447_v37, %v1271_v3  ;;  %1292 = vrot.lane.b32.xlu0 %v4803_v51, %s4232_s1  ;;  %v1297_v26 = vsel %vm5798_vm5, %v4803_v51, -inf  ;;  %vm5805_vm5 = vmmov %vm5800_vm0 }
 0x853   :  { %vm5806_vm8 = vmmov %vm5800_vm0 }
 0x854   :  { %1290 = vrot.lane.b32.xlu1 %v4805_v40, %s4232_s1  ;;  %3867 = vmatprep.mubr.msk.f32.mxu1 %vm5797_vm2, %v4805_v40  ;;  %v1294_v5 = vsel %vm5799_vm1, %v4805_v40, -inf  ;;  %vm5802_vm2 = vmmov %vm5800_vm0 }
 0x855   :  { %vm5807_vm1 = vmmov %vm5800_vm0 }
 0x856   :  { %1286 = vrot.lane.b32.xlu0 %v4805_v40, %s4231_s29  ;;  %vm5808_vm13 = vmmov %vm5800_vm0 }
 0x858   :  { %1288 = vrot.lane.b32.xlu1 %v4803_v51, %s4231_s29 }
 0x85a   :  { %1282 = vrot.lane.b32.xlu0 %v4805_v40, %s4233_s30 }
 0x85c   :  { %1284 = vrot.lane.b32.xlu1 %v4803_v51, %s4233_s30 }
 0x8c4   :  { %v4821_v61 = vpop.permute.xlu0 %1292 }
 0x8c5   :  { %1400 = vrot.lane.b32.xlu1 %v4821_v61, %s4234_s5 }
 0x8c6   :  { %v4825_v4 = vpop.permute.xlu1 %1290 }
 0x8c7   :  { %1398 = vrot.lane.b32.xlu0 %v4825_v4, %s4234_s5 }
 0x8c8   :  { %v4829_v9 = vpop.permute.xlu0 %1286 }
 0x8ca   :  { %v4831_v16 = vpop.permute.xlu1 %1288 }
 0x8cb   :  { %1394 = vrot.lane.b32.xlu0 %v4829_v9, %s4234_s5  ;;  %1396 = vrot.lane.b32.xlu1 %v4831_v16, %s4234_s5 }
 0x8cc   :  { %v4837_v24 = vpop.permute.xlu0 %1282 }
 0x8ce   :  { %v4839_v36 = vpop.permute.xlu1 %1284 }
 0x8cf   :  { %1390 = vrot.lane.b32.xlu0 %v4837_v24, %s4234_s5  ;;  %1392 = vrot.lane.b32.xlu1 %v4839_v36, %s4234_s5 }
 0x8d3   :  { %1386 = vrot.lane.b32.xlu0 %v4805_v40, %s4234_s5  ;;  %1388 = vrot.lane.b32.xlu1 %v4803_v51, %s4234_s5 }
 0x8f2   :  { %1298 = vmax.xlane.f32.xlu0 %v1297_v26 }
 0x8f7   :  { %1295 = vmax.xlane.f32.xlu1 %v1294_v5 }
 0x937   :  { %v1401_v2 = vpop.permute.xlu1 %1400 }
 0x938   :  { %3851 = vmatprep.subr.msk.mxu1 %vm5800_vm0, %v1401_v2 }
 0x939   :  { %v1399_v34 = vpop.permute.xlu0 %1398  ;;  %3852 = vmatpush3.xpose.msk.msra.mxu1 %vm5801_vm3, %v1401_v2  ;;  %vm5809_vm3 = vmmov %vm5800_vm0 }
 0x93a   :  { %3853 = vmatprep.subr.msk.mxu1 %vm5802_vm2, %v1399_v34  ;;  %vm5811_vm2 = vmmov %vm5800_vm0 }
 0x93d   :  { %3854 = vmatpush3.xpose.msk.msra.mxu1 %vm5803_vm15, %v1399_v34  ;;  %v1397_v43 = vpop.permute.xlu1 %1396  ;;  %v1395_v39 = vpop.permute.xlu0 %1394  ;;  %vm5810_vm15 = vmmov %vm5800_vm0 }
 0x93e   :  { %3855 = vmatprep.subr.msk.mxu1 %vm5804_vm12, %v1397_v43  ;;  %vm5812_vm12 = vmmov %vm5800_vm0 }
 0x941   :  { %3856 = vmatpush3.xpose.msk.msra.mxu1 %vm5805_vm5, %v1397_v43  ;;  %v1393_v10 = vpop.permute.xlu1 %1392  ;;  %v1391_v12 = vpop.permute.xlu0 %1390  ;;  %vm5813_vm5 = vmmov %vm5800_vm0 }
 0x942   :  { %3857 = vmatprep.subr.msk.mxu1 %vm5806_vm8, %v1395_v39  ;;  %vm5814_vm8 = vmmov %vm5800_vm0 }
 0x945   :  { %3858 = vmatpush3.xpose.msk.msra.mxu1 %vm5807_vm1, %v1395_v39  ;;  %v1389_v17 = vpop.permute.xlu1 %1388  ;;  %v1387_v18 = vpop.permute.xlu0 %1386  ;;  %vm5815_vm1 = vmmov %vm5800_vm0 }
 0x946   :  { %3859 = vmatprep.subr.msk.mxu1 %vm5808_vm13, %v1393_v10  ;;  %vm5816_vm13 = vmmov %vm5800_vm0 }
 0x949   :  { %3860 = vmatpush3.xpose.msk.msra.mxu1 %vm5800_vm0, %v1393_v10 }
 0x94a   :  { %3861 = vmatprep.subr.msk.mxu1 %vm5809_vm3, %v1391_v12  ;;  %vm5817_vm3 = vmmov %vm5800_vm0 }
 0x94d   :  { %3862 = vmatpush3.xpose.msk.msra.mxu1 %vm5810_vm15, %v1391_v12  ;;  %vm5818_vm15 = vmmov %vm5800_vm0  ;;  %v4895_v12 = vpop.f32.mrf.mxu1 }
 0x94e   :  { %3863 = vmatprep.subr.msk.mxu1 %vm5811_vm2, %v1389_v17  ;;  %vm5819_vm2 = vmmov %vm5800_vm0 }
 0x951   :  { %3864 = vmatpush3.xpose.msk.msra.mxu1 %vm5812_vm12, %v1389_v17  ;;  %vm5820_vm12 = vmmov %vm5800_vm0  ;;  %v4897_v17 = vpop.f32.mrf.mxu1 }
 0x952   :  { %3865 = vmatprep.subr.msk.mxu1 %vm5813_vm5, %v1387_v18  ;;  %vm5821_vm5 = vcmask 15360  }
 0x955   :  { %3866 = vmatpush3.xpose.msk.msra.mxu1 %vm5814_vm8, %v1387_v18  ;;  %vm5822_vm8 = vmmov %vm5821_vm5 }
 0x958   :  { %3868 = vmatmul.mubr.msk.f32.vlgmr.msra.gmra.mxu1 %vm5815_vm1, %v4803_v51 }
 0x959   :  { %3870 = vmatprep.mubr.msk.f32.mxu1 %vm5816_vm13, %v4837_v24 }
 0x95c   :  { %3871 = vmatmul.mubr.msk.f32.gmra.mxu1 %vm5800_vm0, %v4839_v36  ;;  %vm5825_vm0 = vcmp.ne.s32.totalorder %v4641_v6, 0 }
 0x95d   :  { %3873 = vmatprep.mubr.msk.f32.mxu1 %vm5817_vm3, %v4829_v9 }
 0x960   :  { %3874 = vmatmul.mubr.msk.f32.gmra.mxu1 %vm5818_vm15, %v4831_v16 }
 0x961   :  { %3876 = vmatprep.mubr.msk.f32.mxu1 %vm5819_vm2, %v4825_v4 }
 0x964   :  { %3877 = vmatmul.mubr.msk.f32.gmra.mxu1 %vm5820_vm12, %v4821_v61  ;;  %vm5826_vm12 = vmmov %vm5825_vm0 }
 0x97b   :  { %v1299_v35 = vpop.xlane.xlu0 %1298 }
 0x97c   :  { %v1301_v63 = vsub.f32 %v4803_v51, %v1299_v35 }
 0x97e   :  { %v1304_v37 = vmul.f32 1.442695, %v1301_v63 }
 0x980   :  { %4126 = vpow2.f32 %v1304_v37  ;;  %v1296_v48 = vpop.xlane.xlu1 %1295 }
 0x981   :  { %v1300_v3 = vsub.f32 %v4805_v40, %v1296_v48 }
 0x983   :  { %v1302_v26 = vmul.f32 1.442695, %v1300_v3 }
 0x985   :  { %4128 = vpow2.f32 %v1302_v26 }
 0x98d   :  { %v4885_v5 = vpop.eup %4126 }
 0x98e   :  { %1310 = vrot.lane.b32.xlu1 %v4885_v5, %s4235_s6 }
 0x992   :  { %v4889_v2 = vpop.eup %4128 }
 0x993   :  { %1308 = vrot.lane.b32.xlu0 %v4889_v2, %s4235_s6 }
 0xa00   :  { %v1311_v34 = vpop.permute.xlu1 %1310 }
 0xa01   :  { %v1317_v43 = vsel %vm5821_vm5, %v1311_v34, 0.0 }
 0xa02   :  { %1318 = vadd.xlane.f32.xlu1 %v1317_v43 }
 0xa05   :  { %v1309_v39 = vpop.permute.xlu0 %1308 }
 0xa06   :  { %v1314_v10 = vsel %vm5822_vm8, %v1309_v39, 0.0 }
 0xa07   :  { %1315 = vadd.xlane.f32.xlu0 %v1314_v10 }
 0xa18   :  { %v3869_v18 = vpop.f32.mrf.mxu1 }
 0xa19   :  { %v1540_v35 = vmul.f32 0.35355338, %v3869_v18 }
 0xa1a   :  { %v1500_v63 = vpop.f32.mrf.mxu1 }
 0xa1b   :  { %v1539_v37 = vmul.f32 0.35355338, %v1500_v63  ;;  %v1548_v48 = vadd.f32 %v1540_v35, %v4433_v58 }
 0xa1c   :  { %v3872_v3 = vpop.f32.mrf.mxu1 }
 0xa1d   :  { %v1542_v26 = vmul.f32 0.35355338, %v3872_v3  ;;  %v1558_v57 = vsel %vm5765_vm14, %v1548_v48, -inf  ;;  %v1547_v34 = vadd.f32 %v1539_v37, %v4457_v7 }
 0xa1e   :  { %v1510_v43 = vpop.f32.mrf.mxu1  ;;  %1559 = vmax.xlane.f32.xlu1 %v1558_v57 }
 0xa1f   :  { %v1541_v39 = vmul.f32 0.35355338, %v1510_v43  ;;  %v1555_v10 = vsel %vm5765_vm14, %v1547_v34, -inf  ;;  %v1550_v30 = vadd.f32 %v1542_v26, %v4497_v29 }
 0xa20   :  { %v3875_v56 = vpop.f32.mrf.mxu1  ;;  %1556 = vmax.xlane.f32.xlu0 %v1555_v10 }
 0xa21   :  { %v1544_v18 = vmul.f32 0.35355338, %v3875_v56  ;;  %v1564_v63 = vsel %vm5765_vm14, %v1550_v30, -inf  ;;  %v1549_v58 = vadd.f32 %v1541_v39, %v4492_v28 }
 0xa22   :  { %v1520_v35 = vpop.f32.mrf.mxu1  ;;  %1565 = vmax.xlane.f32.xlu1 %v1564_v63 }
 0xa23   :  { %v1543_v3 = vmul.f32 0.35355338, %v1520_v35  ;;  %v1561_v8 = vsel %vm5765_vm14, %v1549_v58, -inf  ;;  %v1552_v7 = vadd.f32 %v1544_v18, %v4520_v46 }
 0xa24   :  { %v3878_v57 = vpop.f32.mrf.mxu1  ;;  %1562 = vmax.xlane.f32.xlu0 %v1561_v8 }
 0xa25   :  { %v1546_v37 = vmul.f32 0.35355338, %v3878_v57  ;;  %v1570_v43 = vsel %vm5765_vm14, %v1552_v7, -inf  ;;  %v1551_v29 = vadd.f32 %v1543_v3, %v4517_v45 }
 0xa26   :  { %v1530_v26 = vpop.f32.mrf.mxu1  ;;  %1571 = vmax.xlane.f32.xlu1 %v1570_v43 }
 0xa27   :  { %v1545_v56 = vmul.f32 0.35355338, %v1530_v26  ;;  %v1567_v10 = vsel %vm5765_vm14, %v1551_v29, -inf  ;;  %v1554_v28 = vadd.f32 %v1546_v37, %v4530_v0 }
 0xa28   :  { %1568 = vmax.xlane.f32.xlu0 %v1567_v10 }
 0xa29   :  { %v1576_v39 = vsel %vm5765_vm14, %v1554_v28, -inf  ;;  %v1553_v63 = vadd.f32 %v1545_v56, %v4558_v13 }
 0xa2a   :  { %1577 = vmax.xlane.f32.xlu1 %v1576_v39 }
 0xa2b   :  { %v1573_v46 = vsel %vm5765_vm14, %v1553_v63, -inf }
 0xa2c   :  { %1574 = vmax.xlane.f32.xlu0 %v1573_v46 }
 0xa3b   :  { %1655 = vrot.lane.b32.xlu1 %v4825_v4, %s4237_s7 }
 0xa3f   :  { %1653 = vrot.lane.b32.xlu1 %v4831_v16, %s4237_s7 }
 0xa42   :  { %1657 = vrot.lane.b32.xlu0 %v4821_v61, %s4237_s7 }
 0xa43   :  { %1649 = vrot.lane.b32.xlu1 %v4839_v36, %s4237_s7 }
 0xa46   :  { %1651 = vrot.lane.b32.xlu0 %v4829_v9, %s4237_s7 }
 0xa4a   :  { %1647 = vrot.lane.b32.xlu0 %v4837_v24, %s4237_s7 }
 0xa8b   :  { %v4927_v45 = vpop.xlane.xlu1 %1318 }
 0xa90   :  { %v4929_v0 = vpop.xlane.xlu0 %1315 }
 0xaa7   :  { %v1560_v13 = vpop.xlane.xlu1 %1559 }
 0xaa8   :  { %v1580_v8 = vsub.f32 %v1548_v48, %v1560_v13 }
 0xaa9   :  { %v1557_v4 = vpop.xlane.xlu0 %1556 }
 0xaaa   :  { %v1589_v16 = vmul.f32 1.442695, %v1580_v8  ;;  %v1579_v18 = vsub.f32 %v1547_v34, %v1557_v4 }
 0xaab   :  { %v1566_v35 = vpop.xlane.xlu1 %1565 }
 0xaac   :  { %4130 = vpow2.f32 %v1589_v16  ;;  %v1587_v61 = vmul.f32 1.442695, %v1579_v18  ;;  %v1582_v3 = vsub.f32 %v1550_v30, %v1566_v35 }
 0xaad   :  { %v1563_v36 = vpop.xlane.xlu0 %1562 }
 0xaae   :  { %4132 = vpow2.f32 %v1587_v61  ;;  %v1593_v57 = vmul.f32 1.442695, %v1582_v3  ;;  %v1581_v9 = vsub.f32 %v1549_v58, %v1563_v36 }
 0xaaf   :  { %v1572_v37 = vpop.xlane.xlu1 %1571 }
 0xab0   :  { %4134 = vpow2.f32 %v1593_v57  ;;  %v1591_v24 = vmul.f32 1.442695, %v1581_v9  ;;  %v1584_v43 = vsub.f32 %v1552_v7, %v1572_v37 }
 0xab1   :  { %v1569_v26 = vpop.xlane.xlu0 %1568 }
 0xab2   :  { %4136 = vpow2.f32 %v1591_v24  ;;  %v1597_v56 = vmul.f32 1.442695, %v1584_v43  ;;  %v1583_v10 = vsub.f32 %v1551_v29, %v1569_v26 }
 0xab3   :  { %v1578_v48 = vpop.xlane.xlu1 %1577 }
 0xab4   :  { %v1595_v39 = vmul.f32 1.442695, %v1583_v10  ;;  %v1586_v46 = vsub.f32 %v1554_v28, %v1578_v48  ;;  %4138 = vpow2.f32 %v1597_v56 }
 0xab5   :  { %v1575_v34 = vpop.xlane.xlu0 %1574 }
 0xab6   :  { %4140 = vpow2.f32 %v1595_v39  ;;  %v1601_v13 = vmul.f32 1.442695, %v1586_v46  ;;  %v1585_v30 = vsub.f32 %v1553_v63, %v1575_v34 }
 0xab7   :  { %v1656_v8 = vpop.permute.xlu1 %1655 }
 0xab8   :  { %v1599_v4 = vmul.f32 1.442695, %v1585_v30  ;;  %4142 = vpow2.f32 %v1601_v13 }
 0xab9   :  { %v4931_v16 = vpop.eup %4130  ;;  %v1658_v58 = vpop.permute.xlu0 %1657 }
 0xaba   :  { %4144 = vpow2.f32 %v1599_v4  ;;  %3879 = vmatprep.subr.mxu0 %v1658_v58  ;;  %v1606_v7 = vsel %vm5765_vm14, %v4931_v16, 0.0 }
 0xabb   :  { %v4935_v29 = vpop.eup %4132  ;;  %3880 = vmatpush3.msra.mxu0 %v1658_v58  ;;  %1607 = vadd.xlane.f32.xlu0 %v1606_v7  ;;  %v1654_v28 = vpop.permute.xlu1 %1653  ;;  %4146 = vrcp.f32 %v4929_v0 }
 0xabc   :  { %3881 = vmatprep.subr.mxu0 %v1656_v8  ;;  %v1603_v63 = vsel %vm5765_vm14, %v4935_v29, 0.0  ;;  %4148 = vrcp.f32 %v4927_v45  ;;  %v5823_v45 = vmov 0  }
 0xabd   :  { %v4939_v18 = vpop.eup %4134  ;;  %1604 = vadd.xlane.f32.xlu1 %v1603_v63  ;;  %3882 = vmatpush3.msra.mxu0 %v1656_v8  ;;  %v1652_v35 = vpop.permute.xlu0 %1651 }
 0xabe   :  { %3883 = vmatprep.subr.mxu0 %v1654_v28  ;;  %v1612_v36 = vsel %vm5765_vm14, %v4939_v18, 0.0 }
 0xabf   :  { %v4941_v61 = vpop.eup %4136  ;;  %3884 = vmatpush3.msra.mxu0 %v1654_v28  ;;  %v1650_v9 = vpop.permute.xlu1 %1649 }
 0xac0   :  { %3885 = vmatprep.subr.mxu0 %v1652_v35  ;;  %v1609_v3 = vsel %vm5765_vm14, %v4941_v61, 0.0 }
 0xac1   :  { %1610 = vadd.xlane.f32.xlu0 %v1609_v3  ;;  %1613 = vadd.xlane.f32.xlu1 %v1612_v36  ;;  %v4947_v57 = vpop.eup %4138  ;;  %v1648_v24 = vpop.permute.xlu0 %1647 }
 0xac2   :  { %3886 = vmatpush3.msra.mxu0 %v1652_v35  ;;  %v1618_v26 = vsel %vm5765_vm14, %v4947_v57, 0.0 }
 0xac3   :  { %v4949_v37 = vpop.eup %4140  ;;  %3887 = vmatprep.subr.mxu0 %v1650_v9 }
 0xac4   :  { %3888 = vmatpush3.msra.mxu0 %v1650_v9  ;;  %v1615_v43 = vsel %vm5765_vm14, %v4949_v37, 0.0 }
 0xac5   :  { %3889 = vmatprep.subr.mxu0 %v1648_v24  ;;  %1616 = vadd.xlane.f32.xlu0 %v1615_v43  ;;  %v4955_v56 = vpop.eup %4142 }
 0xac6   :  { %1619 = vadd.xlane.f32.xlu1 %v1618_v26  ;;  %3890 = vmatpush3.msra.mxu0 %v1648_v24  ;;  %v1624_v39 = vsel %vm5765_vm14, %v4955_v56, 0.0 }
 0xac7   :  { %v4957_v10 = vpop.eup %4144 }
 0xac8   :  { %v1621_v48 = vsel %vm5765_vm14, %v4957_v10, 0.0  ;;  %v4147_v46 = vpop.eup %4146 }
 0xac9   :  { %1622 = vadd.xlane.f32.xlu0 %v1621_v48  ;;  %v4968_v34 = vmul.f32 %v4147_v46, %v4889_v2  ;;  %v4149_v13 = vpop.eup %4148 }
 0xaca   :  { %1625 = vadd.xlane.f32.xlu1 %v1624_v39  ;;  %v4974_v30 = vmul.f32 %v4149_v13, %v4885_v5 }
 0xadb   :  { %1645 = vrot.lane.b32.xlu1 %v4803_v51, %s4237_s7 }
 0xadf   :  { %1326 = vperm.xlu1 %4072, %v4968_v34   ;;  %1643 = vrot.lane.b32.xlu0 %v4805_v40, %s4237_s7 }
 0xae3   :  { %4074 = vset.pattern.permute.xlu1 %v4239_v22  ;;  %1331 = vperm.xlu0 %4073, %v4974_v30  }
 0xae4   :  { %1353 = vperm.xlu1 %4074, %v4968_v34  }
 0xae7   :  { %4076 = vset.pattern.permute.xlu0 %v5823_v45 }
 0xae8   :  { %1357 = vperm.xlu1 %4074, %v4974_v30  }
 0xaec   :  { %4075 = vset.pattern.permute.xlu1 %v5823_v45 }
 0xb44   :  { %v1608_v51 = vpop.xlane.xlu0 %1607 }
 0xb46   :  { %v1605_v2 = vpop.xlane.xlu1 %1604 }
 0xb47   :  { %4150 = vrcp.f32 %v1605_v2 }
 0xb48   :  { %4152 = vrcp.f32 %v1608_v51 }
 0xb4a   :  { %v1611_v40 = vpop.xlane.xlu0 %1610  ;;  %v1614_v0 = vpop.xlane.xlu1 %1613 }
 0xb4b   :  { %4154 = vrcp.f32 %v1611_v40 }
 0xb4c   :  { %4156 = vrcp.f32 %v1614_v0 }
 0xb4e   :  { %v1617_v5 = vpop.xlane.xlu0 %1616 }
 0xb4f   :  { %4158 = vrcp.f32 %v1617_v5  ;;  %v1620_v8 = vpop.xlane.xlu1 %1619 }
 0xb50   :  { %4160 = vrcp.f32 %v1620_v8 }
 0xb52   :  { %v1623_v4 = vpop.xlane.xlu0 %1622 }
 0xb53   :  { %4162 = vrcp.f32 %v1623_v4  ;;  %v1626_v58 = vpop.xlane.xlu1 %1625 }
 0xb54   :  { %v4151_v7 = vpop.eup %4150  ;;  %4164 = vrcp.f32 %v1626_v58 }
 0xb55   :  { %v1628_v28 = vmul.f32 %v4151_v7, %v4935_v29  ;;  %v4153_v63 = vpop.eup %4152  ;;  %v5824_v29 = vmov 0.0  }
 0xb56   :  { %v1644_v36 = vpop.permute.xlu0 %1643  ;;  %v1630_v24 = vmul.f32 %v4153_v63, %v4931_v16 }
 0xb57   :  { %v1646_v35 = vpop.permute.xlu1 %1645  ;;  %3895 = vmatprep.mubr.msk.f32.mxu0 %vm5765_vm14, %v1628_v28 }
 0xb58   :  { %v4155_v3 = vpop.eup %4154  ;;  %3891 = vmatprep.subr.mxu0 %v1646_v35 }
 0xb59   :  { %3892 = vmatpush3.msra.mxu0 %v1646_v35  ;;  %v1632_v9 = vmul.f32 %v4155_v3, %v4941_v61  ;;  %v4157_v43 = vpop.eup %4156 }
 0xb5a   :  { %3893 = vmatprep.subr.mxu0 %v1644_v36  ;;  %v1634_v13 = vmul.f32 %v4157_v43, %v4939_v18 }
 0xb5b   :  { %3894 = vmatpush3.msra.mxu0 %v1644_v36  ;;  %v1327_v26 = vpop.permute.xlu1 %1326 }
 0xb5c   :  { %v4159_v48 = vpop.eup %4158  ;;  %vm1334_vm1 = vcmp.gt.f32.partialorder %v1327_v26, %v4968_v34  ;;  %vm1342_vm13 = vcmp.eq.f32.partialorder %v1327_v26, %v4968_v34  ;;  %3896 = vmatmul.mubr.msk.f32.vlgmr.msra.gmra.mxu0 %vm5765_vm14, %v1630_v24 }
 0xb5d   :  { %v3450_v39 = vsel %vm1334_vm1, 1.0, %v5824_v29  ;;  %vm1344_vm3 = vmand %vm1342_vm13, %vm5825_vm0  ;;  %3898 = vmatprep.mubr.msk.f32.mxu0 %vm5765_vm14, %v1632_v9  ;;  %v1636_v61 = vmul.f32 %v4159_v48, %v4949_v37  ;;  %v4161_v51 = vpop.eup %4160  ;;  %vm5827_vm13 = vcmp.ne.s32.totalorder %v4659_v50, 0 }
 0xb5e   :  { %v3452_v16 = vsel %vm1344_vm3, 1.0, %v5824_v29  ;;  %v1332_v46 = vpop.permute.xlu0 %1331  ;;  %v1638_v28 = vmul.f32 %v4161_v51, %v4947_v57 }
 0xb5f   :  { %v1350_v2 = vadd.f32 %v3452_v16, %v3450_v39  ;;  %vm1335_vm15 = vcmp.gt.f32.partialorder %v1332_v46, %v4974_v30  ;;  %vm1343_vm2 = vcmp.eq.f32.partialorder %v1332_v46, %v4974_v30  ;;  %v1354_v40 = vpop.permute.xlu1 %1353 }
 0xb60   :  { %v4163_v0 = vpop.eup %4162  ;;  %v3451_v5 = vsel %vm1335_vm15, 1.0, %v5824_v29  ;;  %vm1345_vm5 = vmand %vm1343_vm2, %vm5826_vm12  ;;  %vm1360_vm8 = vcmp.gt.f32.partialorder %v1354_v40, %v4968_v34  ;;  %vm1368_vm1 = vcmp.eq.f32.partialorder %v1354_v40, %v4968_v34  ;;  %3899 = vmatmul.mubr.msk.f32.gmra.mxu0 %vm5765_vm14, %v1634_v13  ;;  %v3487_v13 = vld [vmem:[%s5742_s3 + $0x78] sm:$0xff] }
 0xb61   :  { %v3453_v18 = vsel %vm1345_vm5, 1.0, %v5824_v29  ;;  %v3454_v37 = vsel %vm1360_vm8, 1.0, %v5824_v29  ;;  %vm1370_vm0 = vmand %vm1368_vm1, %vm5827_vm13  ;;  %3901 = vmatprep.mubr.msk.f32.mxu0 %vm5765_vm14, %v1636_v61  ;;  %v1640_v8 = vmul.f32 %v4163_v0, %v4957_v10  ;;  %v4165_v63 = vpop.eup %4164  ;;  %vm5830_vm1 = vcmask 64512  }
 0xb62   :  { %v1351_v4 = vadd.f32 %v3453_v18, %v3451_v5  ;;  %v1366_v58 = vadd.f32 %v3454_v37, %v1350_v2  ;;  %v3456_v7 = vsel %vm1370_vm0, 1.0, %v5824_v29  ;;  %vm5828_vm2 = vmmov %vm5827_vm13  ;;  %v1642_v9 = vmul.f32 %v4165_v63, %v4955_v56  ;;  %v3486_v5 = vld [vmem:[%s5742_s3 + $0x70] sm:$0xff]  ;;  %v3485_v18 = vld [vmem:[%s5742_s3 + $0x68] sm:$0xff] }
 0xb63   :  { %v1358_v35 = vpop.permute.xlu1 %1357  ;;  %vm5831_vm13 = vmmov %vm5830_vm1  ;;  %vm5832_vm0 = vcmask 130048  }
 0xb64   :  { %v1376_v3 = vadd.f32 %v3456_v7, %v1366_v58  ;;  %vm1361_vm3 = vcmp.gt.f32.partialorder %v1358_v35, %v4974_v30  ;;  %vm1369_vm15 = vcmp.eq.f32.partialorder %v1358_v35, %v4974_v30  ;;  %3902 = vmatmul.mubr.msk.f32.gmra.mxu0 %vm5765_vm14, %v1638_v28 }
 0xb65   :  { %v3455_v36 = vsel %vm1361_vm3, 1.0, %v5824_v29  ;;  %vm1371_vm12 = vmand %vm1369_vm15, %vm5828_vm2  ;;  %3904 = vmatprep.mubr.msk.f32.mxu0 %vm5765_vm14, %v1640_v8  ;;  %vm5834_vm15 = vcmask 195584  }
 0xb66   :  { %vm1378_vm5 = vcmp.lt.f32.partialorder %v1376_v3, 1.0  ;;  %v1367_v10 = vadd.f32 %v3455_v36, %v1351_v4  ;;  %v3457_v57 = vsel %vm1371_vm12, 1.0, %v5824_v29  ;;  %vm5833_vm3 = vmmov %vm5832_vm0  ;;  %vm5836_vm12 = vcmask 261120  }
 0xb67   :  { %v3458_v24 = vsel %vm1378_vm5, 1.0, %v5824_v29  ;;  %vm5835_vm2 = vmmov %vm5834_vm15 }
 0xb68   :  { %v1377_v43 = vadd.f32 %v3457_v57, %v1367_v10  ;;  %3905 = vmatmul.mubr.msk.f32.gmra.mxu0 %vm5765_vm14, %v1642_v9  ;;  %v1384_v26 = vmul.f32 %v3458_v24, %v4968_v34  ;;  %v5829_v34 = vmov 96   ;;  %vm5837_vm5 = vmmov %vm5836_vm12 }
 0xb6a   :  { %vm1379_vm8 = vcmp.lt.f32.partialorder %v1377_v43, 1.0  ;;  %1798 = vrot.lane.b32.xlu0 %v1384_v26, %s4235_s6 }
 0xb6b   :  { %v3459_v48 = vsel %vm1379_vm8, 1.0, %v5824_v29  ;;  %vm5838_vm8 = vmmov %vm5837_vm5 }
 0xb6c   :  { %v1385_v39 = vmul.f32 %v3459_v48, %v4974_v30  ;;  %v3488_v30 = vld [vmem:[%s5742_s3 + $0x80] sm:$0xff] }
 0xb6d   :  { %3907 = vmatprep.subr.mxu0 %v3488_v30 }
 0xb6e   :  { %1802 = vrot.lane.b32.xlu0 %v1384_v26, %s4242_s8  ;;  %1800 = vrot.lane.b32.xlu1 %v1385_v39, %s4235_s6 }
 0xb6f   :  { %3908 = vmatpush3.msra.mxu0 %v3488_v30 }
 0xb70   :  { %3909 = vmatprep.subr.mxu0 %v3487_v13 }
 0xb71   :  { %3910 = vmatpush3.msra.mxu0 %v3487_v13  ;;  %v5061_v13 = vld [vmem:[%s5742_s3 + $0xc8] sm:$0xff] }
 0xb72   :  { %1804 = vrot.lane.b32.xlu1 %v1385_v39, %s4242_s8  ;;  %3911 = vmatprep.subr.mxu0 %v3486_v5 }
 0xb73   :  { %3912 = vmatpush3.msra.mxu0 %v3486_v5 }
 0xb74   :  { %3913 = vmatprep.subr.mxu0 %v3485_v18 }
 0xb75   :  { %3914 = vmatpush3.msra.mxu0 %v3485_v18 }
 0xbdc   :  { %v1799_v56 = vpop.permute.xlu0 %1798 }
 0xbdd   :  { %1807 = vperm.xlu0 %4076, %v1799_v56  }
 0xbe0   :  { %v1801_v61 = vpop.permute.xlu1 %1800  ;;  %v1803_v16 = vpop.permute.xlu0 %1802 }
 0xbe1   :  { %1811 = vperm.xlu1 %4075, %v1801_v61  }
 0xbe4   :  { %v1805_v46 = vpop.permute.xlu1 %1804 }
 0xbe5   :  { %1815 = vperm.xlu1 %4075, %v1803_v16   ;;  %1819 = vperm.xlu0 %4076, %v1805_v46  }
 0xbe9   :  { %4077 = vset.pattern.permute.xlu1 %v5829_v34  ;;  %4078 = vset.pattern.permute.xlu0 %v5829_v34 }
 0xc1c   :  { %v3897_v51 = vpop.f32.mrf.mxu0 }
 0xc1e   :  { %v1757_v2 = vpop.f32.mrf.mxu0 }
 0xc20   :  { %v3900_v40 = vpop.f32.mrf.mxu0 }
 0xc21   :  { %1834 = vrot.lane.b32.xlu0 %v3900_v40, %s4243_s15 }
 0xc22   :  { %v1767_v0 = vpop.f32.mrf.mxu0 }
 0xc23   :  { %1832 = vrot.lane.b32.xlu1 %v1767_v0, %s4243_s15 }
 0xc24   :  { %v3903_v37 = vpop.f32.mrf.mxu0 }
 0xc26   :  { %v1777_v8 = vpop.f32.mrf.mxu0 }
 0xc28   :  { %v3906_v7 = vpop.f32.mrf.mxu0 }
 0xc2a   :  { %v1787_v35 = vpop.f32.mrf.mxu0 }
 0xc58   :  { %v1808_v4 = vpop.permute.xlu0 %1807 }
 0xc59   :  { %v1826_v58 = vmul.f32 %v1808_v4, %v1777_v8 }
 0xc5b   :  { %1840 = vrot.lane.b32.xlu1 %v1826_v58, %s4244_s18 }
 0xc5c   :  { %v1812_v28 = vpop.permute.xlu1 %1811 }
 0xc5d   :  { %v1827_v63 = vmul.f32 %v3903_v37, %v1812_v28 }
 0xc5f   :  { %1842 = vrot.lane.b32.xlu0 %v1827_v63, %s4244_s18 }
 0xc60   :  { %v1820_v3 = vpop.permute.xlu0 %1819  ;;  %v1816_v36 = vpop.permute.xlu1 %1815 }
 0xc61   :  { %v1829_v10 = vmul.f32 %v3906_v7, %v1820_v3  ;;  %v1828_v57 = vmul.f32 %v1816_v36, %v1787_v35 }
 0xc63   :  { %1850 = vrot.lane.b32.xlu0 %v1829_v10, %s4245_s19  ;;  %1848 = vrot.lane.b32.xlu1 %v1828_v57, %s4245_s19 }
 0xc93   :  { %v1835_v9 = vpop.permute.xlu0 %1834 }
 0xc94   :  { %v1855_v48 = vsel %vm5830_vm1, %v3897_v51, %v1835_v9  ;;  %v1869_v51 = vrot.slane %v5061_v13, %v4710_v41  ;;  %vm5839_vm1 = vmmov %vm5837_vm5  ;;  %v3493_v9 = vld [vmem:[%s5742_s3 + $0x98] sm:$0xff] }
 0xc95   :  { %v1833_v24 = vpop.permute.xlu1 %1832 }
 0xc96   :  { %v1854_v39 = vsel %vm5831_vm13, %v1757_v2, %v1833_v24  ;;  %vm5840_vm13 = vmmov %vm5839_vm1  ;;  %v3492_v24 = vld [vmem:[%s5742_s3 + $0x90] sm:$0xff] }
 0xccd   :  { %v1841_v43 = vpop.permute.xlu1 %1840 }
 0xcce   :  { %v1856_v56 = vsel %vm5832_vm0, %v1854_v39, %v1841_v43  ;;  %vm5841_vm0 = vmmov %vm5839_vm1  ;;  %v3491_v43 = vld [vmem:[%s5742_s3 + $0x88] sm:$0xff]  ;;  %v3498_v39 = vld [vmem:[%s5742_s3 + $0xb0] sm:$0xff] }
 0xcd1   :  { %v1843_v26 = vpop.permute.xlu0 %1842 }
 0xcd2   :  { %v1857_v61 = vsel %vm5833_vm3, %v1855_v48, %v1843_v26  ;;  %v3500_v26 = vld [vmem:[%s5742_s3 + $0xc0] sm:$0xff]  ;;  %v3499_v48 = vld [vmem:[%s5742_s3 + $0xb8] sm:$0xff]  ;;  %vm5842_vm3 = vmmov %vm5841_vm0 }
 0xcd3   :  { %3929 = vmatprep.subr.mxu1 %v3500_v26 }
 0xcd4   :  { %3930 = vmatpush3.msra.mxu1 %v3500_v26 }
 0xcd5   :  { %v1851_v16 = vpop.permute.xlu0 %1850  ;;  %v1849_v46 = vpop.permute.xlu1 %1848  ;;  %3931 = vmatprep.subr.mxu1 %v3499_v48 }
 0xcd6   :  { %v1859_v34 = vsel %vm5834_vm15, %v1857_v61, %v1851_v16  ;;  %v1858_v30 = vsel %vm5835_vm2, %v1856_v56, %v1849_v46  ;;  %3932 = vmatpush3.msra.mxu1 %v3499_v48  ;;  %vm5843_vm15 = vmmov %vm5841_vm0 }
 0xcd7   :  { %3915 = vmatprep.mubr.msk.f32.mxu0 %vm5836_vm12, %v1858_v30  ;;  %3933 = vmatprep.subr.mxu1 %v3498_v39  ;;  %vm5844_vm2 = vmmov %vm5841_vm0 }
 0xcd8   :  { %3916 = vmatmul.mubr.msk.f32.vlgmr.msra.gmra.mxu0 %vm5837_vm5, %v1859_v34  ;;  %3934 = vmatpush3.msra.mxu1 %v3498_v39  ;;  %vm5845_vm12 = vmmov %vm5841_vm0 }
 0xcd9   :  { %vm5846_vm5 = vmmov %vm5841_vm0 }
 0xd98   :  { %v3917_v2 = vpop.f32.mrf.mxu0 }
 0xd99   :  { %v1948_v40 = vadd.f32 %v3917_v2, %v1869_v51  ;;  %v1982_v2 = vrot.slane %v5061_v13, %v4741_v53 }
 0xd9a   :  { %v1942_v0 = vpop.f32.mrf.mxu0 }
 0xd9b   :  { %v1952_v5 = vadd.f32 %v1948_v40, %v4777_v33  ;;  %v1943_v18 = vadd.f32 %v1942_v0, %v1869_v51 }
 0xd9d   :  { %v1951_v37 = vadd.f32 %v1943_v18, %v4757_v11  ;;  %v1956_v8 = vsel %vm5838_vm8, %v1952_v5, 0.0  ;;  %v3494_v11 = vld [vmem:[%s5742_s3 + $0xa0] sm:$0xff]  ;;  %vm5847_vm8 = vmmov %vm5841_vm0 }
 0xd9e   :  { %1957 = vadd.xlane.f32.xlu0 %v1956_v8  ;;  %3918 = vmatprep.subr.mxu0 %v3494_v11 }
 0xd9f   :  { %v1953_v4 = vsel %vm5839_vm1, %v1951_v37, 0.0  ;;  %3919 = vmatpush3.msra.mxu0 %v3494_v11  ;;  %vm5848_vm1 = vmmov %vm5841_vm0 }
 0xda0   :  { %1954 = vadd.xlane.f32.xlu1 %v1953_v4  ;;  %3920 = vmatprep.subr.mxu0 %v3493_v9 }
 0xda1   :  { %3921 = vmatpush3.msra.mxu0 %v3493_v9 }
 0xda2   :  { %3922 = vmatprep.subr.mxu0 %v3492_v24 }
 0xda3   :  { %3923 = vmatpush3.msra.mxu0 %v3492_v24 }
 0xda4   :  { %3924 = vmatprep.subr.mxu0 %v3491_v43 }
 0xda5   :  { %3925 = vmatpush3.msra.mxu0 %v3491_v43 }
 0xe27   :  { %v1958_v58 = vpop.xlane.xlu0 %1957 }
 0xe28   :  { %v1960_v7 = vmul.f32 0.03125, %v1958_v58 }
 0xe29   :  { %v1955_v28 = vpop.xlane.xlu1 %1954 }
 0xe2a   :  { %v1962_v63 = vsub.f32 %v1952_v5, %v1960_v7  ;;  %v1959_v35 = vmul.f32 0.03125, %v1955_v28  ;;  %v3497_v7 = vld [vmem:[%s5742_s3 + $0xa8] sm:$0xff]  ;;  %v1998_v28 = vrot.slane %v5061_v13, %v4794_v15 }
 0xe2b   :  { %3935 = vmatprep.subr.mxu1 %v3497_v7 }
 0xe2c   :  { %v1961_v3 = vsub.f32 %v1951_v37, %v1959_v35  ;;  %v1964_v36 = vmul.f32 %v1962_v63, %v1962_v63  ;;  %v1988_v37 = vrot.slane %v5061_v13, %v4746_v14  ;;  %3936 = vmatpush3.msra.mxu1 %v3497_v7 }
 0xe2e   :  { %v1968_v10 = vsel %vm5840_vm13, %v1964_v36, 0.0  ;;  %v1963_v57 = vmul.f32 %v1961_v3, %v1961_v3  ;;  %vm5849_vm13 = vmmov %vm5841_vm0 }
 0xe2f   :  { %1969 = vadd.xlane.f32.xlu1 %v1968_v10 }
 0xe30   :  { %v1965_v33 = vsel %vm5841_vm0, %v1963_v57, 0.0 }
 0xe31   :  { %1966 = vadd.xlane.f32.xlu0 %v1965_v33  ;;  %v5106_v33 = vsub.s32 2, %v4391_v38 }
 0xe33   :  { %v2089_v11 = vrot.slane %v5061_v13, %v5106_v33 }
 0xeb8   :  { %v1970_v56 = vpop.xlane.xlu1 %1969 }
 0xeb9   :  { %v1972_v61 = vmul.f32 0.03125, %v1970_v56 }
 0xeba   :  { %v1967_v16 = vpop.xlane.xlu0 %1966 }
 0xebb   :  { %v1974_v46 = vadd.f32 1e-05, %v1972_v61  ;;  %v1971_v34 = vmul.f32 0.03125, %v1967_v16 }
 0xebd   :  { %4166 = vrsqrt.f32 %v1974_v46  ;;  %v1973_v30 = vadd.f32 1e-05, %v1971_v34 }
 0xebf   :  { %4168 = vrsqrt.f32 %v1973_v30 }
 0xeca   :  { %v4167_v51 = vpop.eup %4166 }
 0xecb   :  { %v1978_v40 = vmul.f32 %v4167_v51, %v1962_v63 }
 0xecc   :  { %v4169_v0 = vpop.eup %4168 }
 0xecd   :  { %v1977_v5 = vmul.f32 %v4169_v0, %v1961_v3  ;;  %v1984_v18 = vmul.f32 %v1982_v2, %v1978_v40 }
 0xecf   :  { %v1983_v8 = vmul.f32 %v1982_v2, %v1977_v5  ;;  %v1990_v58 = vadd.f32 %v1988_v37, %v1984_v18 }
 0xed1   :  { %v1989_v4 = vadd.f32 %v1988_v37, %v1983_v8  ;;  %v3506_v37 = vld [vmem:[%s5740_s2 + $0x68] sm:$0xff]  ;;  %v3505_v8 = vld [vmem:[%s5740_s2 + $0x60] sm:$0xff] }
 0xed2   :  { %3940 = vmatprep.subr.mxu0 %v3506_v37  ;;  %3951 = vmatprep.subr.mxu1 %v3506_v37 }
 0xed3   :  { %3926 = vmatprep.mubr.msk.f32.mxu0 %vm5842_vm3, %v1989_v4  ;;  %vm5850_vm3 = vmmov %vm5841_vm0 }
 0xed4   :  { %3927 = vmatmul.mubr.msk.f32.vlgmr.msra.gmra.mxu0 %vm5843_vm15, %v1990_v58  ;;  %vm5851_vm15 = vcmask 64512  }
 0xed5   :  { %3941 = vmatpush3.msra.mxu0 %v3506_v37 }
 0xed6   :  { %3942 = vmatprep.subr.mxu0 %v3505_v8 }
 0xed7   :  { %3943 = vmatpush3.msra.mxu0 %v3505_v8 }
 0xf94   :  { %v3928_v63 = vpop.f32.mrf.mxu0 }
 0xf95   :  { %v2077_v35 = vadd.f32 %v3928_v63, %v1998_v28 }
 0xf96   :  { %v2071_v3 = vpop.f32.mrf.mxu0 }
 0xf97   :  { %v2072_v36 = vadd.f32 %v2071_v3, %v1998_v28  ;;  %v2081_v57 = vmax.f32 %v2077_v35, 0.0 }
 0xf99   :  { %v2080_v10 = vmax.f32 %v2072_v36, 0.0 }
 0xf9b   :  { %3937 = vmatprep.mubr.msk.f32.mxu1 %vm5844_vm2, %v2080_v10  ;;  %v5127_v10 = vsub.s32 5, %v4391_v38  ;;  %vm5852_vm2 = vmmov %vm5841_vm0 }
 0xf9c   :  { %3938 = vmatmul.mubr.msk.f32.vlgmr.msra.gmra.mxu1 %vm5845_vm12, %v2081_v57  ;;  %vm5853_vm12 = vmmov %vm5841_vm0 }
 0xf9d   :  { %3952 = vmatpush3.msra.mxu1 %v3506_v37 }
 0xf9e   :  { %3953 = vmatprep.subr.mxu1 %v3505_v8 }
 0xf9f   :  { %3954 = vmatpush3.msra.mxu1 %v3505_v8 }
0x105c   :  { %v3939_v9 = vpop.f32.mrf.mxu1 }
0x105d   :  { %v2168_v24 = vadd.f32 %v3939_v9, %v2089_v11  ;;  %v2202_v9 = vrot.slane %v5061_v13, %v5127_v10 }
0x105e   :  { %v2162_v43 = vpop.f32.mrf.mxu1 }
0x105f   :  { %v2172_v26 = vadd.f32 %v2168_v24, %v1990_v58  ;;  %v2163_v48 = vadd.f32 %v2162_v43, %v2089_v11  ;;  %v3503_v58 = vld [vmem:[%s5740_s2 + $0x50] sm:$0xff]  ;;  %v5130_v11 = vsub.s32 6, %v4391_v38 }
0x1060   :  { %v5147_v38 = vld [vmem:[%s5740_s2 + $0x70] ss:$0 sm:$0xff] }
0x1061   :  { %v2171_v39 = vadd.f32 %v2163_v48, %v1989_v4  ;;  %v2176_v56 = vsel %vm5846_vm5, %v2172_v26, 0.0  ;;  %v3504_v4 = vld [vmem:[%s5740_s2 + $0x58] sm:$0xff]  ;;  %vm5854_vm5 = vmmov %vm5841_vm0 }
0x1062   :  { %2177 = vadd.xlane.f32.xlu1 %v2176_v56  ;;  %3944 = vmatprep.subr.mxu0 %v3504_v4 }
0x1063   :  { %v2173_v61 = vsel %vm5847_vm8, %v2171_v39, 0.0  ;;  %3955 = vmatprep.subr.mxu1 %v3504_v4  ;;  %3945 = vmatpush3.msra.mxu0 %v3504_v4  ;;  %vm5855_vm8 = vcmask 802560  }
0x1064   :  { %2174 = vadd.xlane.f32.xlu0 %v2173_v61  ;;  %3956 = vmatpush3.msra.mxu1 %v3504_v4 }
0x1065   :  { %3946 = vmatprep.subr.mxu0 %v3503_v58  ;;  %3957 = vmatprep.subr.mxu1 %v3503_v58 }
0x1066   :  { %3947 = vmatpush3.msra.mxu0 %v3503_v58  ;;  %3958 = vmatpush3.msra.mxu1 %v3503_v58 }
0x10eb   :  { %v2178_v16 = vpop.xlane.xlu1 %2177 }
0x10ec   :  { %v2180_v46 = vmul.f32 0.03125, %v2178_v16 }
0x10ed   :  { %v2175_v34 = vpop.xlane.xlu0 %2174 }
0x10ee   :  { %v2182_v30 = vsub.f32 %v2172_v26, %v2180_v46  ;;  %v2179_v51 = vmul.f32 0.03125, %v2175_v34 }
0x10f0   :  { %v2181_v2 = vsub.f32 %v2171_v39, %v2179_v51  ;;  %v2184_v40 = vmul.f32 %v2182_v30, %v2182_v30  ;;  %v2208_v39 = vrot.slane %v5061_v13, %v5130_v11  ;;  %v5172_v51 = vld [vmem:[%s5742_s3 + $0x60] sm:$0xff] }
0x10f2   :  { %v2188_v0 = vsel %vm5848_vm1, %v2184_v40, 0.0  ;;  %v2183_v5 = vmul.f32 %v2181_v2, %v2181_v2  ;;  %vm5856_vm1 = vmmov %vm5841_vm0 }
0x10f3   :  { %2189 = vadd.xlane.f32.xlu1 %v2188_v0 }
0x10f4   :  { %v2185_v18 = vsel %vm5849_vm13, %v2183_v5, 0.0  ;;  %vm5857_vm13 = vmmov %vm5855_vm8 }
0x10f5   :  { %2186 = vadd.xlane.f32.xlu0 %v2185_v18 }
0x117c   :  { %v2190_v7 = vpop.xlane.xlu1 %2189 }
0x117d   :  { %v2192_v28 = vmul.f32 0.03125, %v2190_v7 }
0x117e   :  { %v2187_v63 = vpop.xlane.xlu0 %2186 }
0x117f   :  { %v2194_v35 = vadd.f32 1e-05, %v2192_v28  ;;  %v2191_v3 = vmul.f32 0.03125, %v2187_v63 }
0x1181   :  { %4170 = vrsqrt.f32 %v2194_v35  ;;  %v2193_v36 = vadd.f32 1e-05, %v2191_v3 }
0x1183   :  { %4172 = vrsqrt.f32 %v2193_v36 }
0x118e   :  { %v4171_v57 = vpop.eup %4170 }
0x118f   :  { %v2198_v24 = vmul.f32 %v4171_v57, %v2182_v30 }
0x1190   :  { %v4173_v43 = vpop.eup %4172 }
0x1191   :  { %v2197_v26 = vmul.f32 %v4173_v43, %v2181_v2  ;;  %v2204_v48 = vmul.f32 %v2202_v9, %v2198_v24  ;;  %v1067_v2 = vrot.slane %v5172_v51, %v5106_v33 }
0x1193   :  { %v2203_v56 = vmul.f32 %v2202_v9, %v2197_v26  ;;  %v5138_v16 = vadd.f32 %v2208_v39, %v2204_v48  ;;  %v1146_v40 = vadd.f32 %v4895_v12, %v1067_v2  ;;  %v1141_v5 = vadd.f32 %v4897_v17, %v1067_v2 }
0x1195   :  { %v5136_v61 = vadd.f32 %v2208_v39, %v2203_v56  ;;  %v1150_v0 = vadd.f32 %v1146_v40, %v4752_v31  ;;  %v1149_v37 = vadd.f32 %v1141_v5, %v4750_v20 }
0x1197   :  { %3948 = vmatprep.mubr.msk.f32.mxu0 %vm5841_vm0, %v5136_v61  ;;  %v1154_v18 = vsel %vm5852_vm2, %v1150_v0, 0.0  ;;  %v1151_v8 = vsel %vm5853_vm12, %v1149_v37, 0.0  ;;  %vm5858_vm0 = vmmov %vm5851_vm15 }
0x1198   :  { %3949 = vmatmul.mubr.msk.f32.vlgmr.msra.gmra.mxu0 %vm5850_vm3, %v5138_v16  ;;  %vm5859_vm3 = vmmov %vm5858_vm0 }
0x1199   :  { %vm5861_vm2 = vmmov %vm5858_vm0 }
0x119a   :  { %vm5862_vm12 = vmmov %vm5858_vm0 }
0x119b   :  { %vm5876_vm14 = vmmov %vm5858_vm0 }
0x1258   :  { %v3950_v46 = vpop.f32.mrf.mxu0 }
0x1259   :  { %v5150_v34 = vadd.f32 %v3950_v46, %v5147_v38 }
0x125a   :  { %v2293_v13 = vpop.f32.mrf.mxu0 }
0x125b   :  { %v5153_v30 = vadd.f32 %v5147_v38, %v2293_v13  ;;  %2314 = vrot.lane.b32.xlu0 %v5150_v34, %s4232_s1  ;;  %v2414_v48 = vsel %vm5857_vm13, %v5150_v34, -inf  ;;  %vm5866_vm13 = vmmov %vm5858_vm0 }
0x125d   :  { %2312 = vrot.lane.b32.xlu1 %v5153_v30, %s4232_s1  ;;  %3978 = vmatprep.mubr.msk.f32.mxu0 %vm5851_vm15, %v5153_v30  ;;  %v2411_v24 = vsel %vm5855_vm8, %v5153_v30, -inf  ;;  %vm5860_vm15 = vmmov %vm5858_vm0 }
0x125e   :  { %vm5864_vm8 = vmmov %vm5858_vm0 }
0x125f   :  { %2308 = vrot.lane.b32.xlu0 %v5153_v30, %s4231_s29 }
0x1261   :  { %2310 = vrot.lane.b32.xlu1 %v5150_v34, %s4231_s29 }
0x1263   :  { %2304 = vrot.lane.b32.xlu0 %v5153_v30, %s4233_s30 }
0x1265   :  { %2306 = vrot.lane.b32.xlu1 %v5150_v34, %s4233_s30 }
0x1282   :  { %1155 = vadd.xlane.f32.xlu0 %v1154_v18 }
0x1289   :  { %1152 = vadd.xlane.f32.xlu1 %v1151_v8 }
0x12cd   :  { %v2315_v4 = vpop.permute.xlu0 %2314 }
0x12ce   :  { %2517 = vrot.lane.b32.xlu0 %v2315_v4, %s4234_s5 }
0x12cf   :  { %v2313_v58 = vpop.permute.xlu1 %2312 }
0x12d0   :  { %2515 = vrot.lane.b32.xlu1 %v2313_v58, %s4234_s5 }
0x12d1   :  { %v2309_v7 = vpop.permute.xlu0 %2308 }
0x12d2   :  { %2511 = vrot.lane.b32.xlu0 %v2309_v7, %s4234_s5 }
0x12d3   :  { %v2311_v31 = vpop.permute.xlu1 %2310 }
0x12d4   :  { %2513 = vrot.lane.b32.xlu1 %v2311_v31, %s4234_s5 }
0x12d5   :  { %v2305_v12 = vpop.permute.xlu0 %2304 }
0x12d6   :  { %2507 = vrot.lane.b32.xlu0 %v2305_v12, %s4234_s5 }
0x12d7   :  { %v2307_v17 = vpop.permute.xlu1 %2306 }
0x12d8   :  { %2509 = vrot.lane.b32.xlu1 %v2307_v17, %s4234_s5 }
0x12da   :  { %2503 = vrot.lane.b32.xlu0 %v5153_v30, %s4234_s5 }
0x12dc   :  { %2505 = vrot.lane.b32.xlu1 %v5150_v34, %s4234_s5 }
0x130b   :  { %v1156_v20 = vpop.xlane.xlu0 %1155 }
0x130c   :  { %v1158_v28 = vmul.f32 0.03125, %v1156_v20 }
0x130e   :  { %v1160_v63 = vsub.f32 %v1150_v0, %v1158_v28 }
0x1310   :  { %v1162_v35 = vmul.f32 %v1160_v63, %v1160_v63 }
0x1312   :  { %v1153_v3 = vpop.xlane.xlu1 %1152  ;;  %v1166_v36 = vsel %vm5854_vm5, %v1162_v35, 0.0  ;;  %vm5863_vm5 = vmmov %vm5858_vm0 }
0x1313   :  { %v1157_v57 = vmul.f32 0.03125, %v1153_v3  ;;  %1167 = vadd.xlane.f32.xlu0 %v1166_v36 }
0x1315   :  { %v1159_v9 = vsub.f32 %v1149_v37, %v1157_v57 }
0x1317   :  { %2412 = vmax.xlane.f32.xlu0 %v2411_v24  ;;  %v1161_v43 = vmul.f32 %v1159_v9, %v1159_v9 }
0x1319   :  { %v1163_v26 = vsel %vm5856_vm1, %v1161_v43, 0.0  ;;  %vm5865_vm1 = vmmov %vm5858_vm0 }
0x131a   :  { %1164 = vadd.xlane.f32.xlu1 %v1163_v26 }
0x131e   :  { %2415 = vmax.xlane.f32.xlu1 %v2414_v48 }
0x1340   :  { %v2518_v39 = vpop.permute.xlu0 %2517 }
0x1341   :  { %3962 = vmatprep.subr.msk.mxu0 %vm5858_vm0, %v2518_v39 }
0x1342   :  { %3963 = vmatpush3.xpose.msk.msra.mxu0 %vm5859_vm3, %v2518_v39  ;;  %v2516_v56 = vpop.permute.xlu1 %2515  ;;  %vm5867_vm3 = vmmov %vm5858_vm0 }
0x1343   :  { %3964 = vmatprep.subr.msk.mxu0 %vm5860_vm15, %v2516_v56  ;;  %vm5868_vm15 = vmmov %vm5858_vm0 }
0x1344   :  { %v2512_v13 = vpop.permute.xlu0 %2511 }
0x1346   :  { %3965 = vmatpush3.xpose.msk.msra.mxu0 %vm5861_vm2, %v2516_v56  ;;  %v2514_v46 = vpop.permute.xlu1 %2513  ;;  %vm5869_vm2 = vmmov %vm5858_vm0 }
0x1347   :  { %3966 = vmatprep.subr.msk.mxu0 %vm5862_vm12, %v2514_v46  ;;  %vm5870_vm12 = vmmov %vm5858_vm0 }
0x1348   :  { %v2508_v40 = vpop.permute.xlu0 %2507 }
0x134a   :  { %3967 = vmatpush3.xpose.msk.msra.mxu0 %vm5863_vm5, %v2514_v46  ;;  %v2510_v2 = vpop.permute.xlu1 %2509  ;;  %vm5871_vm5 = vmmov %vm5858_vm0 }
0x134b   :  { %3968 = vmatprep.subr.msk.mxu0 %vm5864_vm8, %v2512_v13  ;;  %vm5872_vm8 = vmmov %vm5858_vm0 }
0x134c   :  { %v2504_v5 = vpop.permute.xlu0 %2503 }
0x134e   :  { %3969 = vmatpush3.xpose.msk.msra.mxu0 %vm5865_vm1, %v2512_v13  ;;  %v2506_v0 = vpop.permute.xlu1 %2505  ;;  %vm5873_vm1 = vmmov %vm5858_vm0 }
0x134f   :  { %3970 = vmatprep.subr.msk.mxu0 %vm5866_vm13, %v2510_v2  ;;  %vm5874_vm13 = vmmov %vm5858_vm0 }
0x1352   :  { %3971 = vmatpush3.xpose.msk.msra.mxu0 %vm5858_vm0, %v2510_v2 }
0x1353   :  { %3972 = vmatprep.subr.msk.mxu0 %vm5867_vm3, %v2508_v40  ;;  %vm5875_vm3 = vmmov %vm5858_vm0 }
0x1356   :  { %3973 = vmatpush3.xpose.msk.msra.mxu0 %vm5868_vm15, %v2508_v40  ;;  %vm5877_vm15 = vmmov %vm5858_vm0 }
0x1357   :  { %3974 = vmatprep.subr.msk.mxu0 %vm5869_vm2, %v2506_v0  ;;  %vm5878_vm2 = vmmov %vm5858_vm0 }
0x135a   :  { %3975 = vmatpush3.xpose.msk.msra.mxu0 %vm5870_vm12, %v2506_v0 }
0x135b   :  { %3976 = vmatprep.subr.msk.mxu0 %vm5871_vm5, %v2504_v5  ;;  %vm75_vm5 = vcmp.lt.s32.totalorder %v4402_v44, %v4396_v42 }
0x135e   :  { %3977 = vmatpush3.xpose.msk.msra.mxu0 %vm5872_vm8, %v2504_v5  ;;  %vm91_vm8 = vcmp.eq.s32.totalorder %v4396_v42, 0 }
0x1361   :  { %3979 = vmatmul.mubr.msk.f32.vlgmr.msra.gmra.mxu0 %vm5873_vm1, %v5150_v34  ;;  %vm74_vm1 = vcmp.lt.s32.totalorder %v4402_v44, %v4415_v49 }
0x1362   :  { %3981 = vmatprep.mubr.msk.f32.mxu0 %vm5874_vm13, %v2305_v12  ;;  %vm5263_vm13 = vmand %vm4407_vm4, %vm75_vm5 }
0x1365   :  { %3982 = vmatmul.mubr.msk.f32.gmra.mxu0 %vm5858_vm0, %v2307_v17  ;;  %v1180_v17 = vrot.slane %v5172_v51, %v5127_v10  ;;  %vm90_vm0 = vcmp.eq.s32.totalorder %v4415_v49, 0 }
0x1366   :  { %3984 = vmatprep.mubr.msk.f32.mxu0 %vm5875_vm3, %v2309_v7  ;;  %vm5270_vm3 = vmand %vm4407_vm4, %vm91_vm8  ;;  %vm76_vm8 = vcmp.lt.s32.totalorder %v4402_v44, %v4429_v55 }
0x1369   :  { %3985 = vmatmul.mubr.msk.f32.gmra.mxu0 %vm5876_vm14, %v2311_v31  ;;  %vm5879_vm14 = vcmask 261120  }
0x136a   :  { %3987 = vmatprep.mubr.msk.f32.mxu0 %vm5877_vm15, %v2313_v58  ;;  %v1186_v58 = vrot.slane %v5172_v51, %v5130_v11  ;;  %vm5880_vm12 = vmmov %vm5879_vm14  ;;  %vm77_vm15 = vcmp.lt.s32.totalorder %v4402_v44, %v4419_v52 }
0x136b   :  { %vm5293_vm4 = vmand %vm4436_vm9, %vm77_vm15  ;;  %vm79_vm15 = vcmp.lt.s32.totalorder %v4402_v44, %v4449_v62 }
0x136d   :  { %3988 = vmatmul.mubr.msk.f32.gmra.mxu0 %vm5878_vm2, %v2315_v4  ;;  %vm5278_vm2 = vmand %vm4423_vm7, %vm74_vm1  ;;  %vm95_vm1 = vcmp.eq.s32.totalorder %v4449_v62, 0 }
0x139c   :  { %v1168_v18 = vpop.xlane.xlu0 %1167 }
0x139d   :  { %v1170_v37 = vmul.f32 0.03125, %v1168_v18 }
0x139f   :  { %v1172_v8 = vadd.f32 1e-05, %v1170_v37 }
0x13a0   :  { %v2413_v26 = vpop.xlane.xlu0 %2412 }
0x13a1   :  { %4174 = vrsqrt.f32 %v1172_v8  ;;  %v2417_v48 = vsub.f32 %v5153_v30, %v2413_v26  ;;  %v5891_v8 = vmov 0 }
0x13a3   :  { %v1165_v20 = vpop.xlane.xlu1 %1164  ;;  %v2419_v56 = vmul.f32 1.442695, %v2417_v48 }
0x13a4   :  { %v1169_v28 = vmul.f32 0.03125, %v1165_v20 }
0x13a6   :  { %v1171_v35 = vadd.f32 1e-05, %v1169_v28  ;;  %v3392_v28 = vsel %vm5263_vm13, 1.0, %v5824_v29 }
0x13a7   :  { %v2416_v43 = vpop.xlane.xlu1 %2415 }
0x13a8   :  { %4176 = vrsqrt.f32 %v1171_v35 }
0x13ae   :  { %v4175_v3 = vpop.eup %4174 }
0x13af   :  { %v1176_v12 = vmul.f32 %v4175_v3, %v1160_v63  ;;  %v2418_v63 = vsub.f32 %v5150_v34, %v2416_v43 }
0x13b1   :  { %v1182_v31 = vmul.f32 %v1180_v17, %v1176_v12  ;;  %v2421_v39 = vmul.f32 1.442695, %v2418_v63 }
0x13b3   :  { %v1188_v24 = vadd.f32 %v1186_v58, %v1182_v31  ;;  %4178 = vpow2.f32 %v2421_v39 }
0x13b4   :  { %4180 = vpow2.f32 %v2419_v56 }
0x13b5   :  { %v4177_v7 = vpop.eup %4176 }
0x13b6   :  { %v1175_v36 = vmul.f32 %v4177_v7, %v1159_v9 }
0x13b8   :  { %v1181_v4 = vmul.f32 %v1180_v17, %v1175_v36  ;;  %v3391_v17 = vsel %vm5278_vm2, 1.0, %v5824_v29 }
0x13ba   :  { %v1187_v57 = vadd.f32 %v1186_v58, %v1181_v4  ;;  %v3394_v4 = vsel %vm5293_vm4, 1.0, %v5824_v29 }
0x13bc   :  { %3959 = vmatprep.mubr.msk.f32.mxu1 %vm5879_vm14, %v1187_v57  ;;  %vm93_vm14 = vcmp.eq.s32.totalorder %v4419_v52, 0 }
0x13bd   :  { %3960 = vmatmul.mubr.msk.f32.vlgmr.msra.gmra.mxu1 %vm5880_vm12, %v1188_v24  ;;  %vm5285_vm12 = vmand %vm4423_vm7, %vm90_vm0  ;;  %vm78_vm7 = vcmp.lt.s32.totalorder %v4402_v44, %v4453_v1  ;;  %v5903_v24 = vmov -1e+09  }
0x13be   :  { %vm5299_vm5 = vmand %vm4436_vm9, %vm93_vm14  ;;  %vm92_vm9 = vcmp.eq.s32.totalorder %v4429_v55, 0 }
0x13bf   :  { %v5892_v8 = vsel %vm5299_vm5, 4294967295, %v5891_v8  ;;  %vm5329_vm14 = vmand %vm4443_vm11, %vm76_vm8  ;;  %vm94_vm5 = vcmp.eq.s32.totalorder %v4453_v1, 0 }
0x13c0   :  { %vm5338_vm0 = vmand %vm4443_vm11, %vm92_vm9  ;;  %v3393_v48 = vsel %vm5329_vm14, 1.0, %v5824_v29 }
0x13c1   :  { %vm5349_vm8 = vmand %vm4471_vm6, %vm79_vm15  ;;  %vm5908_vm15 = vcmask 15360  }
0x13c2   :  { %vm5358_vm11 = vmand %vm4471_vm6, %vm95_vm1 }
0x13c3   :  { %vm5367_vm9 = vmand %vm4478_vm10, %vm78_vm7 }
0x13c4   :  { %vm5904_vm6 = vmor %vm5263_vm13, %vm5270_vm3  ;;  %vm81_vm13 = vcmp.lt.s32.totalorder %v4402_v44, %v4484_v23  ;;  %vm97_vm3 = vcmp.eq.s32.totalorder %v4484_v23, 0  ;;  %v3395_v37 = vsel %vm5367_vm9, 1.0, %v5824_v29 }
0x13c5   :  { %v139_v19 = vsel %vm5904_vm6, 0.0, %v5903_v24  ;;  %vm5381_vm1 = vmand %vm4478_vm10, %vm94_vm5  ;;  %vm5914_vm6 = vcmask 15360  }
0x13c6   :  { %vm132_vm7 = vmor %vm5329_vm14, %vm5338_vm0  ;;  %vm5921_vm0 = vcmp.eq.s32.totalorder %v4546_v25, 0 }
0x13c7   :  { %vm5907_vm10 = vmor %vm5278_vm2, %vm5285_vm12  ;;  %vm80_vm12 = vcmp.lt.s32.totalorder %v4402_v44, %v4546_v25  ;;  %vm5911_vm2 = vnez %v5782_v32 }
0x13c8   :  { %v138_v56 = vsel %vm5907_vm10, 0.0, %v5903_v24  ;;  %vm5909_vm10 = vnez %v5892_v8  ;;  %vm5429_vm5 = vmand %vm5911_vm2, %vm81_vm13  ;;  %vm5917_vm13 = vnez %v5784_v27 }
0x13c9   :  { %v3398_v55 = vsel %vm5429_vm5, 1.0, %v5824_v29  ;;  %vm5469_vm14 = vmand %vm5917_vm13, %vm5921_vm0 }
0x1421   :  { %v3980_v30 = vpop.f32.mrf.mxu0 }
0x1422   :  { %v2657_v20 = vmul.f32 0.35355338, %v3980_v30 }
0x1423   :  { %v2617_v2 = vpop.f32.mrf.mxu0 }
0x1424   :  { %v2656_v3 = vmul.f32 0.35355338, %v2617_v2  ;;  %v2665_v36 = vmul.f32 %v3392_v28, %v2657_v20 }
0x1425   :  { %v3983_v40 = vpop.f32.mrf.mxu0 }
0x1426   :  { %v2659_v31 = vmul.f32 0.35355338, %v3983_v40  ;;  %v2664_v43 = vmul.f32 %v3391_v17, %v2656_v3  ;;  %v5406_v2 = vadd.f32 %v2665_v36, %v139_v19  ;;  %v3396_v40 = vsel %vm5349_vm8, 1.0, %v5824_v29 }
0x1427   :  { %v2627_v47 = vpop.f32.mrf.mxu0  ;;  %v140_v3 = vsel %vm132_vm7, 0.0, %v5903_v24  ;;  %vm5924_vm7 = vmor %vm5349_vm8, %vm5358_vm11 }
0x1428   :  { %v2658_v26 = vmul.f32 0.35355338, %v2627_v47  ;;  %v2672_v20 = vadd.f32 %v2664_v43, %v138_v56  ;;  %v143_v12 = vsel %vm5924_vm7, 0.0, %v5903_v24  ;;  %vm5926_vm8 = vmor %vm5367_vm9, %vm5381_vm1 }
0x1429   :  { %v3986_v54 = vpop.f32.mrf.mxu0  ;;  %v142_v62 = vsel %vm5926_vm8, 0.0, %v5903_v24 }
0x142a   :  { %v2666_v42 = vmul.f32 %v3393_v48, %v2658_v26 }
0x142b   :  { %v2637_v60 = vpop.f32.mrf.mxu0 }
0x142c   :  { %v2660_v49 = vmul.f32 0.35355338, %v2637_v60 }
0x142d   :  { %v3989_v39 = vpop.f32.mrf.mxu0 }
0x142e   :  { %v2663_v60 = vmul.f32 0.35355338, %v3989_v39 }
0x142f   :  { %v2647_v28 = vpop.f32.mrf.mxu0 }
0x1430   :  { %v2662_v25 = vmul.f32 0.35355338, %v2647_v28  ;;  %v2671_v58 = vmul.f32 %v3398_v55, %v2663_v60 }
0x147d   :  { %v3961_v9 = vpop.f32.mrf.mxu1 }
0x147e   :  { %v5231_v46 = vadd.f32 %v3961_v9, %v5147_v38  ;;  %v2667_v9 = vmul.f32 %v3394_v4, %v2659_v31  ;;  %v2668_v31 = vmul.f32 %v3395_v37, %v2660_v49  ;;  %v2674_v4 = vadd.f32 %v2666_v42, %v140_v3 }
0x147f   :  { %v2388_v51 = vpop.f32.mrf.mxu1 }
0x1480   :  { %v5234_v13 = vadd.f32 %v5147_v38, %v2388_v51  ;;  %2409 = vrot.lane.b32.xlu1 %v5231_v46, %s4232_s1  ;;  %v5248_v38 = vpop.eup %4178  ;;  %v2661_v51 = vmul.f32 0.35355338, %v3986_v54  ;;  %v2676_v57 = vadd.f32 %v2668_v31, %v142_v62 }
0x1481   :  { %v5252_v34 = vpop.eup %4180 }
0x1482   :  { %2407 = vrot.lane.b32.xlu0 %v5234_v13, %s4232_s1  ;;  %v2669_v17 = vmul.f32 %v3396_v40, %v2661_v51 }
0x1484   :  { %2405 = vrot.lane.b32.xlu1 %v5231_v46, %s4231_s29  ;;  %v2677_v26 = vadd.f32 %v2669_v17, %v143_v12 }
0x1486   :  { %2403 = vrot.lane.b32.xlu0 %v5234_v13, %s4231_s29 }
0x1488   :  { %2401 = vrot.lane.b32.xlu1 %v5231_v46, %s4233_s30 }
0x148a   :  { %2399 = vrot.lane.b32.xlu0 %v5234_v13, %s4233_s30 }
0x148c   :  { %2427 = vrot.lane.b32.xlu1 %v5248_v38, %s4235_s6 }
0x148e   :  { %2425 = vrot.lane.b32.xlu0 %v5252_v34, %s4235_s6 }
0x14f2   :  { %v5289_v18 = vpop.permute.xlu1 %2409 }
0x14f4   :  { %v5303_v52 = vpop.permute.xlu0 %2407 }
0x14f6   :  { %v5316_v59 = vpop.permute.xlu1 %2405 }
0x14f8   :  { %v5334_v35 = vpop.permute.xlu0 %2403 }
0x14fa   :  { %v5354_v7 = vpop.permute.xlu1 %2401 }
0x14fc   :  { %v5371_v1 = vpop.permute.xlu0 %2399 }
0x14fe   :  { %v2428_v21 = vpop.permute.xlu1 %2427 }
0x14ff   :  { %v2434_v30 = vsel %vm5908_vm15, %v2428_v21, 0.0  ;;  %vm5910_vm15 = vmor %vm5293_vm4, %vm5909_vm10 }
0x1500   :  { %2435 = vadd.xlane.f32.xlu1 %v2434_v30  ;;  %v2426_v0 = vpop.permute.xlu0 %2425  ;;  %v141_v5 = vsel %vm5910_vm15, 0.0, %v5903_v24  ;;  %vm5441_vm4 = vmand %vm5911_vm2, %vm97_vm3  ;;  %vm5920_vm2 = vcmask 523264  }
0x1501   :  { %v2431_v54 = vsel %vm5914_vm6, %v2426_v0, 0.0  ;;  %vm5456_vm3 = vmand %vm5917_vm13, %vm80_vm12  ;;  %v2683_v32 = vsel %vm5920_vm2, %v5406_v2, -inf  ;;  %v2675_v36 = vadd.f32 %v2667_v9, %v141_v5 }
0x1502   :  { %2432 = vadd.xlane.f32.xlu0 %v2431_v54  ;;  %vm137_vm12 = vmor %vm5429_vm5, %vm5441_vm4  ;;  %v3397_v19 = vsel %vm5456_vm3, 1.0, %v5824_v29 }
0x1503   :  { %vm5925_vm6 = vmmov %vm5920_vm2  ;;  %v145_v48 = vsel %vm137_vm12, 0.0, %v5903_v24  ;;  %v2670_v39 = vmul.f32 %v3397_v19, %v2662_v25 }
0x1504   :  { %2684 = vmax.xlane.f32.xlu1 %v2683_v32  ;;  %v2680_v27 = vsel %vm5925_vm6, %v2672_v20, -inf  ;;  %vm136_vm11 = vmor %vm5456_vm3, %vm5469_vm14  ;;  %v2679_v9 = vadd.f32 %v2671_v58, %v145_v48 }
0x1505   :  { %vm5927_vm5 = vmmov %vm5920_vm2  ;;  %v144_v63 = vsel %vm136_vm11, 0.0, %v5903_v24 }
0x1506   :  { %2681 = vmax.xlane.f32.xlu0 %v2680_v27  ;;  %v2689_v43 = vsel %vm5927_vm5, %v2675_v36, -inf  ;;  %vm5928_vm10 = vmmov %vm5920_vm2  ;;  %v2678_v30 = vadd.f32 %v2670_v39, %v144_v63 }
0x1507   :  { %v2686_v21 = vsel %vm5928_vm10, %v2674_v4, -inf  ;;  %vm5929_vm9 = vmmov %vm5920_vm2 }
0x1508   :  { %2690 = vmax.xlane.f32.xlu1 %v2689_v43  ;;  %v2695_v56 = vsel %vm5929_vm9, %v2677_v26, -inf  ;;  %vm5930_vm1 = vmmov %vm5920_vm2  ;;  %vm5943_vm9 = vcmp.ne.s32.totalorder %v4641_v6, 0 }
0x1509   :  { %v2692_v51 = vsel %vm5930_vm1, %v2676_v57, -inf  ;;  %vm5931_vm15 = vmmov %vm5930_vm1 }
0x150a   :  { %2687 = vmax.xlane.f32.xlu0 %v2686_v21  ;;  %v2701_v40 = vsel %vm5931_vm15, %v2679_v9, -inf  ;;  %vm5932_vm4 = vmmov %vm5930_vm1 }
0x150b   :  { %v2698_v0 = vsel %vm5932_vm4, %v2678_v30, -inf  ;;  %vm5933_vm13 = vmmov %vm5930_vm1 }
0x150c   :  { %2696 = vmax.xlane.f32.xlu1 %v2695_v56  ;;  %vm5934_vm3 = vmmov %vm5930_vm1 }
0x150d   :  { %vm5935_vm2 = vmmov %vm5930_vm1 }
0x150e   :  { %2693 = vmax.xlane.f32.xlu0 %v2692_v51  ;;  %vm5936_vm0 = vmmov %vm5930_vm1 }
0x150f   :  { %vm5937_vm14 = vmmov %vm5936_vm0 }
0x1510   :  { %2702 = vmax.xlane.f32.xlu1 %v2701_v40  ;;  %vm5938_vm7 = vmmov %vm5936_vm0 }
0x1511   :  { %vm5939_vm12 = vmmov %vm5936_vm0 }
0x1512   :  { %2699 = vmax.xlane.f32.xlu0 %v2698_v0  ;;  %vm5940_vm6 = vmmov %vm5936_vm0 }
0x1513   :  { %vm5941_vm8 = vmmov %vm5936_vm0 }
0x1514   :  { %vm5942_vm10 = vmmov %vm5936_vm0 }
0x1515   :  { %vm5944_vm15 = vmmov %vm5936_vm0 }
0x1521   :  { %2780 = vrot.lane.b32.xlu1 %v5303_v52, %s4237_s7 }
0x1525   :  { %2778 = vrot.lane.b32.xlu1 %v5316_v59, %s4237_s7 }
0x1528   :  { %2782 = vrot.lane.b32.xlu0 %v5289_v18, %s4237_s7 }
0x1529   :  { %2774 = vrot.lane.b32.xlu1 %v5354_v7, %s4237_s7 }
0x152c   :  { %2776 = vrot.lane.b32.xlu0 %v5334_v35, %s4237_s7 }
0x1530   :  { %2772 = vrot.lane.b32.xlu0 %v5371_v1, %s4237_s7 }
0x1589   :  { %v5517_v24 = vpop.xlane.xlu1 %2435 }
0x158b   :  { %v5519_v5 = vpop.xlane.xlu0 %2432 }
0x158d   :  { %v2685_v52 = vpop.xlane.xlu1 %2684 }
0x158e   :  { %v2705_v42 = vsub.f32 %v5406_v2, %v2685_v52 }
0x158f   :  { %v2682_v59 = vpop.xlane.xlu0 %2681 }
0x1590   :  { %v2714_v49 = vmul.f32 1.442695, %v2705_v42  ;;  %v2704_v47 = vsub.f32 %v2672_v20, %v2682_v59 }
0x1591   :  { %v2691_v18 = vpop.xlane.xlu1 %2690 }
0x1592   :  { %4182 = vpow2.f32 %v2714_v49  ;;  %v2712_v54 = vmul.f32 1.442695, %v2704_v47  ;;  %v2707_v7 = vsub.f32 %v2675_v36, %v2691_v18 }
0x1593   :  { %v2688_v37 = vpop.xlane.xlu0 %2687 }
0x1594   :  { %4184 = vpow2.f32 %v2712_v54  ;;  %v2718_v35 = vmul.f32 1.442695, %v2707_v7  ;;  %v2706_v8 = vsub.f32 %v2674_v4, %v2688_v37 }
0x1595   :  { %v2697_v28 = vpop.xlane.xlu1 %2696 }
0x1596   :  { %4186 = vpow2.f32 %v2718_v35  ;;  %v2716_v1 = vmul.f32 1.442695, %v2706_v8  ;;  %v2709_v3 = vsub.f32 %v2677_v26, %v2697_v28 }
0x1597   :  { %v2694_v17 = vpop.xlane.xlu0 %2693 }
0x1598   :  { %4188 = vpow2.f32 %v2716_v1  ;;  %v2722_v60 = vmul.f32 1.442695, %v2709_v3  ;;  %v2708_v23 = vsub.f32 %v2676_v57, %v2694_v17 }
0x1599   :  { %v2703_v2 = vpop.xlane.xlu1 %2702 }
0x159a   :  { %4190 = vpow2.f32 %v2722_v60  ;;  %v2720_v32 = vmul.f32 1.442695, %v2708_v23  ;;  %v2711_v20 = vsub.f32 %v2679_v9, %v2703_v2 }
0x159b   :  { %v2700_v55 = vpop.xlane.xlu0 %2699 }
0x159c   :  { %4192 = vpow2.f32 %v2720_v32  ;;  %v2726_v44 = vmul.f32 1.442695, %v2711_v20  ;;  %v2710_v36 = vsub.f32 %v2678_v30, %v2700_v55 }
0x159d   :  { %v2781_v12 = vpop.permute.xlu1 %2780 }
0x159e   :  { %4194 = vpow2.f32 %v2726_v44  ;;  %v2724_v31 = vmul.f32 1.442695, %v2710_v36 }
0x159f   :  { %v5522_v25 = vpop.eup %4182  ;;  %v2783_v27 = vpop.permute.xlu0 %2782 }
0x15a0   :  { %4196 = vpow2.f32 %v2724_v31  ;;  %3990 = vmatprep.subr.mxu1 %v2783_v27  ;;  %v2731_v4 = vsel %vm5933_vm13, %v5522_v25, 0.0 }
0x15a1   :  { %v5526_v19 = vpop.eup %4184  ;;  %2732 = vadd.xlane.f32.xlu0 %v2731_v4  ;;  %3991 = vmatpush3.msra.mxu1 %v2783_v27  ;;  %v2779_v62 = vpop.permute.xlu1 %2778  ;;  %4198 = vrcp.f32 %v5519_v5 }
0x15a2   :  { %3992 = vmatprep.subr.mxu1 %v2781_v12  ;;  %v2728_v58 = vsel %vm5934_vm3, %v5526_v19, 0.0  ;;  %4200 = vrcp.f32 %v5517_v24  ;;  %vm5945_vm3 = vmmov %vm5936_vm0 }
0x15a3   :  { %v5530_v43 = vpop.eup %4186  ;;  %2729 = vadd.xlane.f32.xlu1 %v2728_v58  ;;  %3993 = vmatpush3.msra.mxu1 %v2781_v12  ;;  %v2777_v26 = vpop.permute.xlu0 %2776 }
0x15a4   :  { %3994 = vmatprep.subr.mxu1 %v2779_v62  ;;  %v2737_v39 = vsel %vm5935_vm2, %v5530_v43, 0.0  ;;  %vm5946_vm2 = vcmp.ne.s32.totalorder %v4659_v50, 0 }
0x15a5   :  { %v5532_v48 = vpop.eup %4188  ;;  %3995 = vmatpush3.msra.mxu1 %v2779_v62  ;;  %v2775_v63 = vpop.permute.xlu1 %2774 }
0x15a6   :  { %3996 = vmatprep.subr.mxu1 %v2777_v26  ;;  %v2734_v21 = vsel %vm5936_vm0, %v5532_v48, 0.0 }
0x15a7   :  { %v5538_v57 = vpop.eup %4190  ;;  %2738 = vadd.xlane.f32.xlu1 %v2737_v39  ;;  %2735 = vadd.xlane.f32.xlu0 %v2734_v21  ;;  %v2773_v9 = vpop.permute.xlu0 %2772 }
0x15a8   :  { %3997 = vmatpush3.msra.mxu1 %v2777_v26  ;;  %v2743_v51 = vsel %vm5937_vm14, %v5538_v57, 0.0 }
0x15a9   :  { %v5540_v56 = vpop.eup %4192  ;;  %3998 = vmatprep.subr.mxu1 %v2775_v63 }
0x15aa   :  { %3999 = vmatpush3.msra.mxu1 %v2775_v63  ;;  %v2740_v30 = vsel %vm5938_vm7, %v5540_v56, 0.0 }
0x15ab   :  { %v5546_v40 = vpop.eup %4194  ;;  %4000 = vmatprep.subr.mxu1 %v2773_v9  ;;  %2744 = vadd.xlane.f32.xlu1 %v2743_v51 }
0x15ac   :  { %2741 = vadd.xlane.f32.xlu0 %v2740_v30  ;;  %4001 = vmatpush3.msra.mxu1 %v2773_v9  ;;  %v2749_v52 = vsel %vm5939_vm12, %v5546_v40, 0.0  ;;  %vm5947_vm12 = vmmov %vm5945_vm3 }
0x15ad   :  { %v5548_v0 = vpop.eup %4196 }
0x15ae   :  { %v2746_v42 = vsel %vm5940_vm6, %v5548_v0, 0.0  ;;  %v4199_v59 = vpop.eup %4198  ;;  %vm5948_vm6 = vmmov %vm5943_vm9 }
0x15af   :  { %2750 = vadd.xlane.f32.xlu1 %v2749_v52  ;;  %v5559_v49 = vmul.f32 %v4199_v59, %v5252_v34  ;;  %v4201_v47 = vpop.eup %4200 }
0x15b0   :  { %2747 = vadd.xlane.f32.xlu0 %v2746_v42  ;;  %v5565_v18 = vmul.f32 %v4201_v47, %v5248_v38 }
0x15c0   :  { %2770 = vrot.lane.b32.xlu1 %v5231_v46, %s4237_s7 }
0x15c4   :  { %2443 = vperm.xlu1 %4077, %v5559_v49  }
0x15c6   :  { %2768 = vrot.lane.b32.xlu0 %v5234_v13, %s4237_s7 }
0x15c8   :  { %4079 = vset.pattern.permute.xlu1 %v4239_v22 }
0x15c9   :  { %2470 = vperm.xlu1 %4079, %v5559_v49  }
0x15ca   :  { %2448 = vperm.xlu0 %4078, %v5565_v18  }
0x15cd   :  { %2474 = vperm.xlu1 %4079, %v5565_v18  }
0x15ce   :  { %4081 = vset.pattern.permute.xlu0 %v5823_v45 }
0x15d1   :  { %4080 = vset.pattern.permute.xlu1 %v5823_v45 }
0x162a   :  { %v2733_v46 = vpop.xlane.xlu0 %2732 }
0x162c   :  { %v2730_v34 = vpop.xlane.xlu1 %2729 }
0x162d   :  { %4202 = vrcp.f32 %v2730_v34 }
0x162e   :  { %4204 = vrcp.f32 %v2733_v46 }
0x1630   :  { %v2739_v13 = vpop.xlane.xlu1 %2738  ;;  %v2736_v24 = vpop.xlane.xlu0 %2735 }
0x1631   :  { %4206 = vrcp.f32 %v2736_v24  ;;  %v3550_v24 = vld [vmem:[%s5742_s3 + $0xe0] sm:$0xff] }
0x1632   :  { %4208 = vrcp.f32 %v2739_v13  ;;  %v3551_v13 = vld [vmem:[%s5742_s3 + $0xe8] sm:$0xff] }
0x1634   :  { %v2745_v38 = vpop.xlane.xlu1 %2744 }
0x1635   :  { %v2742_v22 = vpop.xlane.xlu0 %2741 }
0x1636   :  { %4210 = vrcp.f32 %v2742_v22 }
0x1637   :  { %4212 = vrcp.f32 %v2745_v38 }
0x1638   :  { %v2751_v5 = vpop.xlane.xlu1 %2750 }
0x1639   :  { %v2748_v54 = vpop.xlane.xlu0 %2747 }
0x163a   :  { %v4203_v7 = vpop.eup %4202  ;;  %4214 = vrcp.f32 %v2748_v54 }
0x163b   :  { %4216 = vrcp.f32 %v2751_v5  ;;  %v2753_v37 = vmul.f32 %v4203_v7, %v5526_v19  ;;  %v4205_v45 = vpop.eup %4204  ;;  %v3549_v7 = vld [vmem:[%s5742_s3 + $0xd8] sm:$0xff] }
0x163c   :  { %v2771_v35 = vpop.permute.xlu1 %2770  ;;  %v2755_v1 = vmul.f32 %v4205_v45, %v5522_v25 }
0x163d   :  { %4002 = vmatprep.subr.mxu1 %v2771_v35  ;;  %4006 = vmatprep.mubr.msk.f32.mxu1 %vm5941_vm8, %v2753_v37  ;;  %v2769_v8 = vpop.permute.xlu0 %2768  ;;  %v3548_v37 = vld [vmem:[%s5742_s3 + $0xd0] sm:$0xff] }
0x163e   :  { %4003 = vmatpush3.msra.mxu1 %v2771_v35  ;;  %v4207_v28 = vpop.eup %4206 }
0x163f   :  { %4004 = vmatprep.subr.mxu1 %v2769_v8  ;;  %v4209_v3 = vpop.eup %4208  ;;  %v2757_v60 = vmul.f32 %v4207_v28, %v5532_v48 }
0x1640   :  { %v2444_v17 = vpop.permute.xlu1 %2443  ;;  %4005 = vmatpush3.msra.mxu1 %v2769_v8  ;;  %v2759_v20 = vmul.f32 %v4209_v3, %v5530_v43 }
0x1641   :  { %vm2451_vm11 = vcmp.gt.f32.partialorder %v2444_v17, %v5559_v49  ;;  %vm2459_vm5 = vcmp.eq.f32.partialorder %v2444_v17, %v5559_v49  ;;  %4007 = vmatmul.mubr.msk.f32.vlgmr.msra.gmra.mxu1 %vm5942_vm10, %v2755_v1  ;;  %vm5949_vm10 = vmmov %vm5945_vm3  ;;  %4018 = vmatprep.subr.mxu1 %v3551_v13 }
0x1642   :  { %v3513_v23 = vsel %vm2451_vm11, 1.0, %v5824_v29  ;;  %vm2461_vm1 = vmand %vm2459_vm5, %vm5943_vm9  ;;  %4009 = vmatprep.mubr.msk.f32.mxu1 %vm5944_vm15, %v2757_v60  ;;  %4019 = vmatpush3.msra.mxu1 %v3551_v13 }
0x1643   :  { %v4211_v2 = vpop.eup %4210  ;;  %v3515_v32 = vsel %vm2461_vm1, 1.0, %v5824_v29  ;;  %vm5950_vm9 = vmmov %vm5946_vm2  ;;  %4020 = vmatprep.subr.mxu1 %v3550_v24 }
0x1644   :  { %v4213_v55 = vpop.eup %4212  ;;  %v2467_v44 = vadd.f32 %v3515_v32, %v3513_v23  ;;  %v2471_v36 = vpop.permute.xlu1 %2470  ;;  %v2761_v12 = vmul.f32 %v4211_v2, %v5540_v56  ;;  %vm5951_vm15 = vmmov %vm5945_vm3  ;;  %4021 = vmatpush3.msra.mxu1 %v3550_v24 }
0x1645   :  { %vm2477_vm4 = vcmp.gt.f32.partialorder %v2471_v36, %v5559_v49  ;;  %vm2485_vm13 = vcmp.eq.f32.partialorder %v2471_v36, %v5559_v49  ;;  %v2449_v31 = vpop.permute.xlu0 %2448  ;;  %4010 = vmatmul.mubr.msk.f32.gmra.mxu1 %vm5945_vm3, %v2759_v20  ;;  %v2763_v58 = vmul.f32 %v4213_v55, %v5538_v57  ;;  %4022 = vmatprep.subr.mxu1 %v3549_v7 }
0x1646   :  { %v3517_v25 = vsel %vm2477_vm4, 1.0, %v5824_v29  ;;  %vm2487_vm0 = vmand %vm2485_vm13, %vm5946_vm2  ;;  %vm2452_vm14 = vcmp.gt.f32.partialorder %v2449_v31, %v5565_v18  ;;  %vm2460_vm7 = vcmp.eq.f32.partialorder %v2449_v31, %v5565_v18  ;;  %4012 = vmatprep.mubr.msk.f32.mxu1 %vm5947_vm12, %v2761_v12  ;;  %vm5953_vm2 = vcmask 802560   ;;  %4023 = vmatpush3.msra.mxu1 %v3549_v7 }
0x1647   :  { %v4215_v27 = vpop.eup %4214  ;;  %v2483_v4 = vadd.f32 %v3517_v25, %v2467_v44  ;;  %v3519_v19 = vsel %vm2487_vm0, 1.0, %v5824_v29  ;;  %v3514_v62 = vsel %vm2452_vm14, 1.0, %v5824_v29  ;;  %vm2462_vm8 = vmand %vm2460_vm7, %vm5948_vm6  ;;  %4024 = vmatprep.subr.mxu1 %v3548_v37  ;;  %vm5955_vm14 = vcmask 64512  }
0x1648   :  { %v4217_v43 = vpop.eup %4216  ;;  %v3516_v26 = vsel %vm2462_vm8, 1.0, %v5824_v29  ;;  %v2475_v48 = vpop.permute.xlu1 %2474  ;;  %v2765_v39 = vmul.f32 %v4215_v27, %v5548_v0  ;;  %vm5952_vm13 = vmmov %vm5945_vm3  ;;  %4025 = vmatpush3.msra.mxu1 %v3548_v37  ;;  %vm5957_vm12 = vcmask 130048   ;;  %vm5959_vm8 = vcmask 195584  }
0x1649   :  { %v2493_v21 = vadd.f32 %v3519_v19, %v2483_v4  ;;  %v2468_v63 = vadd.f32 %v3516_v26, %v3514_v62  ;;  %vm2478_vm11 = vcmp.gt.f32.partialorder %v2475_v48, %v5565_v18  ;;  %vm2486_vm5 = vcmp.eq.f32.partialorder %v2475_v48, %v5565_v18  ;;  %4013 = vmatmul.mubr.msk.f32.gmra.mxu1 %vm5949_vm10, %v2763_v58  ;;  %vm5954_vm0 = vmmov %vm5953_vm2  ;;  %v5654_v26 = vld [vmem:[%s5742_s3 + $0x130] sm:$0xff] }
0x164a   :  { %v3518_v56 = vsel %vm2478_vm11, 1.0, %v5824_v29  ;;  %vm2488_vm1 = vmand %vm2486_vm5, %vm5950_vm9  ;;  %4015 = vmatprep.mubr.msk.f32.mxu1 %vm5951_vm15, %v2765_v39  ;;  %v2767_v9 = vmul.f32 %v4217_v43, %v5546_v40  ;;  %vm5961_vm5 = vcmask 261120   ;;  %v2994_v48 = vrot.slane %v5654_v26, %v4710_v41 }
0x164b   :  { %vm2495_vm4 = vcmp.lt.f32.partialorder %v2493_v21, 1.0  ;;  %v2484_v6 = vadd.f32 %v3518_v56, %v2468_v63  ;;  %v3520_v57 = vsel %vm2488_vm1, 1.0, %v5824_v29  ;;  %vm5956_vm7 = vmmov %vm5955_vm14 }
0x164c   :  { %v3521_v51 = vsel %vm2495_vm4, 1.0, %v5824_v29  ;;  %vm5958_vm6 = vmmov %vm5957_vm12 }
0x164d   :  { %v2501_v30 = vmul.f32 %v3521_v51, %v5559_v49  ;;  %v2494_v0 = vadd.f32 %v3520_v57, %v2484_v6  ;;  %4016 = vmatmul.mubr.msk.f32.gmra.mxu1 %vm5952_vm13, %v2767_v9  ;;  %v3347_v52 = vsel %vm5953_vm2, %v3521_v51, 0.0  ;;  %vm5960_vm11 = vmmov %vm5959_vm8  ;;  %vm5969_vm2 = vcmask 15360  }
0x164e   :  { %vm5962_vm10 = vmmov %vm5961_vm5 }
0x164f   :  { %vm2496_vm3 = vcmp.lt.f32.partialorder %v2494_v0, 1.0  ;;  %2923 = vrot.lane.b32.xlu0 %v2501_v30, %s4235_s6  ;;  %vm5963_vm9 = vmmov %vm5961_vm5 }
0x1650   :  { %v3522_v50 = vsel %vm2496_vm3, 1.0, %v5824_v29  ;;  %vm5964_vm1 = vmmov %vm5961_vm5 }
0x1651   :  { %v2502_v42 = vmul.f32 %v3522_v50, %v5565_v18  ;;  %v3348_v59 = vsel %vm5954_vm0, %v3522_v50, 0.0  ;;  %vm5965_vm15 = vmmov %vm5954_vm0 }
0x1652   :  { %v5620_v47 = vadd.f32 %v3348_v59, %v3347_v52  ;;  %vm5966_vm4 = vmmov %vm5954_vm0 }
0x1653   :  { %2927 = vrot.lane.b32.xlu0 %v2501_v30, %s4242_s8  ;;  %2925 = vrot.lane.b32.xlu1 %v2502_v42, %s4235_s6  ;;  %v3336_v30 = vsel %vm5965_vm15, %v5559_v49, 0.0  ;;  %v3337_v41 = vsel %vm5966_vm4, %v5565_v18, 0.0  ;;  %vm5967_vm13 = vmmov %vm5964_vm1 }
0x1654   :  { %v3338_v0 = vadd.f32 %v3337_v41, %v3336_v30  ;;  %vm5968_vm3 = vmmov %vm5964_vm1 }
0x1655   :  { %vm5970_vm0 = vmmov %vm5969_vm2 }
0x1656   :  { %v3339_v50 = vrot.slane %v3338_v0, 4  ;;  %vm5980_vm15 = vmmov %vm5964_vm1 }
0x1657   :  { %2929 = vrot.lane.b32.xlu1 %v2502_v42, %s4242_s8  ;;  %vm5981_vm4 = vmmov %vm5964_vm1 }
0x16c1   :  { %v2924_v40 = vpop.permute.xlu0 %2923 }
0x16c2   :  { %2932 = vperm.xlu0 %4081, %v2924_v40  }
0x16c5   :  { %v2926_v46 = vpop.permute.xlu1 %2925  ;;  %v2928_v34 = vpop.permute.xlu0 %2927 }
0x16c6   :  { %2936 = vperm.xlu1 %4080, %v2926_v46  }
0x16c9   :  { %v2930_v29 = vpop.permute.xlu1 %2929 }
0x16ca   :  { %2944 = vperm.xlu0 %4081, %v2930_v29   ;;  %2940 = vperm.xlu1 %4080, %v2928_v34  }
0x1701   :  { %v4008_v38 = vpop.f32.mrf.mxu1 }
0x1703   :  { %v2882_v22 = vpop.f32.mrf.mxu1 }
0x1705   :  { %v4011_v5 = vpop.f32.mrf.mxu1 }
0x1706   :  { %2959 = vrot.lane.b32.xlu0 %v4011_v5, %s4243_s15 }
0x1707   :  { %v2892_v54 = vpop.f32.mrf.mxu1 }
0x1708   :  { %2957 = vrot.lane.b32.xlu1 %v2892_v54, %s4243_s15 }
0x1709   :  { %v4014_v45 = vpop.f32.mrf.mxu1 }
0x170b   :  { %v2902_v35 = vpop.f32.mrf.mxu1 }
0x170d   :  { %v4017_v1 = vpop.f32.mrf.mxu1 }
0x170f   :  { %v2912_v60 = vpop.f32.mrf.mxu1 }
0x173d   :  { %v2933_v8 = vpop.permute.xlu0 %2932 }
0x173e   :  { %v2951_v28 = vmul.f32 %v2933_v8, %v2902_v35  ;;  %v3557_v35 = vld [vmem:[%s5742_s3 + $0x108] sm:$0xff]  ;;  %v3556_v8 = vld [vmem:[%s5742_s3 + $0x100] sm:$0xff] }
0x173f   :  { %4029 = vmatprep.subr.mxu1 %v3557_v35 }
0x1740   :  { %2965 = vrot.lane.b32.xlu1 %v2951_v28, %s4244_s18 }
0x1741   :  { %v2937_v3 = vpop.permute.xlu1 %2936 }
0x1742   :  { %v2952_v17 = vmul.f32 %v4014_v45, %v2937_v3 }
0x1744   :  { %2967 = vrot.lane.b32.xlu0 %v2952_v17, %s4244_s18 }
0x1745   :  { %v2941_v23 = vpop.permute.xlu1 %2940  ;;  %v2945_v2 = vpop.permute.xlu0 %2944 }
0x1746   :  { %v2953_v32 = vmul.f32 %v2941_v23, %v2912_v60  ;;  %v2954_v20 = vmul.f32 %v4017_v1, %v2945_v2  ;;  %v3554_v1 = vld [vmem:[%s5742_s3 + $0xf0] sm:$0xff] }
0x1748   :  { %2973 = vrot.lane.b32.xlu1 %v2953_v32, %s4245_s19  ;;  %2975 = vrot.lane.b32.xlu0 %v2954_v20, %s4245_s19 }
0x1778   :  { %v2960_v55 = vpop.permute.xlu0 %2959 }
0x1779   :  { %v2980_v31 = vsel %vm5955_vm14, %v4008_v38, %v2960_v55  ;;  %v3350_v38 = vrot.slane %v5620_v47, 4  ;;  %vm5971_vm14 = vmmov %vm5964_vm1 }
0x177a   :  { %v2958_v44 = vpop.permute.xlu1 %2957 }
0x177b   :  { %v2979_v25 = vsel %vm5956_vm7, %v2882_v22, %v2958_v44  ;;  %v3351_v22 = vadd.f32 %v3350_v38, %v5620_v47  ;;  %v3555_v47 = vld [vmem:[%s5742_s3 + $0xf8] sm:$0xff]  ;;  %vm5972_vm7 = vmmov %vm5964_vm1 }
0x177d   :  { %v3352_v54 = vrot.slane %v3351_v22, 2 }
0x177f   :  { %v3353_v37 = vadd.f32 %v3352_v54, %v3351_v22 }
0x1781   :  { %v3354_v28 = vrot.slane %v3353_v37, 1 }
0x1783   :  { %v5686_v3 = vadd.f32 %v3354_v28, %v3353_v37 }
0x17b2   :  { %v2966_v36 = vpop.permute.xlu1 %2965 }
0x17b3   :  { %v2981_v27 = vsel %vm5957_vm12, %v2979_v25, %v2966_v36  ;;  %v3107_v25 = vrot.slane %v5654_v26, %v4741_v53  ;;  %v3561_v53 = vld [vmem:[%s5742_s3 + $0x118] sm:$0xff]  ;;  %vm5973_vm12 = vmmov %vm5964_vm1 }
0x17b6   :  { %v2968_v12 = vpop.permute.xlu0 %2967 }
0x17b7   :  { %v2982_v4 = vsel %vm5958_vm6, %v2980_v31, %v2968_v12  ;;  %vm5974_vm6 = vmmov %vm5964_vm1 }
0x17ba   :  { %v2974_v19 = vpop.permute.xlu1 %2973  ;;  %v2976_v62 = vpop.permute.xlu0 %2975 }
0x17bb   :  { %v2983_v58 = vsel %vm5959_vm8, %v2981_v27, %v2974_v19  ;;  %v2984_v43 = vsel %vm5960_vm11, %v2982_v4, %v2976_v62  ;;  %v3563_v19 = vld [vmem:[%s5742_s3 + $0x128] sm:$0xff]  ;;  %v3562_v62 = vld [vmem:[%s5742_s3 + $0x120] sm:$0xff]  ;;  %vm5975_vm8 = vmmov %vm5964_vm1 }
0x17bc   :  { %4026 = vmatprep.mubr.msk.f32.mxu1 %vm5961_vm5, %v2983_v58  ;;  %4040 = vmatprep.subr.mxu0 %v3563_v19  ;;  %vm5976_vm11 = vmmov %vm5964_vm1 }
0x17bd   :  { %4027 = vmatmul.mubr.msk.f32.vlgmr.msra.gmra.mxu1 %vm5962_vm10, %v2984_v43  ;;  %4041 = vmatpush3.msra.mxu0 %v3563_v19  ;;  %vm5977_vm5 = vmmov %vm5964_vm1 }
0x17be   :  { %4030 = vmatpush3.msra.mxu1 %v3557_v35  ;;  %4042 = vmatprep.subr.mxu0 %v3562_v62  ;;  %vm5978_vm10 = vmmov %vm5964_vm1 }
0x17bf   :  { %4031 = vmatprep.subr.mxu1 %v3556_v8  ;;  %4043 = vmatpush3.msra.mxu0 %v3562_v62 }
0x17c0   :  { %4032 = vmatpush3.msra.mxu1 %v3556_v8  ;;  %4044 = vmatprep.subr.mxu0 %v3561_v53 }
0x17c1   :  { %4033 = vmatprep.subr.mxu1 %v3555_v47  ;;  %4045 = vmatpush3.msra.mxu0 %v3561_v53 }
0x17c2   :  { %4034 = vmatpush3.msra.mxu1 %v3555_v47 }
0x17c3   :  { %4035 = vmatprep.subr.mxu1 %v3554_v1 }
0x17c4   :  { %4036 = vmatpush3.msra.mxu1 %v3554_v1 }
0x187d   :  { %v4028_v39 = vpop.f32.mrf.mxu1 }
0x187e   :  { %v3073_v21 = vadd.f32 %v4028_v39, %v2994_v48 }
0x187f   :  { %v3067_v63 = vpop.f32.mrf.mxu1 }
0x1880   :  { %v3077_v56 = vadd.f32 %v3073_v21, %v5138_v16  ;;  %v3068_v6 = vadd.f32 %v3067_v63, %v2994_v48  ;;  %v3113_v48 = vrot.slane %v5654_v26, %v4746_v14  ;;  %v3560_v14 = vld [vmem:[%s5742_s3 + $0x110] sm:$0xff] }
0x1881   :  { %4046 = vmatprep.subr.mxu0 %v3560_v14 }
0x1882   :  { %v3076_v57 = vadd.f32 %v3068_v6, %v5136_v61  ;;  %v3081_v9 = vsel %vm5963_vm9, %v3077_v56, 0.0  ;;  %v3340_v61 = vadd.f32 %v3339_v50, %v3338_v0  ;;  %4047 = vmatpush3.msra.mxu0 %v3560_v14  ;;  %v3214_v0 = vrot.slane %v5654_v26, %v5106_v33  ;;  %vm5979_vm9 = vmmov %vm5970_vm0 }
0x1883   :  { %3082 = vadd.xlane.f32.xlu0 %v3081_v9 }
0x1884   :  { %v3078_v51 = vsel %vm5964_vm1, %v3076_v57, 0.0  ;;  %v3341_v24 = vrot.slane %v3340_v61, 2 }
0x1885   :  { %3079 = vadd.xlane.f32.xlu1 %v3078_v51 }
0x1886   :  { %v3342_v18 = vadd.f32 %v3341_v24, %v3340_v61 }
0x1888   :  { %v3343_v5 = vrot.slane %v3342_v18, 1 }
0x188a   :  { %v3344_v7 = vadd.f32 %v3343_v5, %v3342_v18 }
0x188c   :  { %v5670_v45 = vmul.f32 0.0625, %v3344_v7 }
0x190c   :  { %v3083_v52 = vpop.xlane.xlu0 %3082 }
0x190d   :  { %v3085_v42 = vmul.f32 0.03125, %v3083_v52 }
0x190e   :  { %v3080_v16 = vpop.xlane.xlu1 %3079 }
0x190f   :  { %v3087_v59 = vsub.f32 %v3077_v56, %v3085_v42  ;;  %v3084_v40 = vmul.f32 0.03125, %v3080_v16  ;;  %v3123_v56 = vrot.slane %v5654_v26, %v4794_v15 }
0x1911   :  { %v3086_v46 = vsub.f32 %v3076_v57, %v3084_v40  ;;  %v3089_v34 = vmul.f32 %v3087_v59, %v3087_v59 }
0x1913   :  { %v3093_v29 = vsel %vm5967_vm13, %v3089_v34, 0.0  ;;  %v3088_v13 = vmul.f32 %v3086_v46, %v3086_v46 }
0x1914   :  { %3094 = vadd.xlane.f32.xlu1 %v3093_v29 }
0x1915   :  { %v3090_v49 = vsel %vm5968_vm3, %v3088_v13, 0.0 }
0x1916   :  { %3091 = vadd.xlane.f32.xlu0 %v3090_v49 }
0x1925   :  { %3367 = vrot.lane.b32.xlu1 %v5670_v45, %s4235_s6 }
0x192c   :  { %3357 = vrot.lane.b32.xlu0 %v5686_v3, %s4235_s6 }
0x199d   :  { %v3095_v17 = vpop.xlane.xlu1 %3094 }
0x199e   :  { %v3097_v60 = vmul.f32 0.03125, %v3095_v17 }
0x199f   :  { %v3092_v23 = vpop.xlane.xlu0 %3091 }
0x19a0   :  { %v3099_v2 = vadd.f32 1e-05, %v3097_v60  ;;  %v3096_v32 = vmul.f32 0.03125, %v3092_v23 }
0x19a1   :  { %v3368_v20 = vpop.permute.xlu1 %3367 }
0x19a2   :  { %4218 = vrsqrt.f32 %v3099_v2  ;;  %v3098_v55 = vadd.f32 1e-05, %v3096_v32  ;;  %v3370_v44 = vsel %vm5969_vm2, %v3368_v20, 0.0 }
0x19a3   :  { %v3358_v36 = vpop.permute.xlu0 %3357  ;;  %3371 = vadd.xlane.f32.xlu0 %v3370_v44  ;;  %v3327_v44 = vrot.slane %v5654_v26, %v5127_v10 }
0x19a4   :  { %4220 = vrsqrt.f32 %v3098_v55  ;;  %v3360_v12 = vsel %vm5970_vm0, %v3358_v36, 0.0 }
0x19a5   :  { %3361 = vadd.xlane.f32.xlu1 %v3360_v12 }
0x19af   :  { %v4219_v31 = vpop.eup %4218 }
0x19b0   :  { %v3103_v27 = vmul.f32 %v4219_v31, %v3087_v59  ;;  %v3333_v31 = vrot.slane %v5654_v26, %v5130_v11 }
0x19b1   :  { %v4221_v4 = vpop.eup %4220 }
0x19b2   :  { %v3102_v58 = vmul.f32 %v4221_v4, %v3086_v46  ;;  %v3109_v43 = vmul.f32 %v3107_v25, %v3103_v27 }
0x19b4   :  { %v3108_v39 = vmul.f32 %v3107_v25, %v3102_v58  ;;  %v3115_v63 = vadd.f32 %v3113_v48, %v3109_v43 }
0x19b6   :  { %v3114_v21 = vadd.f32 %v3113_v48, %v3108_v39 }
0x19b8   :  { %4037 = vmatprep.mubr.msk.f32.mxu1 %vm5971_vm14, %v3114_v21 }
0x19b9   :  { %4038 = vmatmul.mubr.msk.f32.vlgmr.msra.gmra.mxu1 %vm5972_vm7, %v3115_v63 }
0x1a2c   :  { %v3372_v59 = vpop.xlane.xlu0 %3371 }
0x1a2d   :  { %v3373_v29 = vadd.f32 1e-05, %v3372_v59 }
0x1a2e   :  { %v3362_v52 = vpop.xlane.xlu1 %3361 }
0x1a2f   :  { %v3363_v61 = vadd.f32 1e-05, %v3362_v52 }
0x1a31   :  { %4222 = vrcp.f32 %v3363_v61 }
0x1a32   :  { %4224 = vrcp.f32 %v3373_v29 }
0x1a3e   :  { %v4223_v24 = vpop.eup %4222 }
0x1a3f   :  { %v4225_v33 = vpop.eup %4224  ;;  %v3365_v49 = vmul.f32 %v4223_v24, %v5686_v3 }
0x1a40   :  { %v3375_v38 = vmul.f32 %v4225_v33, %v5670_v45 }
0x1a42   :  { %v3376_v18 = vmul.f32 %v3375_v38, %v3365_v49 }
0x1a79   :  { %v4039_v6 = vpop.f32.mrf.mxu1 }
0x1a7a   :  { %v3202_v57 = vadd.f32 %v4039_v6, %v3123_v56 }
0x1a7b   :  { %v3196_v9 = vpop.f32.mrf.mxu1 }
0x1a7c   :  { %v3197_v51 = vadd.f32 %v3196_v9, %v3123_v56  ;;  %v3206_v41 = vmax.f32 %v3202_v57, 0.0 }
0x1a7e   :  { %v3205_v30 = vmax.f32 %v3197_v51, 0.0 }
0x1a80   :  { %4048 = vmatprep.mubr.msk.f32.mxu0 %vm5973_vm12, %v3205_v30 }
0x1a81   :  { %4049 = vmatmul.mubr.msk.f32.vlgmr.msra.gmra.mxu0 %vm5974_vm6, %v3206_v41 }
0x1b41   :  { %v4050_v50 = vpop.f32.mrf.mxu0 }
0x1b42   :  { %v3293_v42 = vadd.f32 %v4050_v50, %v3214_v0 }
0x1b43   :  { %v3287_v16 = vpop.f32.mrf.mxu0 }
0x1b44   :  { %v3297_v40 = vadd.f32 %v3293_v42, %v3115_v63  ;;  %v3288_v15 = vadd.f32 %v3287_v16, %v3214_v0 }
0x1b46   :  { %v3296_v46 = vadd.f32 %v3288_v15, %v3114_v21  ;;  %v3301_v34 = vsel %vm5975_vm8, %v3297_v40, 0.0 }
0x1b47   :  { %3302 = vadd.xlane.f32.xlu1 %v3301_v34 }
0x1b48   :  { %v3298_v13 = vsel %vm5976_vm11, %v3296_v46, 0.0 }
0x1b49   :  { %3299 = vadd.xlane.f32.xlu0 %v3298_v13 }
0x1b5f   :  { %3378 = vrot.lane.b32.xlu0 %v3376_v18, %s4235_s6 }
0x1bd0   :  { %v3303_v22 = vpop.xlane.xlu1 %3302 }
0x1bd1   :  { %v3305_v5 = vmul.f32 0.03125, %v3303_v22 }
0x1bd2   :  { %v3300_v54 = vpop.xlane.xlu0 %3299 }
0x1bd3   :  { %v3304_v7 = vmul.f32 0.03125, %v3300_v54  ;;  %v3307_v37 = vsub.f32 %v3297_v40, %v3305_v5 }
0x1bd5   :  { %v3306_v35 = vsub.f32 %v3296_v46, %v3304_v7  ;;  %v3309_v47 = vmul.f32 %v3307_v37, %v3307_v37 }
0x1bd6   :  { %v3379_v17 = vpop.permute.xlu0 %3378 }
0x1bd7   :  { %v3308_v8 = vmul.f32 %v3306_v35, %v3306_v35  ;;  %v3313_v1 = vsel %vm5978_vm10, %v3309_v47, 0.0  ;;  %v3381_v45 = vsel %vm5979_vm9, %v3379_v17, 0.0 }
0x1bd9   :  { %v3310_v28 = vsel %vm5977_vm5, %v3308_v8, 0.0 }
0x1bda   :  { %3311 = vadd.xlane.f32.xlu1 %v3310_v28 }
0x1bde   :  { %3314 = vadd.xlane.f32.xlu1 %v3313_v1 }
0x1be2   :  { %3382 = vadd.xlane.f32.xlu1 %v3381_v45 }
0x1c63   :  { %v3312_v3 = vpop.xlane.xlu1 %3311 }
0x1c64   :  { %v3316_v60 = vmul.f32 0.03125, %v3312_v3 }
0x1c66   :  { %v3318_v23 = vadd.f32 1e-05, %v3316_v60 }
0x1c67   :  { %v3315_v2 = vpop.xlane.xlu1 %3314 }
0x1c68   :  { %4226 = vrsqrt.f32 %v3318_v23  ;;  %v3317_v32 = vmul.f32 0.03125, %v3315_v2 }
0x1c6a   :  { %v3319_v20 = vadd.f32 1e-05, %v3317_v32 }
0x1c6b   :  { %v3383_v55 = vpop.xlane.xlu1 %3382 }
0x1c6c   :  { %4228 = vrsqrt.f32 %v3319_v20  ;;  %3386 = vst.msk [vmem:[%s5744_s4 + $0x10] sm:$0xff] %vm5964_vm1, %v3383_v55 }
0x1c75   :  { %v4227_v36 = vpop.eup %4226 }
0x1c76   :  { %v3322_v12 = vmul.f32 %v4227_v36, %v3306_v35 }
0x1c78   :  { %v3328_v25 = vmul.f32 %v3327_v44, %v3322_v12 }
0x1c79   :  { %v4229_v27 = vpop.eup %4228 }
0x1c7a   :  { %v3323_v4 = vmul.f32 %v4229_v27, %v3307_v37  ;;  %v3334_v19 = vadd.f32 %v3333_v31, %v3328_v25 }
0x1c7c   :  { %v3329_v62 = vmul.f32 %v3327_v44, %v3323_v4  ;;  %3384 = vst.msk [vmem:[%s5744_s4] sm:$0xff] %vm5980_vm15, %v3334_v19 }
0x1c7e   :  { %v3335_v58 = vadd.f32 %v3333_v31, %v3329_v62 }
0x1c80   :  { %3385 = vst.msk [vmem:[%s5744_s4 + $0x8] sm:$0xff] %vm5981_vm4, %v3335_v58 }

</bundles_post_ra>
